<compile_context>
chip_gen: v7x
topology: tpu7x:2x2x1
jax: 0.10.0
libtpu: 0.0.40
codegen_flags: <defaults>
</compile_context>

<pallas_src>
import math

import jax
import jax.numpy as jnp
from jax import lax
from jax.experimental import pallas as pl
from jax.experimental.pallas import tpu as pltpu

GROUPS = 32
EPS = 1e-6


def _silu(x):
    return x * jax.nn.sigmoid(x)


def _round_up(v, m):
    return (v + m - 1) // m * m


def _nbytes(shape, dtype):
    return math.prod(shape) * jnp.dtype(dtype).itemsize


def _group_scale_shift(x_f32, gamma, beta):
    """Fold per-sample GroupNorm into y = x * scale + shift ((N,1,C) each)."""
    N, H, W, C = x_f32.shape
    cpg = C // GROUPS
    xg = x_f32.reshape(N, H * W, GROUPS, cpg)
    mean = xg.mean(axis=(1, 3))                       # (N, G)
    var = xg.var(axis=(1, 3))                         # (N, G)
    inv = lax.rsqrt(var + EPS)
    mean_c = jnp.repeat(mean, cpg, axis=1)            # (N, C)
    inv_c = jnp.repeat(inv, cpg, axis=1)              # (N, C)
    g = gamma.reshape(1, C).astype(jnp.float32)
    b = beta.reshape(1, C).astype(jnp.float32)
    scale = g * inv_c
    shift = b - mean_c * scale
    return (scale.reshape(N, 1, C).astype(jnp.float32),
            shift.reshape(N, 1, C).astype(jnp.float32))


def _make_conv_kernel(*, W, Wp, TR, C, Cout, Cres, add_extra, residual):
    """affine-norm -> SiLU -> 3x3 conv (+bias, +extra) (+residual) per row tile."""
    HWt = TR * W

    def kernel(*refs):
        it = iter(refs)
        x_ref = next(it)             # (1, H, W, C)   bf16, full image (halo src)
        scale_ref = next(it)         # (1, 1, C)      f32
        shift_ref = next(it)         # (1, 1, C)      f32
        w_ref = next(it)             # (3, 3*C, Cout) bf16
        b_ref = next(it)             # (1, Cout)      f32
        extra_ref = next(it) if add_extra else None           # (1, 1, Cout) f32
        res_ref = next(it) if residual is not None else None  # (1, TR, W, Cres)
        ws_ref = bs_ref = None
        if residual == "nin":
            ws_ref = next(it)        # (Cres, Cout)   f32
            bs_ref = next(it)        # (1, Cout)      f32
        o_ref = next(it)             # (1, TR, W, Cout) bf16
        pad_ref = next(it)           # (TR+2, Wp, C)    bf16 scratch
        col_ref = next(it)           # ((TR+2)*W, 3*C)  bf16 scratch

        t = pl.program_id(1)
        r0 = t * TR
        scale = scale_ref[0]         # (1, C)
        shift = shift_ref[0]

        def norm_silu(v):
            # All element-wise math in f32 (no bf16 VPU/EUP on v5e); bf16 is
            # only the DMA / MXU-operand format.
            a = v.astype(jnp.float32) * scale + shift
            return (a * jax.nn.sigmoid(a)).astype(pad_ref.dtype)

        z = lambda s: jnp.zeros(s, pad_ref.dtype)
        # (Re)zero only the 1-pixel halo / padding columns each step (both grid
        # axes are "parallel", so no step may rely on another step's stores).
        pad_ref[:, 0:1, :] = z((TR + 2, 1, C))
        pad_ref[:, W + 1:Wp, :] = z((TR + 2, Wp - W - 1, C))
        pad_ref[0:1, 1:W + 1, :] = z((1, W, C))
        pad_ref[TR + 1:TR + 2, 1:W + 1, :] = z((1, W, C))
        # Interior rows of this tile.
        pad_ref[1:TR + 1, 1:W + 1, :] = norm_silu(x_ref[0, pl.ds(r0, TR), :, :])

        # 1-row halo from the neighbouring tiles (stays zero at image borders).
        @pl.when(t > 0)
        def _():
            pad_ref[0:1, 1:W + 1, :] = norm_silu(
                x_ref[0, pl.ds(r0 - 1, 1), :, :])

        @pl.when(t < pl.num_programs(1) - 1)
        def _():
            pad_ref[TR + 1:TR + 2, 1:W + 1, :] = norm_silu(
                x_ref[0, pl.ds(r0 + TR, 1), :, :])

        # dx-only im2col slab ((TR+2)*W, 3*C): 3 gathers instead of 9; the dy
        # taps become row-offset LHS views below (no additional copies).
        for dx in range(3):
            col_ref[:, dx * C:(dx + 1) * C] = (
                pad_ref[:, dx:dx + W, :].reshape((TR + 2) * W, C))

        # Three accumulating MXU matmuls, K = 3*C each, f32 accumulation.
        acc = jnp.dot(col_ref[0:HWt, :], w_ref[0],
                      preferred_element_type=jnp.float32)
        acc = acc + jnp.dot(col_ref[W:W + HWt, :], w_ref[1],
                            preferred_element_type=jnp.float32)
        acc = acc + jnp.dot(col_ref[2 * W:2 * W + HWt, :], w_ref[2],
                            preferred_element_type=jnp.float32)
        acc = acc + b_ref[...]
        if add_extra:
            acc = acc + extra_ref[0]                     # (1, Cout) temb proj

        if residual == "identity":
            acc = acc + res_ref[0].reshape(HWt, Cres).astype(jnp.float32)
        elif residual == "nin":
            # Nin (1x1) shortcut kept in f32: unit-std weights make bf16
            # rounding the dominant error there, and it is a small matmul.
            xs = jnp.dot(res_ref[0].reshape(HWt, Cres).astype(jnp.float32),
                         ws_ref[...], preferred_element_type=jnp.float32)
            acc = acc + xs + bs_ref[...]

        o_ref[0] = acc.reshape(TR, W, Cout).astype(o_ref.dtype)

    return kernel


def _conv_stage(x_full, scale, shift, w3, bias, *, extra=None, residual=None,
                nin=None, row_tile=8):
    """One pallas_call over grid (N, H/TR): silu(norm) -> conv3x3 (+extra/+res)."""
    N, H, W, C = x_full.shape
    Cout = w3.shape[-1]
    # TODO(synk): pad H to a tile multiple instead of this whole-image fallback.
    TR = row_tile if (row_tile < H and H % row_tile == 0) else H
    T = H // TR
    Wp = _round_up(W + 2, 8)

    res_mode = None
    Cres = 0
    if residual is not None:
        res_mode = "nin" if nin is not None else "identity"
        Cres = residual.shape[-1]

    kernel = _make_conv_kernel(W=W, Wp=Wp, TR=TR, C=C, Cout=Cout, Cres=Cres,
                               add_extra=extra is not None, residual=res_mode)

    inputs = [x_full, scale, shift, w3, bias]
    if extra is not None:
        inputs.append(extra)
    if residual is not None:
        inputs.append(residual)
    if nin is not None:
        inputs += [nin[0], nin[1]]

    scratch_shapes = [pltpu.VMEM((TR + 2, Wp, C), jnp.bfloat16),
                      pltpu.VMEM(((TR + 2) * W, 3 * C), jnp.bfloat16)]

    # VMEM budget: double-buffered blocks + single-buffered scratch + margin,
    # capped at 75% of physical per-core VMEM (never ask for v7x's full 64 MiB).
    block_bytes = (_nbytes((1, H, W, C), x_full.dtype)
                   + 2 * _nbytes((1, 1, C), jnp.float32)
                   + _nbytes(w3.shape, w3.dtype)
                   + _nbytes((1, Cout), jnp.float32)
                   + _nbytes((1, TR, W, Cout), jnp.bfloat16))
    if extra is not None:
        block_bytes += _nbytes((1, 1, Cout), jnp.float32)
    if residual is not None:
        block_bytes += _nbytes((1, TR, W, Cres), residual.dtype)
    if nin is not None:
        block_bytes += (_nbytes(nin[0].shape, nin[0].dtype)
                        + _nbytes((1, Cout), jnp.float32))
    scratch_bytes = sum(_nbytes(s.shape, s.dtype) for s in scratch_shapes)

    try:
        phys = int(getattr(pltpu.get_tpu_info(), "vmem_capacity_bytes", 0))
    except Exception:
        phys = 0
    if not phys:
        phys = 64 << 20
    cap = (phys * 3) // 4
    need = 2 * block_bytes + scratch_bytes + (4 << 20)
    vmem_limit = int(min(cap, max(need, 32 << 20)))

    def run(single_buffer_constants):
        def const_spec(shape):
            idx = lambda n, t, _r=len(shape): (0,) * _r
            if single_buffer_constants:
                # Constant-index operands never re-DMA; single buffering saves
                # a weight-slab of VMEM at UNet channel counts.
                return pl.BlockSpec(shape, idx, pipeline_mode=pl.Buffered(1))
            return pl.BlockSpec(shape, idx)

        in_specs = [
            pl.BlockSpec((1, H, W, C), lambda n, t: (n, 0, 0, 0)),   # halo src
            pl.BlockSpec((1, 1, C), lambda n, t: (n, 0, 0)),         # scale
            pl.BlockSpec((1, 1, C), lambda n, t: (n, 0, 0)),         # shift
            const_spec((3, 3 * C, Cout)),                            # conv W
            const_spec((1, Cout)),                                   # conv b
        ]
        if extra is not None:
            in_specs.append(pl.BlockSpec((1, 1, Cout), lambda n, t: (n, 0, 0)))
        if residual is not None:
            in_specs.append(
                pl.BlockSpec((1, TR, W, Cres), lambda n, t: (n, t, 0, 0)))
        if nin is not None:
            in_specs += [const_spec((Cres, Cout)), const_spec((1, Cout))]

        return pl.pallas_call(
            kernel,
            out_shape=jax.ShapeDtypeStruct((N, H, W, Cout), jnp.bfloat16),
            grid_spec=pltpu.PrefetchScalarGridSpec(
                num_scalar_prefetch=0,
                grid=(N, T),
                in_specs=in_specs,
                out_specs=pl.BlockSpec((1, TR, W, Cout),
                                       lambda n, t: (n, t, 0, 0)),
                scratch_shapes=scratch_shapes),
            compiler_params=pltpu.CompilerParams(
                dimension_semantics=("parallel", "parallel"),
                vmem_limit_bytes=vmem_limit),
        )(*inputs)

    try:
        return run(True)
    except Exception:
        # pl.Buffered(1) unsupported on this JAX/Mosaic build -> fall back to
        # default double buffering (identical results, slightly more VMEM).
        return run(False)


def resnet_block_2d(x_nchw, temb, params, *, row_tile=8):
    """x_nchw: (N, Cin, H, W); temb: (N, Tc). Returns (N, Cout, H, W) f32."""
    N, Cin, H, W = x_nchw.shape
    Cout = params["w1"].shape[-1]
    has_shortcut = Cin != Cout

    # TODO(synk): keep the surrounding UNet in NHWC to drop these transposes.
    x_f32 = jnp.transpose(x_nchw, (0, 2, 3, 1)).astype(jnp.float32)    # NHWC
    x_bf = x_f32.astype(jnp.bfloat16)      # bf16 activation I/O for the kernels

    # GroupNorm statistics (full-image reductions) hoisted to plain JAX; this
    # is what allows the kernels to row-tile.
    s1, t1 = _group_scale_shift(x_bf.astype(jnp.float32),
                                params["g1"], params["b1n"])

    # time-embedding projection hoisted (far below MXU granularity in-kernel).
    tproj = (_silu(temb.astype(jnp.float32)) @ params["wt"]
             + params["bt"]).reshape(N, 1, Cout).astype(jnp.float32)

    # Conv weights as one (3*C, Cout) bf16 slab per dy tap row.
    w1 = params["w1"].reshape(3, 3 * Cin, Cout).astype(jnp.bfloat16)
    w2 = params["w2"].reshape(3, 3 * Cout, Cout).astype(jnp.bfloat16)

    # stage 1: silu(norm1(x)) -> conv1 -> +bias +temb projection   (bf16 out)
    h1 = _conv_stage(x_bf, s1, t1, w1, params["b1"], extra=tproj,
                     residual=None, nin=None, row_tile=row_tile)

    # norm2 statistics from the stage-1 output (one cheap extra HBM read).
    s2, t2 = _group_scale_shift(h1.astype(jnp.float32),
                                params["g2"], params["b2n"])

    # stage 2: silu(norm2(h1)) -> [dropout p=0 => identity] -> conv2 -> +shortcut
    # TODO(synk): conv_shortcut=True (3x3 shortcut conv) variant not wired.
    nin = ((params["ws"].astype(jnp.float32), params["bs"].astype(jnp.float32))
           if has_shortcut else None)
    out = _conv_stage(h1, s2, t2, w2, params["b2"], extra=None,
                      residual=x_f32, nin=nin, row_tile=row_tile)

    return jnp.transpose(out.astype(jnp.float32), (0, 3, 1, 2))


# ------------------------- pure-JAX reference ------------------------------

def _ref_group_norm(x_nhwc, gamma, beta):
    N, H, W, C = x_nhwc.shape
    cpg = C // GROUPS
    xg = x_nhwc.reshape(N, H * W, GROUPS, cpg)
    mean = xg.mean(axis=(1, 3), keepdims=True)
    var = ((xg - mean) ** 2).mean(axis=(1, 3), keepdims=True)
    xn = (xg - mean) / jnp.sqrt(var + EPS)
    return (xn.reshape(N, H, W, C) * gamma.reshape(1, 1, 1, C)
            + beta.reshape(1, 1, 1, C))


def ref_forward(x_nchw, temb, p):
    x = jnp.transpose(x_nchw, (0, 2, 3, 1))
    dn = ("NHWC", "HWIO", "NHWC")
    h = _silu(_ref_group_norm(x, p["g1"][0], p["b1n"][0]))
    h = lax.conv_general_dilated(h, p["w1"], (1, 1), "SAME",
                                 dimension_numbers=dn) + p["b1"][0]
    tp = _silu(temb) @ p["wt"] + p["bt"][0]
    h = h + tp[:, None, None, :]
    h = _silu(_ref_group_norm(h, p["g2"][0], p["b2n"][0]))
    h = lax.conv_general_dilated(h, p["w2"], (1, 1), "SAME",
                                 dimension_numbers=dn) + p["b2"][0]
    xs = (x @ p["ws"] + p["bs"][0]) if "ws" in p else x
    return jnp.transpose(xs + h, (0, 3, 1, 2))


# ---------------------------------------------------------------------------

def _make_params(key, Cin, Cout, Tc):
    ks = jax.random.split(key, 7)
    p = {
        # GroupNorm affine params (PyTorch default init: weight=1, bias=0)
        "g1": jnp.ones((1, Cin), jnp.float32),
        "b1n": jnp.zeros((1, Cin), jnp.float32),
        "g2": jnp.ones((1, Cout), jnp.float32),
        "b2n": jnp.zeros((1, Cout), jnp.float32),
        # conv1 / conv2 weights stored HWIO (= transpose of PyTorch OIHW)
        "w1": jax.random.normal(ks[0], (3, 3, Cin, Cout), jnp.float32) * 0.05,
        "b1": jax.random.normal(ks[1], (1, Cout), jnp.float32) * 0.05,
        "w2": jax.random.normal(ks[2], (3, 3, Cout, Cout), jnp.float32) * 0.05,
        "b2": jax.random.normal(ks[3], (1, Cout), jnp.float32) * 0.05,
        # time_emb_proj (Linear), stored as (Tc, Cout) == W.T
        "wt": jax.random.normal(ks[4], (Tc, Cout), jnp.float32) * 0.05,
        "bt": jax.random.normal(ks[5], (1, Cout), jnp.float32) * 0.05,
    }
    if Cin != Cout:
        # Nin shortcut: weight ~ N(0, init_scale=1.0), bias = 0 (module init)
        p["ws"] = jax.random.normal(ks[6], (Cin, Cout), jnp.float32)
        p["bs"] = jnp.zeros((1, Cout), jnp.float32)
    return p


if __name__ == "__main__":
    key = jax.random.PRNGKey(0)
    N, H, W, Tc = 2, 16, 16, 32      # H=16 with row_tile=8 -> 2 row tiles/image

    # Nin-shortcut path (in_ch != out_ch) and identity-shortcut path.
    for (Cin, Cout) in ((32, 64), (64, 64)):
        key, kx, kt, kp = jax.random.split(key, 4)
        params = _make_params(kp, Cin, Cout, Tc)
        x = jax.random.normal(kx, (N, Cin, H, W), jnp.float32)
        temb = jax.random.normal(kt, (N, Tc), jnp.float32)

        out = jax.block_until_ready(resnet_block_2d(x, temb, params))
        assert out.shape == (N, Cout, H, W), out.shape

        ref = jax.block_until_ready(ref_forward(x, temb, params))
        # bf16 activations / MXU operands / bf16 intermediate -> loose tolerance.
        assert bool(jnp.allclose(out, ref, atol=3e-2, rtol=3e-2)), (
            f"Cin={Cin} Cout={Cout} "
            f"max_err={float(jnp.max(jnp.abs(out - ref)))}")

    print("KERNEL_OK")
</pallas_src>

<mosaic_0001>
module attributes {stable_mosaic.version = 11 : i64} {
  func.func @kernel(%arg0: i32, %arg1: i32, %arg2: memref<1x16x16x32xbf16, #tpu.memory_space<vmem>>, %arg3: memref<1x1x32xf32, #tpu.memory_space<vmem>>, %arg4: memref<1x1x32xf32, #tpu.memory_space<vmem>>, %arg5: memref<3x96x64xbf16, #tpu.memory_space<vmem>>, %arg6: memref<1x64xf32, #tpu.memory_space<vmem>>, %arg7: memref<1x1x64xf32, #tpu.memory_space<vmem>>, %arg8: memref<1x8x16x64xbf16, #tpu.memory_space<vmem>>, %arg9: memref<10x24x32xbf16, #tpu.memory_space<vmem>>, %arg10: memref<160x96xbf16, #tpu.memory_space<vmem>>) attributes {dimension_semantics = [#tpu.dimension_semantics<parallel>, #tpu.dimension_semantics<parallel>], iteration_bounds = array<i64: 2, 2>, scalar_prefetch = 0 : i64, scratch_operands = 2 : i64, tpu.core_type = #tpu.core_type<tc>, window_params = [{transform_indices = @transform_0, window_bounds = array<i64: 1, 16, 16, 32>}, {transform_indices = @transform_1, window_bounds = array<i64: 1, 1, 32>}, {transform_indices = @transform_2, window_bounds = array<i64: 1, 1, 32>}, {pipeline_mode = #tpu.pipeline_mode<synchronous>, transform_indices = @transform_3, window_bounds = array<i64: 3, 96, 64>}, {pipeline_mode = #tpu.pipeline_mode<synchronous>, transform_indices = @transform_4, window_bounds = array<i64: 1, 64>}, {transform_indices = @transform_5, window_bounds = array<i64: 1, 1, 64>}, {transform_indices = @transform_6, window_bounds = array<i64: 1, 8, 16, 64>}]} {
    %c8_i32 = arith.constant 8 : i32
    %0 = arith.muli %arg1, %c8_i32 : i32
    %c0 = arith.constant 0 : index
    %c0_0 = arith.constant 0 : index
    %c0_1 = arith.constant 0 : index
    %1 = vector.load %arg3[%c0, %c0_0, %c0_1] : memref<1x1x32xf32, #tpu.memory_space<vmem>>, vector<1x1x32xf32>
    %2 = vector.shape_cast %1 : vector<1x1x32xf32> to vector<1x32xf32>
    %c0_2 = arith.constant 0 : index
    %c0_3 = arith.constant 0 : index
    %c0_4 = arith.constant 0 : index
    %3 = vector.load %arg4[%c0_2, %c0_3, %c0_4] : memref<1x1x32xf32, #tpu.memory_space<vmem>>, vector<1x1x32xf32>
    %4 = vector.shape_cast %3 : vector<1x1x32xf32> to vector<1x32xf32>
    %cst = arith.constant 0.000000e+00 : bf16
    %5 = vector.broadcast %cst : bf16 to vector<10x1x32xbf16>
    %c0_5 = arith.constant 0 : index
    %c0_6 = arith.constant 0 : index
    %c0_7 = arith.constant 0 : index
    %6 = vector.load %arg9[%c0_5, %c0_6, %c0_7] : memref<10x24x32xbf16, #tpu.memory_space<vmem>>, vector<10x1x32xbf16>
    tpu.vector_store %arg9[%c0_5, %c0_6, %c0_7], %5 {strides = array<i32>} : memref<10x24x32xbf16, #tpu.memory_space<vmem>>, vector<10x1x32xbf16>,
    %cst_8 = arith.constant 0.000000e+00 : bf16
    %7 = vector.broadcast %cst_8 : bf16 to vector<10x7x32xbf16>
    %c0_9 = arith.constant 0 : index
    %c17 = arith.constant 17 : index
    %c0_10 = arith.constant 0 : index
    %8 = vector.load %arg9[%c0_9, %c17, %c0_10] : memref<10x24x32xbf16, #tpu.memory_space<vmem>>, vector<10x7x32xbf16>
    tpu.vector_store %arg9[%c0_9, %c17, %c0_10], %7 {strides = array<i32>} : memref<10x24x32xbf16, #tpu.memory_space<vmem>>, vector<10x7x32xbf16>,
    %cst_11 = arith.constant 0.000000e+00 : bf16
    %9 = vector.broadcast %cst_11 : bf16 to vector<1x16x32xbf16>
    %c0_12 = arith.constant 0 : index
    %c1 = arith.constant 1 : index
    %c0_13 = arith.constant 0 : index
    %10 = vector.load %arg9[%c0_12, %c1, %c0_13] : memref<10x24x32xbf16, #tpu.memory_space<vmem>>, vector<1x16x32xbf16>
    tpu.vector_store %arg9[%c0_12, %c1, %c0_13], %9 {strides = array<i32>} : memref<10x24x32xbf16, #tpu.memory_space<vmem>>, vector<1x16x32xbf16>,
    %cst_14 = arith.constant 0.000000e+00 : bf16
    %11 = vector.broadcast %cst_14 : bf16 to vector<1x16x32xbf16>
    %c9 = arith.constant 9 : index
    %c1_15 = arith.constant 1 : index
    %c0_16 = arith.constant 0 : index
    %12 = vector.load %arg9[%c9, %c1_15, %c0_16] : memref<10x24x32xbf16, #tpu.memory_space<vmem>>, vector<1x16x32xbf16>
    tpu.vector_store %arg9[%c9, %c1_15, %c0_16], %11 {strides = array<i32>} : memref<10x24x32xbf16, #tpu.memory_space<vmem>>, vector<1x16x32xbf16>,
    %c0_17 = arith.constant 0 : index
    %13 = arith.index_cast %0 : i32 to index
    %c0_18 = arith.constant 0 : index
    %c0_19 = arith.constant 0 : index
    %14 = vector.load %arg2[%c0_17, %13, %c0_18, %c0_19] : memref<1x16x16x32xbf16, #tpu.memory_space<vmem>>, vector<1x8x16x32xbf16>
    %15 = vector.shape_cast %14 : vector<1x8x16x32xbf16> to vector<8x16x32xbf16>
    %16 = arith.extf %15 : vector<8x16x32xbf16> to vector<8x16x32xf32>
    %17 = vector.shape_cast %2 : vector<1x32xf32> to vector<1x1x32xf32>
    %18 = vector.broadcast %17 : vector<1x1x32xf32> to vector<8x16x32xf32>
    %19 = arith.mulf %16, %18 : vector<8x16x32xf32>
    %20 = vector.shape_cast %4 : vector<1x32xf32> to vector<1x1x32xf32>
    %21 = vector.broadcast %20 : vector<1x1x32xf32> to vector<8x16x32xf32>
    %22 = arith.addf %19, %21 : vector<8x16x32xf32>
    %23 = arith.negf %22 : vector<8x16x32xf32>
    %24 = math.exp %23 : vector<8x16x32xf32>
    %cst_20 = arith.constant 1.000000e+00 : f32
    %25 = vector.broadcast %cst_20 : f32 to vector<8x16x32xf32>
    %26 = arith.addf %25, %24 : vector<8x16x32xf32>
    %27 = arith.divf %25, %26 : vector<8x16x32xf32>
    %28 = arith.mulf %22, %27 : vector<8x16x32xf32>
    %29 = arith.truncf %28 : vector<8x16x32xf32> to vector<8x16x32xbf16>
    %c1_21 = arith.constant 1 : index
    %c1_22 = arith.constant 1 : index
    %c0_23 = arith.constant 0 : index
    %30 = vector.load %arg9[%c1_21, %c1_22, %c0_23] : memref<10x24x32xbf16, #tpu.memory_space<vmem>>, vector<8x16x32xbf16>
    tpu.vector_store %arg9[%c1_21, %c1_22, %c0_23], %29 {strides = array<i32>} : memref<10x24x32xbf16, #tpu.memory_space<vmem>>, vector<8x16x32xbf16>,
    %c0_i32 = arith.constant 0 : i32
    %31 = arith.cmpi sgt, %arg1, %c0_i32 : i32
    %32 = arith.extui %31 : i1 to i32
    %c0_i32_24 = arith.constant 0 : i32
    %33 = arith.cmpi ne, %32, %c0_i32_24 : i32
    scf.if %33 {
      %c1_i32_64 = arith.constant 1 : i32
      %72 = arith.subi %0, %c1_i32_64 : i32
      %c0_65 = arith.constant 0 : index
      %73 = arith.index_cast %72 : i32 to index
      %c0_66 = arith.constant 0 : index
      %c0_67 = arith.constant 0 : index
      %74 = vector.load %arg2[%c0_65, %73, %c0_66, %c0_67] : memref<1x16x16x32xbf16, #tpu.memory_space<vmem>>, vector<1x1x16x32xbf16>
      %75 = vector.shape_cast %74 : vector<1x1x16x32xbf16> to vector<1x16x32xbf16>
      %76 = arith.extf %75 : vector<1x16x32xbf16> to vector<1x16x32xf32>
      %77 = vector.shape_cast %2 : vector<1x32xf32> to vector<1x1x32xf32>
      %78 = vector.broadcast %77 : vector<1x1x32xf32> to vector<1x16x32xf32>
      %79 = arith.mulf %76, %78 : vector<1x16x32xf32>
      %80 = vector.shape_cast %4 : vector<1x32xf32> to vector<1x1x32xf32>
      %81 = vector.broadcast %80 : vector<1x1x32xf32> to vector<1x16x32xf32>
      %82 = arith.addf %79, %81 : vector<1x16x32xf32>
      %83 = arith.negf %82 : vector<1x16x32xf32>
      %84 = math.exp %83 : vector<1x16x32xf32>
      %cst_68 = arith.constant 1.000000e+00 : f32
      %85 = vector.broadcast %cst_68 : f32 to vector<1x16x32xf32>
      %86 = arith.addf %85, %84 : vector<1x16x32xf32>
      %87 = arith.divf %85, %86 : vector<1x16x32xf32>
      %88 = arith.mulf %82, %87 : vector<1x16x32xf32>
      %89 = arith.truncf %88 : vector<1x16x32xf32> to vector<1x16x32xbf16>
      %c0_69 = arith.constant 0 : index
      %c1_70 = arith.constant 1 : index
      %c0_71 = arith.constant 0 : index
      %90 = vector.load %arg9[%c0_69, %c1_70, %c0_71] : memref<10x24x32xbf16, #tpu.memory_space<vmem>>, vector<1x16x32xbf16>
      tpu.vector_store %arg9[%c0_69, %c1_70, %c0_71], %89 {strides = array<i32>} : memref<10x24x32xbf16, #tpu.memory_space<vmem>>, vector<1x16x32xbf16>,
    } else {
    }
    %c1_i32 = arith.constant 1 : i32
    %34 = arith.cmpi slt, %arg1, %c1_i32 : i32
    %35 = arith.extui %34 : i1 to i32
    %c0_i32_25 = arith.constant 0 : i32
    %36 = arith.cmpi ne, %35, %c0_i32_25 : i32
    scf.if %36 {
      %c8_i32_64 = arith.constant 8 : i32
      %72 = arith.addi %0, %c8_i32_64 : i32
      %c0_65 = arith.constant 0 : index
      %73 = arith.index_cast %72 : i32 to index
      %c0_66 = arith.constant 0 : index
      %c0_67 = arith.constant 0 : index
      %74 = vector.load %arg2[%c0_65, %73, %c0_66, %c0_67] : memref<1x16x16x32xbf16, #tpu.memory_space<vmem>>, vector<1x1x16x32xbf16>
      %75 = vector.shape_cast %74 : vector<1x1x16x32xbf16> to vector<1x16x32xbf16>
      %76 = arith.extf %75 : vector<1x16x32xbf16> to vector<1x16x32xf32>
      %77 = vector.shape_cast %2 : vector<1x32xf32> to vector<1x1x32xf32>
      %78 = vector.broadcast %77 : vector<1x1x32xf32> to vector<1x16x32xf32>
      %79 = arith.mulf %76, %78 : vector<1x16x32xf32>
      %80 = vector.shape_cast %4 : vector<1x32xf32> to vector<1x1x32xf32>
      %81 = vector.broadcast %80 : vector<1x1x32xf32> to vector<1x16x32xf32>
      %82 = arith.addf %79, %81 : vector<1x16x32xf32>
      %83 = arith.negf %82 : vector<1x16x32xf32>
      %84 = math.exp %83 : vector<1x16x32xf32>
      %cst_68 = arith.constant 1.000000e+00 : f32
      %85 = vector.broadcast %cst_68 : f32 to vector<1x16x32xf32>
      %86 = arith.addf %85, %84 : vector<1x16x32xf32>
      %87 = arith.divf %85, %86 : vector<1x16x32xf32>
      %88 = arith.mulf %82, %87 : vector<1x16x32xf32>
      %89 = arith.truncf %88 : vector<1x16x32xf32> to vector<1x16x32xbf16>
      %c9_69 = arith.constant 9 : index
      %c1_70 = arith.constant 1 : index
      %c0_71 = arith.constant 0 : index
      %90 = vector.load %arg9[%c9_69, %c1_70, %c0_71] : memref<10x24x32xbf16, #tpu.memory_space<vmem>>, vector<1x16x32xbf16>
      tpu.vector_store %arg9[%c9_69, %c1_70, %c0_71], %89 {strides = array<i32>} : memref<10x24x32xbf16, #tpu.memory_space<vmem>>, vector<1x16x32xbf16>,
    } else {
    }
    %c0_26 = arith.constant 0 : index
    %c0_27 = arith.constant 0 : index
    %c0_28 = arith.constant 0 : index
    %37 = vector.load %arg9[%c0_26, %c0_27, %c0_28] : memref<10x24x32xbf16, #tpu.memory_space<vmem>>, vector<10x16x32xbf16>
    %38 = vector.shape_cast %37 : vector<10x16x32xbf16> to vector<160x32xbf16>
    %c0_29 = arith.constant 0 : index
    %c0_30 = arith.constant 0 : index
    %39 = vector.load %arg10[%c0_29, %c0_30] : memref<160x96xbf16, #tpu.memory_space<vmem>>, vector<160x32xbf16>
    tpu.vector_store %arg10[%c0_29, %c0_30], %38 {strides = array<i32>} : memref<160x96xbf16, #tpu.memory_space<vmem>>, vector<160x32xbf16>,
    %c0_31 = arith.constant 0 : index
    %c1_32 = arith.constant 1 : index
    %c0_33 = arith.constant 0 : index
    %40 = vector.load %arg9[%c0_31, %c1_32, %c0_33] : memref<10x24x32xbf16, #tpu.memory_space<vmem>>, vector<10x16x32xbf16>
    %41 = vector.shape_cast %40 : vector<10x16x32xbf16> to vector<160x32xbf16>
    %c0_34 = arith.constant 0 : index
    %c32 = arith.constant 32 : index
    %42 = vector.load %arg10[%c0_34, %c32] : memref<160x96xbf16, #tpu.memory_space<vmem>>, vector<160x32xbf16>
    tpu.vector_store %arg10[%c0_34, %c32], %41 {strides = array<i32>} : memref<160x96xbf16, #tpu.memory_space<vmem>>, vector<160x32xbf16>,
    %c0_35 = arith.constant 0 : index
    %c2 = arith.constant 2 : index
    %c0_36 = arith.constant 0 : index
    %43 = vector.load %arg9[%c0_35, %c2, %c0_36] : memref<10x24x32xbf16, #tpu.memory_space<vmem>>, vector<10x16x32xbf16>
    %44 = vector.shape_cast %43 : vector<10x16x32xbf16> to vector<160x32xbf16>
    %c0_37 = arith.constant 0 : index
    %c64 = arith.constant 64 : index
    %45 = vector.load %arg10[%c0_37, %c64] : memref<160x96xbf16, #tpu.memory_space<vmem>>, vector<160x32xbf16>
    tpu.vector_store %arg10[%c0_37, %c64], %44 {strides = array<i32>} : memref<160x96xbf16, #tpu.memory_space<vmem>>, vector<160x32xbf16>,
    %c0_38 = arith.constant 0 : index
    %c0_39 = arith.constant 0 : index
    %46 = vector.load %arg10[%c0_38, %c0_39] : memref<160x96xbf16, #tpu.memory_space<vmem>>, vector<128x96xbf16>
    %c0_40 = arith.constant 0 : index
    %c0_41 = arith.constant 0 : index
    %c0_42 = arith.constant 0 : index
    %47 = vector.load %arg5[%c0_40, %c0_41, %c0_42] : memref<3x96x64xbf16, #tpu.memory_space<vmem>>, vector<1x96x64xbf16>
    %48 = vector.shape_cast %47 : vector<1x96x64xbf16> to vector<96x64xbf16>
    %cst_43 = arith.constant dense<0.000000e+00> : vector<128x64xf32>
    %49 = tpu.matmul %46, %48, %cst_43 {dimension_numbers = #tpu.dot_dimension_numbers<[1], [0], [0], [1], [0, 0, 1, 1], [], []>} : vector<128x96xbf16>, vector<96x64xbf16>, vector<128x64xf32> -> vector<128x64xf32>
    %c16 = arith.constant 16 : index
    %c0_44 = arith.constant 0 : index
    %50 = vector.load %arg10[%c16, %c0_44] : memref<160x96xbf16, #tpu.memory_space<vmem>>, vector<128x96xbf16>
    %c1_45 = arith.constant 1 : index
    %c0_46 = arith.constant 0 : index
    %c0_47 = arith.constant 0 : index
    %51 = vector.load %arg5[%c1_45, %c0_46, %c0_47] : memref<3x96x64xbf16, #tpu.memory_space<vmem>>, vector<1x96x64xbf16>
    %52 = vector.shape_cast %51 : vector<1x96x64xbf16> to vector<96x64xbf16>
    %cst_48 = arith.constant dense<0.000000e+00> : vector<128x64xf32>
    %53 = tpu.matmul %50, %52, %cst_48 {dimension_numbers = #tpu.dot_dimension_numbers<[1], [0], [0], [1], [0, 0, 1, 1], [], []>} : vector<128x96xbf16>, vector<96x64xbf16>, vector<128x64xf32> -> vector<128x64xf32>
    %54 = arith.addf %49, %53 : vector<128x64xf32>
    %c32_49 = arith.constant 32 : index
    %c0_50 = arith.constant 0 : index
    %55 = vector.load %arg10[%c32_49, %c0_50] : memref<160x96xbf16, #tpu.memory_space<vmem>>, vector<128x96xbf16>
    %c2_51 = arith.constant 2 : index
    %c0_52 = arith.constant 0 : index
    %c0_53 = arith.constant 0 : index
    %56 = vector.load %arg5[%c2_51, %c0_52, %c0_53] : memref<3x96x64xbf16, #tpu.memory_space<vmem>>, vector<1x96x64xbf16>
    %57 = vector.shape_cast %56 : vector<1x96x64xbf16> to vector<96x64xbf16>
    %cst_54 = arith.constant dense<0.000000e+00> : vector<128x64xf32>
    %58 = tpu.matmul %55, %57, %cst_54 {dimension_numbers = #tpu.dot_dimension_numbers<[1], [0], [0], [1], [0, 0, 1, 1], [], []>} : vector<128x96xbf16>, vector<96x64xbf16>, vector<128x64xf32> -> vector<128x64xf32>
    %59 = arith.addf %54, %58 : vector<128x64xf32>
    %c0_55 = arith.constant 0 : index
    %c0_56 = arith.constant 0 : index
    %60 = vector.load %arg6[%c0_55, %c0_56] : memref<1x64xf32, #tpu.memory_space<vmem>>, vector<1x64xf32>
    %61 = vector.broadcast %60 : vector<1x64xf32> to vector<128x64xf32>
    %62 = arith.addf %59, %61 : vector<128x64xf32>
    %c0_57 = arith.constant 0 : index
    %c0_58 = arith.constant 0 : index
    %c0_59 = arith.constant 0 : index
    %63 = vector.load %arg7[%c0_57, %c0_58, %c0_59] : memref<1x1x64xf32, #tpu.memory_space<vmem>>, vector<1x1x64xf32>
    %64 = vector.shape_cast %63 : vector<1x1x64xf32> to vector<1x64xf32>
    %65 = vector.broadcast %64 : vector<1x64xf32> to vector<128x64xf32>
    %66 = arith.addf %62, %65 : vector<128x64xf32>
    %67 = vector.shape_cast %66 : vector<128x64xf32> to vector<8x16x64xf32>
    %68 = arith.truncf %67 : vector<8x16x64xf32> to vector<8x16x64xbf16>
    %c0_60 = arith.constant 0 : index
    %c0_61 = arith.constant 0 : index
    %c0_62 = arith.constant 0 : index
    %c0_63 = arith.constant 0 : index
    %69 = vector.load %arg8[%c0_60, %c0_61, %c0_62, %c0_63] : memref<1x8x16x64xbf16, #tpu.memory_space<vmem>>, vector<1x8x16x64xbf16>
    %70 = vector.shape_cast %69 : vector<1x8x16x64xbf16> to vector<8x16x64xbf16>
    %71 = vector.shape_cast %68 : vector<8x16x64xbf16> to vector<1x8x16x64xbf16>
    tpu.vector_store %arg8[%c0_60, %c0_61, %c0_62, %c0_63], %71 {strides = array<i32>} : memref<1x8x16x64xbf16, #tpu.memory_space<vmem>>, vector<1x8x16x64xbf16>,
    return
  }
  func.func @transform_0(%arg0: i32, %arg1: i32) -> (i32, i32, i32, i32) {
    %c0_i32 = arith.constant 0 : i32
    %c0_i32_0 = arith.constant 0 : i32
    %c0_i32_1 = arith.constant 0 : i32
    %c0_i32_2 = arith.constant 0 : i32
    return %arg0, %c0_i32, %c0_i32_0, %c0_i32_1 : i32, i32, i32, i32
  }
  func.func @transform_1(%arg0: i32, %arg1: i32) -> (i32, i32, i32) {
    %c0_i32 = arith.constant 0 : i32
    %c0_i32_0 = arith.constant 0 : i32
    %c0_i32_1 = arith.constant 0 : i32
    return %arg0, %c0_i32, %c0_i32_0 : i32, i32, i32
  }
  func.func @transform_2(%arg0: i32, %arg1: i32) -> (i32, i32, i32) {
    %c0_i32 = arith.constant 0 : i32
    %c0_i32_0 = arith.constant 0 : i32
    %c0_i32_1 = arith.constant 0 : i32
    return %arg0, %c0_i32, %c0_i32_0 : i32, i32, i32
  }
  func.func @transform_3(%arg0: i32, %arg1: i32) -> (i32, i32, i32) {
    %c0_i32 = arith.constant 0 : i32
    %c0_i32_0 = arith.constant 0 : i32
    %c0_i32_1 = arith.constant 0 : i32
    %c0_i32_2 = arith.constant 0 : i32
    return %c0_i32, %c0_i32_0, %c0_i32_1 : i32, i32, i32
  }
  func.func @transform_4(%arg0: i32, %arg1: i32) -> (i32, i32) {
    %c0_i32 = arith.constant 0 : i32
    %c0_i32_0 = arith.constant 0 : i32
    %c0_i32_1 = arith.constant 0 : i32
    return %c0_i32, %c0_i32_0 : i32, i32
  }
  func.func @transform_5(%arg0: i32, %arg1: i32) -> (i32, i32, i32) {
    %c0_i32 = arith.constant 0 : i32
    %c0_i32_0 = arith.constant 0 : i32
    %c0_i32_1 = arith.constant 0 : i32
    return %arg0, %c0_i32, %c0_i32_0 : i32, i32, i32
  }
  func.func @transform_6(%arg0: i32, %arg1: i32) -> (i32, i32, i32, i32) {
    %c0_i32 = arith.constant 0 : i32
    %c0_i32_0 = arith.constant 0 : i32
    %c0_i32_1 = arith.constant 0 : i32
    return %arg0, %arg1, %c0_i32, %c0_i32_0 : i32, i32, i32, i32
  }
}

module attributes {stable_mosaic.version = 11 : i64} {
  func.func @kernel(%arg0: i32, %arg1: i32, %arg2: memref<1x16x16x32xbf16, #tpu.memory_space<vmem>>, %arg3: memref<1x1x32xf32, #tpu.memory_space<vmem>>, %arg4: memref<1x1x32xf32, #tpu.memory_space<vmem>>, %arg5: memref<3x96x64xbf16, #tpu.memory_space<vmem>>, %arg6: memref<1x64xf32, #tpu.memory_space<vmem>>, %arg7: memref<1x1x64xf32, #tpu.memory_space<vmem>>, %arg8: memref<1x8x16x64xbf16, #tpu.memory_space<vmem>>, %arg9: memref<10x24x32xbf16, #tpu.memory_space<vmem>>, %arg10: memref<160x96xbf16, #tpu.memory_space<vmem>>) attributes {dimension_semantics = [#tpu.dimension_semantics<parallel>, #tpu.dimension_semantics<parallel>], iteration_bounds = array<i64: 2, 2>, scalar_prefetch = 0 : i64, scratch_operands = 2 : i64, tpu.core_type = #tpu.core_type<tc>, window_params = [{transform_indices = @transform_0, window_bounds = array<i64: 1, 16, 16, 32>}, {transform_indices = @transform_1, window_bounds = array<i64: 1, 1, 32>}, {transform_indices = @transform_2, window_bounds = array<i64: 1, 1, 32>}, {pipeline_mode = #tpu.pipeline_mode<synchronous>, transform_indices = @transform_3, window_bounds = array<i64: 3, 96, 64>}, {pipeline_mode = #tpu.pipeline_mode<synchronous>, transform_indices = @transform_4, window_bounds = array<i64: 1, 64>}, {transform_indices = @transform_5, window_bounds = array<i64: 1, 1, 64>}, {transform_indices = @transform_6, window_bounds = array<i64: 1, 8, 16, 64>}]} {
    %c8_i32 = arith.constant 8 : i32
    %0 = arith.muli %arg1, %c8_i32 : i32
    %c0 = arith.constant 0 : index
    %c0_0 = arith.constant 0 : index
    %c0_1 = arith.constant 0 : index
    %1 = vector.load %arg3[%c0, %c0_0, %c0_1] : memref<1x1x32xf32, #tpu.memory_space<vmem>>, vector<1x1x32xf32>
    %2 = vector.shape_cast %1 : vector<1x1x32xf32> to vector<1x32xf32>
    %c0_2 = arith.constant 0 : index
    %c0_3 = arith.constant 0 : index
    %c0_4 = arith.constant 0 : index
    %3 = vector.load %arg4[%c0_2, %c0_3, %c0_4] : memref<1x1x32xf32, #tpu.memory_space<vmem>>, vector<1x1x32xf32>
    %4 = vector.shape_cast %3 : vector<1x1x32xf32> to vector<1x32xf32>
    %cst = arith.constant 0.000000e+00 : bf16
    %5 = vector.broadcast %cst : bf16 to vector<10x1x32xbf16>
    %c0_5 = arith.constant 0 : index
    %c0_6 = arith.constant 0 : index
    %c0_7 = arith.constant 0 : index
    %6 = vector.load %arg9[%c0_5, %c0_6, %c0_7] : memref<10x24x32xbf16, #tpu.memory_space<vmem>>, vector<10x1x32xbf16>
    tpu.vector_store %arg9[%c0_5, %c0_6, %c0_7], %5 {strides = array<i32>} : memref<10x24x32xbf16, #tpu.memory_space<vmem>>, vector<10x1x32xbf16>,
    %cst_8 = arith.constant 0.000000e+00 : bf16
    %7 = vector.broadcast %cst_8 : bf16 to vector<10x7x32xbf16>
    %c0_9 = arith.constant 0 : index
    %c17 = arith.constant 17 : index
    %c0_10 = arith.constant 0 : index
    %8 = vector.load %arg9[%c0_9, %c17, %c0_10] : memref<10x24x32xbf16, #tpu.memory_space<vmem>>, vector<10x7x32xbf16>
    tpu.vector_store %arg9[%c0_9, %c17, %c0_10], %7 {strides = array<i32>} : memref<10x24x32xbf16, #tpu.memory_space<vmem>>, vector<10x7x32xbf16>,
    %cst_11 = arith.constant 0.000000e+00 : bf16
    %9 = vector.broadcast %cst_11 : bf16 to vector<1x16x32xbf16>
    %c0_12 = arith.constant 0 : index
    %c1 = arith.constant 1 : index
    %c0_13 = arith.constant 0 : index
    %10 = vector.load %arg9[%c0_12, %c1, %c0_13] : memref<10x24x32xbf16, #tpu.memory_space<vmem>>, vector<1x16x32xbf16>
    tpu.vector_store %arg9[%c0_12, %c1, %c0_13], %9 {strides = array<i32>} : memref<10x24x32xbf16, #tpu.memory_space<vmem>>, vector<1x16x32xbf16>,
    %cst_14 = arith.constant 0.000000e+00 : bf16
    %11 = vector.broadcast %cst_14 : bf16 to vector<1x16x32xbf16>
    %c9 = arith.constant 9 : index
    %c1_15 = arith.constant 1 : index
    %c0_16 = arith.constant 0 : index
    %12 = vector.load %arg9[%c9, %c1_15, %c0_16] : memref<10x24x32xbf16, #tpu.memory_space<vmem>>, vector<1x16x32xbf16>
    tpu.vector_store %arg9[%c9, %c1_15, %c0_16], %11 {strides = array<i32>} : memref<10x24x32xbf16, #tpu.memory_space<vmem>>, vector<1x16x32xbf16>,
    %c0_17 = arith.constant 0 : index
    %13 = arith.index_cast %0 : i32 to index
    %c0_18 = arith.constant 0 : index
    %c0_19 = arith.constant 0 : index
    %14 = vector.load %arg2[%c0_17, %13, %c0_18, %c0_19] : memref<1x16x16x32xbf16, #tpu.memory_space<vmem>>, vector<1x8x16x32xbf16>
    %15 = vector.shape_cast %14 : vector<1x8x16x32xbf16> to vector<8x16x32xbf16>
    %16 = arith.extf %15 : vector<8x16x32xbf16> to vector<8x16x32xf32>
    %17 = vector.shape_cast %2 : vector<1x32xf32> to vector<1x1x32xf32>
    %18 = vector.broadcast %17 : vector<1x1x32xf32> to vector<8x16x32xf32>
    %19 = arith.mulf %16, %18 : vector<8x16x32xf32>
    %20 = vector.shape_cast %4 : vector<1x32xf32> to vector<1x1x32xf32>
    %21 = vector.broadcast %20 : vector<1x1x32xf32> to vector<8x16x32xf32>
    %22 = arith.addf %19, %21 : vector<8x16x32xf32>
    %23 = arith.negf %22 : vector<8x16x32xf32>
    %24 = math.exp %23 : vector<8x16x32xf32>
    %cst_20 = arith.constant 1.000000e+00 : f32
    %25 = vector.broadcast %cst_20 : f32 to vector<8x16x32xf32>
    %26 = arith.addf %25, %24 : vector<8x16x32xf32>
    %27 = arith.divf %25, %26 : vector<8x16x32xf32>
    %28 = arith.mulf %22, %27 : vector<8x16x32xf32>
    %29 = arith.truncf %28 : vector<8x16x32xf32> to vector<8x16x32xbf16>
    %c1_21 = arith.constant 1 : index
    %c1_22 = arith.constant 1 : index
    %c0_23 = arith.constant 0 : index
    %30 = vector.load %arg9[%c1_21, %c1_22, %c0_23] : memref<10x24x32xbf16, #tpu.memory_space<vmem>>, vector<8x16x32xbf16>
    tpu.vector_store %arg9[%c1_21, %c1_22, %c0_23], %29 {strides = array<i32>} : memref<10x24x32xbf16, #tpu.memory_space<vmem>>, vector<8x16x32xbf16>,
    %c0_i32 = arith.constant 0 : i32
    %31 = arith.cmpi sgt, %arg1, %c0_i32 : i32
    %32 = arith.extui %31 : i1 to i32
    %c0_i32_24 = arith.constant 0 : i32
    %33 = arith.cmpi ne, %32, %c0_i32_24 : i32
    scf.if %33 {
      %c1_i32_64 = arith.constant 1 : i32
      %72 = arith.subi %0, %c1_i32_64 : i32
      %c0_65 = arith.constant 0 : index
      %73 = arith.index_cast %72 : i32 to index
      %c0_66 = arith.constant 0 : index
      %c0_67 = arith.constant 0 : index
      %74 = vector.load %arg2[%c0_65, %73, %c0_66, %c0_67] : memref<1x16x16x32xbf16, #tpu.memory_space<vmem>>, vector<1x1x16x32xbf16>
      %75 = vector.shape_cast %74 : vector<1x1x16x32xbf16> to vector<1x16x32xbf16>
      %76 = arith.extf %75 : vector<1x16x32xbf16> to vector<1x16x32xf32>
      %77 = vector.shape_cast %2 : vector<1x32xf32> to vector<1x1x32xf32>
      %78 = vector.broadcast %77 : vector<1x1x32xf32> to vector<1x16x32xf32>
      %79 = arith.mulf %76, %78 : vector<1x16x32xf32>
      %80 = vector.shape_cast %4 : vector<1x32xf32> to vector<1x1x32xf32>
      %81 = vector.broadcast %80 : vector<1x1x32xf32> to vector<1x16x32xf32>
      %82 = arith.addf %79, %81 : vector<1x16x32xf32>
      %83 = arith.negf %82 : vector<1x16x32xf32>
      %84 = math.exp %83 : vector<1x16x32xf32>
      %cst_68 = arith.constant 1.000000e+00 : f32
      %85 = vector.broadcast %cst_68 : f32 to vector<1x16x32xf32>
      %86 = arith.addf %85, %84 : vector<1x16x32xf32>
      %87 = arith.divf %85, %86 : vector<1x16x32xf32>
      %88 = arith.mulf %82, %87 : vector<1x16x32xf32>
      %89 = arith.truncf %88 : vector<1x16x32xf32> to vector<1x16x32xbf16>
      %c0_69 = arith.constant 0 : index
      %c1_70 = arith.constant 1 : index
      %c0_71 = arith.constant 0 : index
      %90 = vector.load %arg9[%c0_69, %c1_70, %c0_71] : memref<10x24x32xbf16, #tpu.memory_space<vmem>>, vector<1x16x32xbf16>
      tpu.vector_store %arg9[%c0_69, %c1_70, %c0_71], %89 {strides = array<i32>} : memref<10x24x32xbf16, #tpu.memory_space<vmem>>, vector<1x16x32xbf16>,
    } else {
    }
    %c1_i32 = arith.constant 1 : i32
    %34 = arith.cmpi slt, %arg1, %c1_i32 : i32
    %35 = arith.extui %34 : i1 to i32
    %c0_i32_25 = arith.constant 0 : i32
    %36 = arith.cmpi ne, %35, %c0_i32_25 : i32
    scf.if %36 {
      %c8_i32_64 = arith.constant 8 : i32
      %72 = arith.addi %0, %c8_i32_64 : i32
      %c0_65 = arith.constant 0 : index
      %73 = arith.index_cast %72 : i32 to index
      %c0_66 = arith.constant 0 : index
      %c0_67 = arith.constant 0 : index
      %74 = vector.load %arg2[%c0_65, %73, %c0_66, %c0_67] : memref<1x16x16x32xbf16, #tpu.memory_space<vmem>>, vector<1x1x16x32xbf16>
      %75 = vector.shape_cast %74 : vector<1x1x16x32xbf16> to vector<1x16x32xbf16>
      %76 = arith.extf %75 : vector<1x16x32xbf16> to vector<1x16x32xf32>
      %77 = vector.shape_cast %2 : vector<1x32xf32> to vector<1x1x32xf32>
      %78 = vector.broadcast %77 : vector<1x1x32xf32> to vector<1x16x32xf32>
      %79 = arith.mulf %76, %78 : vector<1x16x32xf32>
      %80 = vector.shape_cast %4 : vector<1x32xf32> to vector<1x1x32xf32>
      %81 = vector.broadcast %80 : vector<1x1x32xf32> to vector<1x16x32xf32>
      %82 = arith.addf %79, %81 : vector<1x16x32xf32>
      %83 = arith.negf %82 : vector<1x16x32xf32>
      %84 = math.exp %83 : vector<1x16x32xf32>
      %cst_68 = arith.constant 1.000000e+00 : f32
      %85 = vector.broadcast %cst_68 : f32 to vector<1x16x32xf32>
      %86 = arith.addf %85, %84 : vector<1x16x32xf32>
      %87 = arith.divf %85, %86 : vector<1x16x32xf32>
      %88 = arith.mulf %82, %87 : vector<1x16x32xf32>
      %89 = arith.truncf %88 : vector<1x16x32xf32> to vector<1x16x32xbf16>
      %c9_69 = arith.constant 9 : index
      %c1_70 = arith.constant 1 : index
      %c0_71 = arith.constant 0 : index
      %90 = vector.load %arg9[%c9_69, %c1_70, %c0_71] : memref<10x24x32xbf16, #tpu.memory_space<vmem>>, vector<1x16x32xbf16>
      tpu.vector_store %arg9[%c9_69, %c1_70, %c0_71], %89 {strides = array<i32>} : memref<10x24x32xbf16, #tpu.memory_space<vmem>>, vector<1x16x32xbf16>,
    } else {
    }
    %c0_26 = arith.constant 0 : index
    %c0_27 = arith.constant 0 : index
    %c0_28 = arith.constant 0 : index
    %37 = vector.load %arg9[%c0_26, %c0_27, %c0_28] : memref<10x24x32xbf16, #tpu.memory_space<vmem>>, vector<10x16x32xbf16>
    %38 = vector.shape_cast %37 : vector<10x16x32xbf16> to vector<160x32xbf16>
    %c0_29 = arith.constant 0 : index
    %c0_30 = arith.constant 0 : index
    %39 = vector.load %arg10[%c0_29, %c0_30] : memref<160x96xbf16, #tpu.memory_space<vmem>>, vector<160x32xbf16>
    tpu.vector_store %arg10[%c0_29, %c0_30], %38 {strides = array<i32>} : memref<160x96xbf16, #tpu.memory_space<vmem>>, vector<160x32xbf16>,
    %c0_31 = arith.constant 0 : index
    %c1_32 = arith.constant 1 : index
    %c0_33 = arith.constant 0 : index
    %40 = vector.load %arg9[%c0_31, %c1_32, %c0_33] : memref<10x24x32xbf16, #tpu.memory_space<vmem>>, vector<10x16x32xbf16>
    %41 = vector.shape_cast %40 : vector<10x16x32xbf16> to vector<160x32xbf16>
    %c0_34 = arith.constant 0 : index
    %c32 = arith.constant 32 : index
    %42 = vector.load %arg10[%c0_34, %c32] : memref<160x96xbf16, #tpu.memory_space<vmem>>, vector<160x32xbf16>
    tpu.vector_store %arg10[%c0_34, %c32], %41 {strides = array<i32>} : memref<160x96xbf16, #tpu.memory_space<vmem>>, vector<160x32xbf16>,
    %c0_35 = arith.constant 0 : index
    %c2 = arith.constant 2 : index
    %c0_36 = arith.constant 0 : index
    %43 = vector.load %arg9[%c0_35, %c2, %c0_36] : memref<10x24x32xbf16, #tpu.memory_space<vmem>>, vector<10x16x32xbf16>
    %44 = vector.shape_cast %43 : vector<10x16x32xbf16> to vector<160x32xbf16>
    %c0_37 = arith.constant 0 : index
    %c64 = arith.constant 64 : index
    %45 = vector.load %arg10[%c0_37, %c64] : memref<160x96xbf16, #tpu.memory_space<vmem>>, vector<160x32xbf16>
    tpu.vector_store %arg10[%c0_37, %c64], %44 {strides = array<i32>} : memref<160x96xbf16, #tpu.memory_space<vmem>>, vector<160x32xbf16>,
    %c0_38 = arith.constant 0 : index
    %c0_39 = arith.constant 0 : index
    %46 = vector.load %arg10[%c0_38, %c0_39] : memref<160x96xbf16, #tpu.memory_space<vmem>>, vector<128x96xbf16>
    %c0_40 = arith.constant 0 : index
    %c0_41 = arith.constant 0 : index
    %c0_42 = arith.constant 0 : index
    %47 = vector.load %arg5[%c0_40, %c0_41, %c0_42] : memref<3x96x64xbf16, #tpu.memory_space<vmem>>, vector<1x96x64xbf16>
    %48 = vector.shape_cast %47 : vector<1x96x64xbf16> to vector<96x64xbf16>
    %cst_43 = arith.constant dense<0.000000e+00> : vector<128x64xf32>
    %49 = tpu.matmul %46, %48, %cst_43 {dimension_numbers = #tpu.dot_dimension_numbers<[1], [0], [0], [1], [0, 0, 1, 1], [], []>} : vector<128x96xbf16>, vector<96x64xbf16>, vector<128x64xf32> -> vector<128x64xf32>
    %c16 = arith.constant 16 : index
    %c0_44 = arith.constant 0 : index
    %50 = vector.load %arg10[%c16, %c0_44] : memref<160x96xbf16, #tpu.memory_space<vmem>>, vector<128x96xbf16>
    %c1_45 = arith.constant 1 : index
    %c0_46 = arith.constant 0 : index
    %c0_47 = arith.constant 0 : index
    %51 = vector.load %arg5[%c1_45, %c0_46, %c0_47] : memref<3x96x64xbf16, #tpu.memory_space<vmem>>, vector<1x96x64xbf16>
    %52 = vector.shape_cast %51 : vector<1x96x64xbf16> to vector<96x64xbf16>
    %cst_48 = arith.constant dense<0.000000e+00> : vector<128x64xf32>
    %53 = tpu.matmul %50, %52, %cst_48 {dimension_numbers = #tpu.dot_dimension_numbers<[1], [0], [0], [1], [0, 0, 1, 1], [], []>} : vector<128x96xbf16>, vector<96x64xbf16>, vector<128x64xf32> -> vector<128x64xf32>
    %54 = arith.addf %49, %53 : vector<128x64xf32>
    %c32_49 = arith.constant 32 : index
    %c0_50 = arith.constant 0 : index
    %55 = vector.load %arg10[%c32_49, %c0_50] : memref<160x96xbf16, #tpu.memory_space<vmem>>, vector<128x96xbf16>
    %c2_51 = arith.constant 2 : index
    %c0_52 = arith.constant 0 : index
    %c0_53 = arith.constant 0 : index
    %56 = vector.load %arg5[%c2_51, %c0_52, %c0_53] : memref<3x96x64xbf16, #tpu.memory_space<vmem>>, vector<1x96x64xbf16>
    %57 = vector.shape_cast %56 : vector<1x96x64xbf16> to vector<96x64xbf16>
    %cst_54 = arith.constant dense<0.000000e+00> : vector<128x64xf32>
    %58 = tpu.matmul %55, %57, %cst_54 {dimension_numbers = #tpu.dot_dimension_numbers<[1], [0], [0], [1], [0, 0, 1, 1], [], []>} : vector<128x96xbf16>, vector<96x64xbf16>, vector<128x64xf32> -> vector<128x64xf32>
    %59 = arith.addf %54, %58 : vector<128x64xf32>
    %c0_55 = arith.constant 0 : index
    %c0_56 = arith.constant 0 : index
    %60 = vector.load %arg6[%c0_55, %c0_56] : memref<1x64xf32, #tpu.memory_space<vmem>>, vector<1x64xf32>
    %61 = vector.broadcast %60 : vector<1x64xf32> to vector<128x64xf32>
    %62 = arith.addf %59, %61 : vector<128x64xf32>
    %c0_57 = arith.constant 0 : index
    %c0_58 = arith.constant 0 : index
    %c0_59 = arith.constant 0 : index
    %63 = vector.load %arg7[%c0_57, %c0_58, %c0_59] : memref<1x1x64xf32, #tpu.memory_space<vmem>>, vector<1x1x64xf32>
    %64 = vector.shape_cast %63 : vector<1x1x64xf32> to vector<1x64xf32>
    %65 = vector.broadcast %64 : vector<1x64xf32> to vector<128x64xf32>
    %66 = arith.addf %62, %65 : vector<128x64xf32>
    %67 = vector.shape_cast %66 : vector<128x64xf32> to vector<8x16x64xf32>
    %68 = arith.truncf %67 : vector<8x16x64xf32> to vector<8x16x64xbf16>
    %c0_60 = arith.constant 0 : index
    %c0_61 = arith.constant 0 : index
    %c0_62 = arith.constant 0 : index
    %c0_63 = arith.constant 0 : index
    %69 = vector.load %arg8[%c0_60, %c0_61, %c0_62, %c0_63] : memref<1x8x16x64xbf16, #tpu.memory_space<vmem>>, vector<1x8x16x64xbf16>
    %70 = vector.shape_cast %69 : vector<1x8x16x64xbf16> to vector<8x16x64xbf16>
    %71 = vector.shape_cast %68 : vector<8x16x64xbf16> to vector<1x8x16x64xbf16>
    tpu.vector_store %arg8[%c0_60, %c0_61, %c0_62, %c0_63], %71 {strides = array<i32>} : memref<1x8x16x64xbf16, #tpu.memory_space<vmem>>, vector<1x8x16x64xbf16>,
    return
  }
  func.func @transform_0(%arg0: i32, %arg1: i32) -> (i32, i32, i32, i32) {
    %c0_i32 = arith.constant 0 : i32
    %c0_i32_0 = arith.constant 0 : i32
    %c0_i32_1 = arith.constant 0 : i32
    %c0_i32_2 = arith.constant 0 : i32
    return %arg0, %c0_i32, %c0_i32_0, %c0_i32_1 : i32, i32, i32, i32
  }
  func.func @transform_1(%arg0: i32, %arg1: i32) -> (i32, i32, i32) {
    %c0_i32 = arith.constant 0 : i32
    %c0_i32_0 = arith.constant 0 : i32
    %c0_i32_1 = arith.constant 0 : i32
    return %arg0, %c0_i32, %c0_i32_0 : i32, i32, i32
  }
  func.func @transform_2(%arg0: i32, %arg1: i32) -> (i32, i32, i32) {
    %c0_i32 = arith.constant 0 : i32
    %c0_i32_0 = arith.constant 0 : i32
    %c0_i32_1 = arith.constant 0 : i32
    return %arg0, %c0_i32, %c0_i32_0 : i32, i32, i32
  }
  func.func @transform_3(%arg0: i32, %arg1: i32) -> (i32, i32, i32) {
    %c0_i32 = arith.constant 0 : i32
    %c0_i32_0 = arith.constant 0 : i32
    %c0_i32_1 = arith.constant 0 : i32
    %c0_i32_2 = arith.constant 0 : i32
    return %c0_i32, %c0_i32_0, %c0_i32_1 : i32, i32, i32
  }
  func.func @transform_4(%arg0: i32, %arg1: i32) -> (i32, i32) {
    %c0_i32 = arith.constant 0 : i32
    %c0_i32_0 = arith.constant 0 : i32
    %c0_i32_1 = arith.constant 0 : i32
    return %c0_i32, %c0_i32_0 : i32, i32
  }
  func.func @transform_5(%arg0: i32, %arg1: i32) -> (i32, i32, i32) {
    %c0_i32 = arith.constant 0 : i32
    %c0_i32_0 = arith.constant 0 : i32
    %c0_i32_1 = arith.constant 0 : i32
    return %arg0, %c0_i32, %c0_i32_0 : i32, i32, i32
  }
  func.func @transform_6(%arg0: i32, %arg1: i32) -> (i32, i32, i32, i32) {
    %c0_i32 = arith.constant 0 : i32
    %c0_i32_0 = arith.constant 0 : i32
    %c0_i32_1 = arith.constant 0 : i32
    return %arg0, %arg1, %c0_i32, %c0_i32_0 : i32, i32, i32, i32
  }
}

</mosaic_0001>

<bundles_post_ra>
// kernel: tpu_custom_call.1
= control target key start
LH: loop header
LB: loop body
LE: loop exit
PB: predicated region body
PF: predicated region fallthrough
CT: control target
= control target key end

     0   :  { %11 = vsyncpa [#allocation5], 0  ;;  %s4160_s0 = inlined_call_operand.hbm [shape: bf16[2,16,16,32], index: 0, kind: input, shape index: {}]   ;;  %s4161_s1 = inlined_call_operand.vmem [shape: f32[2,1,32], index: 1, kind: input, shape index: {}]   ;;  %s4162_s2 = inlined_call_operand.vmem [shape: f32[2,1,32], index: 2, kind: input, shape index: {}]   ;;  %s4163_s3 = inlined_call_operand.vmem [shape: bf16[3,96,64], index: 3, kind: input, shape index: {}]   ;;  %s4164_s4 = inlined_call_operand.vmem [shape: f32[1,64], index: 4, kind: input, shape index: {}]   ;;  %s4165_s5 = inlined_call_operand.vmem [shape: f32[2,1,64], index: 5, kind: input, shape index: {}]   ;;  %s4166_s6 = inlined_call_operand.hbm [shape: bf16[2,16,16,64], index: 6, kind: output, shape index: {}]  }
   0x1   :  { %13 = vsyncpa [#allocation5 + $0x1], 0 }
   0x2   :  { %14 = vsyncpa [#allocation6], 0 }
   0x3   :  { %16 = vsyncpa [#allocation6 + $0x1], 0  ;;  %s3292_s21 = smov 0   ;;  %s3294_s22 = smov 0  }
   0x4   :  { %s3296_s23 = smov 0   ;;  %s3298_s24 = smov 0  }
   0x5   :  { %s3300_s25 = smov 0   ;;  %s3302_s26 = smov 0  }
   0x6   :  { %s3304_s27 = smov 0   ;;  %s3306_s28 = smov 0  }
   0x7   :  { %s3308_s29 = smov 0   ;;  %s3310_s30 = smov 0  }
   0x8   :  { %s3312_s7 = smov 0  }
   0x9 LB: > { %4173 = sst [smem:[#allocation10_spill]] %s3239_s29  ;;  %s2424_s8 = sadd.s32 4294967295, %s3247_s7   ;;  %s3247_s7 = sphi %s3312_s7, %s22_s7   ;;  %s3243_s30 = sphi %s3310_s30, %s4200_s30   ;;  %s3239_s29 = sphi %s3308_s29, %s4199_s29   ;;  %s3235_s28 = sphi %s3306_s28, %s4198_s28   ;;  %s3231_s27 = sphi %s3304_s27, %s4197_s27   ;;  %s3227_s26 = sphi %s3302_s26, %s4206_s26   ;;  %s3223_s25 = sphi %s3300_s25, %s4205_s25   ;;  %s3219_s24 = sphi %s3298_s24, %s4204_s24   ;;  %s3215_s23 = sphi %s3296_s23, %s4203_s23   ;;  %s3211_s22 = sphi %s3294_s22, %s4202_s22   ;;  %s3207_s21 = sphi %s3292_s21, %s4201_s21  }
   0xa   : > { %4174 = sst [smem:[#allocation11_spill]] %s3243_s30  ;;  %s2425_s9 = sadd.s32 4294967294, %s3247_s7  }
   0xb   : > { %s31_s10 = sadd.s32 1, %s3239_s29  ;;  %s34_s11 = sadd.s32 1, %s3243_s30 }
   0xc   : > { %p32_p0 = scmp.ge.s32.totalorder %s31_s10, 2  ;;  %s41_s12 = sadd.s32 1, %s3227_s26 }
   0xd   : > { %p48_p1 = scmp.ne.s32.totalorder %s3227_s26, %s3223_s25  ;;  %p49_p2 = scmp.eq.s32.totalorder %s3247_s7, 0 }
   0xe   : > { %s4208_s10 = smov (%p32_p0, %s31_s10), 0  ;;  %s4210_s11 = smov (!%p32_p0, %s34_s11), %s3243_s30 }
   0xf   : > { %4175 = sst [smem:[#allocation12_spill]] %s4208_s10  ;;  %p3356_p3 = por %p49_p2, %p48_p1 }
  0x10   : > { %p54_p4 = scmp.ne.s32.totalorder %s3223_s25, %s3219_s24  ;;  %p36_p5 = scmp.ge.s32.totalorder %s4210_s11, 2 }
  0x11   : > { %p55_p6 = scmp.eq.s32.totalorder %s2424_s8, 0  ;;  %s185_s14 = ssub.s32 %s3239_s29, %s4208_s10 }
  0x12   : > { %s189_s15 = sadd.s32 1, %s3215_s23  ;;  %s4212_s11 = smov (%p36_p5, %s4210_s11), 0 }
  0x13   : > { %4177 = sst [smem:[#allocation13_spill]] %s4212_s11  ;;  %p3366_p7 = por %p55_p6, %p54_p4 }
  0x14   : > { %p199_p8 = scmp.ne.s32.totalorder %s3215_s23, %s3211_s22  ;;  %s38_s17 = ssub.s32 %s3243_s30, %s4212_s11 }
  0x15   : > { %p200_p9 = scmp.eq.s32.totalorder %s2424_s8, 3  ;;  %p39_p10 = scmp.eq.s32.totalorder %s38_s17, 0 }
  0x16   : > { %s186_s18 = sor.u32 %s185_s14, %s38_s17  ;;  %p205_p13 = scmp.ne.s32.totalorder %s3211_s22, %s3207_s21 }
  0x17   : > { %p187_p11 = scmp.eq.s32.totalorder %s186_s18, 0  ;;  %p3374_p12 = por %p200_p9, %p199_p8 }
  0x18   : > { %s3379_s20 = scalar_select %p39_p10, %s3227_s26, %s41_s12  }
  0x19   : > { %s4179_s19 = scalar_select %p3374_p12, 1, 0 }
  0x1a   : > { %s3382_s24 = scalar_select %p187_p11, %s3215_s23, %s189_s15  }
  0x1b   : > { %p206_p0 = scmp.eq.s32.totalorder %s2425_s9, 3  ;;  %p2891_p1 = scmp.lt.s32.totalorder %s3247_s7, 4 }
  0x1c   : > { %s232_s8 = sand.u32 1, %s3227_s26   ;;  %s2619_s17 = sshll.u32 %s3243_s30, 11 }
  0x1d   : > { %p3387_p2 = por %p206_p0, %p205_p13  ;;  %s2428_s14 = sshll.u32 %s232_s8, 7 }
  0x1e   : > { %s3396_s29 = scalar_lea.hbm %s4160_s0, %s2619_s17  ;;  %s236_s12 = scalar_lea.vmem [#allocation4], %s2428_s14 }
  0x1f   : > { %s4180_s10 = scalar_select %p3387_p2, 1, 0 }
  0x20   : > { %s243_s15 = sshll.u32 %s236_s12, 4  ;;  %p3402_p4 = pnand %p2891_p1, %p3356_p3  ;;  %s3398_s15 = int_to_ptr.vmem [resolvable:$true] %s243_s15 }
  0x21   : > { %s3407_s30 = scalar_lea.sflag [#allocation5], %s232_s8  ;;  %s3095_s11 = scalar_lea.hbm %s3396_s29, 2048 }
  0x22   : > { %p3096_p6 = scmp.ne.s32.totalorder %s3396_s29, %s3095_s11  ;;  %p3097_p8 = pneg %p3402_p4 }
  0x23   : > { %s3100_s13 = scalar_lea.hbm %s4160_s0, 4096  ;;  %p3101_p3 = scmp.lt.u32.totalorder %s3396_s29, %s4160_s0 }
  0x24   : > { %p3098_p9 = pnand %p3097_p8, %p3096_p6  ;;  %p3102_p11 = scmp.lt.u32.totalorder %s3100_s13, %s3095_s11 }
  0x25   : > { %p3104_p0 = scmp.lt.u32.totalorder %s3095_s11, %s3396_s29 }
  0x26   : > { %p3099_p10 = pneg %p3098_p9  ;;  %p3103_p13 = por %p3102_p11, %p3101_p3 }
  0x28   : > { %p3105_p1 = por %p3104_p0, %p3103_p13 }
  0x2a   : > { %p3106_p5 = pnand %p3105_p1, %p3099_p10 }
  0x2c   : > { %3109 = shalt.err (!%p3106_p5)
}
  0x2d   : > { %s3110_s8 = scalar_lea.vmem %s3398_s15, 2048  ;;  %s3249_s14 = smov [#allocation4]  }
  0x2e   : > { %p3111_p6 = scmp.ne.s32.totalorder %s3398_s15, %s3110_s8  ;;  %s3115_s17 = sshll.u32 %s3249_s14, 4  ;;  %s3116_s17 = int_to_ptr.vmem [resolvable:$false] %s3115_s17 }
  0x2f   : > { %s3117_s18 = scalar_lea.vmem %s3116_s17, 4096  ;;  %p3118_p12 = scmp.lt.s32.totalorder %s3398_s15, %s3116_s17 }
  0x30   : > { %p3113_p9 = pnand %p3111_p6, %p3097_p8  ;;  %p3119_p3 = scmp.lt.s32.totalorder %s3117_s18, %s3110_s8 }
  0x32   : > { %p3114_p2 = pneg %p3113_p9  ;;  %p3120_p11 = por %p3119_p3, %p3118_p12 }
  0x34   : > { %p3121_p13 = pnand %p3120_p11, %p3114_p2 }
  0x36   : > { %3124 = shalt.err (!%p3121_p13)
}
  0x37   : > { %s3250_s11 = smov 64   ;;  %s3251_s13 = smov 4  }
  0x38   : > { %2886 = dma.hbm_to_vmem [thread:$0]  (!%p3402_p4), %s3396_s29, 2048, %s3398_s15, %s3407_s30, %s3250_s11, %s3250_s11, %s3251_s13  }
  0x39   : > { %p269_p5 = scmp.lt.s32.totalorder %s3247_s7, 5  ;;  %p4182_p8 = scmp.ge.s32.totalorder %s3247_s7, 1 }
  0x3b   : > { %p270_p10 = pnand %p4182_p8, %p269_p5 }
  0x3c   : > { %s275_s12 = sand.u32 (!%p270_p10), 1, %s3223_s25  }
  0x3d   : > { %273 = sbr.rel (%p270_p10) target bundleno = 698 (0x2ba), region = 44  ;;  %s3439_s8 = sshll.u32 (!%p270_p10), %s275_s12, 7 }
  0x3e   : > { %s276_s14 = scalar_lea.sflag (!%p270_p10), [#allocation5], %s275_s12  ;;  %s279_s17 = scalar_lea.vmem (!%p270_p10), [#allocation4], %s3439_s8 }
  0x44   : > { %3198 = dma.done.wait (%p3366_p7), %s276_s14, 2048  }
  0x45   : > { %3200 = vsyncadd (%p3366_p7), %s276_s14, 4294965248  ;;  %s4172_s29 = sand.u32 1, %s3211_s22   ;;  %s2434_s30 = sshll.u32 %s3231_s27, 3  ;;  %vm364_vm0 = vcmask 257024   ;;  %vm331_vm1 = vcmask 253952   ;;  %v3252_v0 = vmov 0  }
  0x46   : > { %s3450_s15 = sshll.u32 %s4172_s29, 6  ;;  %p317_p12 = scmp.lt.s32.totalorder %s3235_s28, 1  ;;  %vm332_vm2 = vsmask.f32 256  ;;  %401 = vst.msk [vmem:[#allocation2 + $0x4] sm:$0xf] %vm364_vm0, %v3252_v0 }
  0x47   : > { %409 = vst.msk [vmem:[#allocation2 + $0x70] sm:$0xf] %vm364_vm0, %v3252_v0  ;;  %s2621_s16 = sshll.u32 %s3231_s27, 6  ;;  %vm3460_vm3 = vmand %vm331_vm1, %vm332_vm2  ;;  %vm365_vm4 = vsmask.f32 7938  ;;  %s3725_s29 = scalar_lea.vmem [#allocation7], %s3450_s15 }
  0x48   : > { %s3457_s9 = scalar_select %p317_p12, %s3235_s28, 1  ;;  %v334_v2 = vld [vmem:[#allocation2] sm:$0x1]  ;;  %v337_v3 = vld [vmem:[#allocation2 + $0xc] sm:$0x1]  ;;  %vm3492_vm5 = vmand %vm364_vm0, %vm365_vm4 }
  0x49   : > { %s3466_s18 = scalar_lea.vmem %s279_s17, %s2621_s16 [#allocation4]  ;;  %v340_v4 = vld [vmem:[#allocation2 + $0x18] sm:$0x1]  ;;  %v335_v5 = vsel %vm3460_vm3, 0, %v334_v2  ;;  %v338_v6 = vsel %vm3460_vm3, 0, %v337_v3  ;;  %v343_v8 = vld [vmem:[#allocation2 + $0x24] sm:$0x1] }
  0x4a   : > { %v341_v7 = vsel %vm3460_vm3, 0, %v340_v4  ;;  %v3479_v9 = vld [vmem:[%s3466_s18] sm:$0xff]   ;;  %336 = vst [vmem:[#allocation2] sm:$0x1] %v335_v5  ;;  %339 = vst [vmem:[#allocation2 + $0xc] sm:$0x1] %v338_v6  ;;  %s319_s11 = scalar_lea.vmem %s4161_s1, %s3457_s9  ;;  %s322_s12 = scalar_lea.vmem %s4162_s2, %s3457_s9 }
  0x4b   : > { %342 = vst [vmem:[#allocation2 + $0x18] sm:$0x1] %v341_v7  ;;  %v344_v10 = vsel %vm3460_vm3, 0, %v343_v8  ;;  %v346_v11 = vld [vmem:[#allocation2 + $0x30] sm:$0x1]  ;;  %v3484_v13 = vld [vmem:[%s3466_s18 + $0x8] sm:$0xff]   ;;  %v2663_v31 = vunpack.c.l.bf16 %v3479_v9  ;;  %v2664_v36 = vunpack.c.h.bf16 %v3479_v9 }
  0x4c   : > { %v349_v12 = vld [vmem:[#allocation2 + $0x3c] sm:$0x1]  ;;  %345 = vst [vmem:[#allocation2 + $0x24] sm:$0x1] %v344_v10  ;;  %v347_v14 = vsel %vm3460_vm3, 0, %v346_v11  ;;  %v2667_v37 = vunpack.c.l.bf16 %v3484_v13  ;;  %v2668_v42 = vunpack.c.h.bf16 %v3484_v13  ;;  %v2702_v56 = vld [vmem:[%s3466_s18 + $0x10] sm:$0xff]  }
  0x4d   : > { %v350_v15 = vsel %vm3460_vm3, 0, %v349_v12  ;;  %v352_v16 = vld [vmem:[#allocation2 + $0x48] sm:$0x1]  ;;  %v355_v17 = vld [vmem:[#allocation2 + $0x54] sm:$0x1]  ;;  %v2671_v58 = vunpack.c.l.bf16 %v2702_v56  ;;  %v2672_v59 = vunpack.c.h.bf16 %v2702_v56  ;;  %v2703_v60 = vld [vmem:[%s3466_s18 + $0x18] sm:$0xff]  }
  0x4e   : > { %348 = vst [vmem:[#allocation2 + $0x30] sm:$0x1] %v347_v14  ;;  %351 = vst [vmem:[#allocation2 + $0x3c] sm:$0x1] %v350_v15  ;;  %v353_v19 = vsel %vm3460_vm3, 0, %v352_v16  ;;  %v356_v20 = vsel %vm3460_vm3, 0, %v355_v17  ;;  %v2675_v2 = vunpack.c.l.bf16 %v2703_v60 }
  0x4f   : > { %v358_v21 = vld [vmem:[#allocation2 + $0x60] sm:$0x1]  ;;  %v361_v22 = vld [vmem:[#allocation2 + $0x6c] sm:$0x1]  ;;  %354 = vst [vmem:[#allocation2 + $0x48] sm:$0x1] %v353_v19  ;;  %v2676_v19 = vunpack.c.h.bf16 %v2703_v60 }
  0x50   : > { %357 = vst [vmem:[#allocation2 + $0x54] sm:$0x1] %v356_v20  ;;  %v359_v23 = vsel %vm3460_vm3, 0, %v358_v21  ;;  %v362_v24 = vsel %vm3460_vm3, 0, %v361_v22  ;;  %v367_v25 = vld [vmem:[#allocation2 + $0x8] sm:$0xf] }
  0x51   : > { %v370_v26 = vld [vmem:[#allocation2 + $0x14] sm:$0xf]  ;;  %360 = vst [vmem:[#allocation2 + $0x60] sm:$0x1] %v359_v23  ;;  %363 = vst [vmem:[#allocation2 + $0x6c] sm:$0x1] %v362_v24 }
  0x52   : > { %v368_v27 = vsel %vm3492_vm5, 0, %v367_v25  ;;  %v371_v28 = vsel %vm3492_vm5, 0, %v370_v26  ;;  %v373_v29 = vld [vmem:[#allocation2 + $0x20] sm:$0xf]  ;;  %v376_v30 = vld [vmem:[#allocation2 + $0x2c] sm:$0xf] }
  0x53   : > { %369 = vst [vmem:[#allocation2 + $0x8] sm:$0xf] %v368_v27  ;;  %372 = vst [vmem:[#allocation2 + $0x14] sm:$0xf] %v371_v28  ;;  %v374_v32 = vsel %vm3492_vm5, 0, %v373_v29  ;;  %v377_v33 = vsel %vm3492_vm5, 0, %v376_v30 }
  0x54   : > { %v379_v34 = vld [vmem:[#allocation2 + $0x38] sm:$0xf]  ;;  %v382_v35 = vld [vmem:[#allocation2 + $0x44] sm:$0xf]  ;;  %375 = vst [vmem:[#allocation2 + $0x20] sm:$0xf] %v374_v32 }
  0x55   : > { %378 = vst [vmem:[#allocation2 + $0x2c] sm:$0xf] %v377_v33  ;;  %v380_v38 = vsel %vm3492_vm5, 0, %v379_v34  ;;  %v383_v39 = vsel %vm3492_vm5, 0, %v382_v35  ;;  %v385_v40 = vld [vmem:[#allocation2 + $0x50] sm:$0xf] }
  0x56   : > { %v388_v41 = vld [vmem:[#allocation2 + $0x5c] sm:$0xf]  ;;  %381 = vst [vmem:[#allocation2 + $0x38] sm:$0xf] %v380_v38  ;;  %384 = vst [vmem:[#allocation2 + $0x44] sm:$0xf] %v383_v39 }
  0x57   : > { %v386_v43 = vsel %vm3492_vm5, 0, %v385_v40  ;;  %v389_v44 = vsel %vm3492_vm5, 0, %v388_v41  ;;  %v391_v45 = vld [vmem:[#allocation2 + $0x68] sm:$0xf]  ;;  %v394_v46 = vld [vmem:[#allocation2 + $0x74] sm:$0xf] }
  0x58   : > { %387 = vst [vmem:[#allocation2 + $0x50] sm:$0xf] %v386_v43  ;;  %390 = vst [vmem:[#allocation2 + $0x5c] sm:$0xf] %v389_v44  ;;  %v392_v47 = vsel %vm3492_vm5, 0, %v391_v45  ;;  %v395_v48 = vsel %vm3492_vm5, 0, %v394_v46 }
  0x59   : > { %v397_v49 = vld [vmem:[#allocation2] sm:$0xf]  ;;  %393 = vst [vmem:[#allocation2 + $0x68] sm:$0xf] %v392_v47  ;;  %396 = vst [vmem:[#allocation2 + $0x74] sm:$0xf] %v395_v48 }
  0x5a   : > { %v3536_v50 = vld [vmem:[%s319_s11] ss:$0 sm:$0xff]  ;;  %v398_v51 = vsel %vm3492_vm5, 0, %v397_v49  ;;  %v406_v61 = vld [vmem:[#allocation2 + $0x6c] sm:$0xf]  ;;  %v2706_v22 = vld [vmem:[%s3466_s18 + $0x30] sm:$0xff]  }
  0x5b   : > { %v3540_v52 = vld [vmem:[%s322_s12] ss:$0 sm:$0xff]  ;;  %v454_v53 = vmul.f32 %v2663_v31, %v3536_v50  ;;  %v455_v54 = vmul.f32 %v2664_v36, %v3536_v50  ;;  %v456_v55 = vmul.f32 %v2667_v37, %v3536_v50  ;;  %399 = vst [vmem:[#allocation2] sm:$0xf] %v398_v51  ;;  %v457_v57 = vmul.f32 %v2668_v42, %v3536_v50  ;;  %v402_v3 = vld [vmem:[#allocation2 + $0x8] sm:$0x1] }
  0x5c   : > { %v407_v4 = vsel %vm3492_vm5, 0, %v406_v61  ;;  %v458_v6 = vmul.f32 %v2671_v58, %v3536_v50  ;;  %v459_v7 = vmul.f32 %v2672_v59, %v3536_v50  ;;  %v2704_v8 = vld [vmem:[%s3466_s18 + $0x20] sm:$0xff]   ;;  %v403_v9 = vsel %vm3460_vm3, 0, %v402_v3  ;;  %v2705_v21 = vld [vmem:[%s3466_s18 + $0x28] sm:$0xff]   ;;  %v2707_v46 = vld [vmem:[%s3466_s18 + $0x38] sm:$0xff]   ;;  %p2471_p7 = scmp.le.s32.totalorder %s3231_s27, 0 }
  0x5d   : > { %v3549_v62 = vadd.f32 %v3540_v52, %v454_v53  ;;  %v3552_v63 = vadd.f32 %v3540_v52, %v455_v54  ;;  %v3555_v0 = vadd.f32 %v3540_v52, %v456_v55  ;;  %v3560_v5 = vadd.f32 %v3540_v52, %v457_v57  ;;  %408 = vst [vmem:[#allocation2 + $0x6c] sm:$0xf] %v407_v4  ;;  %s2472_s12 = sadd.s32 (!%p2471_p7), 4294967295, %s2434_s30 }
  0x5e   : > { %v460_v12 = vmul.f32 %v2675_v2, %v3536_v50  ;;  %404 = vst [vmem:[#allocation2 + $0x8] sm:$0x1] %v403_v9  ;;  %v3573_v15 = vadd.f32 %v3540_v52, %v458_v6  ;;  %v3576_v16 = vadd.f32 %v3540_v52, %v459_v7  ;;  %v2679_v20 = vunpack.c.l.bf16 %v2704_v8  ;;  %s2638_s14 = sshll.u32 (!%p2471_p7), %s2472_s12, 3 }
  0x5f   : > { %v2439_v10 = vmul.f32 -1.442695, %v3549_v62  ;;  %v2440_v11 = vmul.f32 -1.442695, %v3552_v63  ;;  %v2441_v13 = vmul.f32 -1.442695, %v3555_v0  ;;  %v2680_v26 = vunpack.c.h.bf16 %v2704_v8  ;;  %s878_s16 = scalar_lea.vmem (!%p2471_p7), %s279_s17, %s2638_s14 [#allocation4] }
  0x60   : > { %v2442_v14 = vmul.f32 -1.442695, %v3560_v5  ;;  %v3579_v17 = vadd.f32 %v3540_v52, %v460_v12  ;;  %v410_v23 = vld [vmem:[#allocation2 + $0x74] sm:$0x1]  ;;  %v2443_v24 = vmul.f32 -1.442695, %v3573_v15  ;;  %v461_v29 = vmul.f32 %v2676_v19, %v3536_v50 }
  0x61   : > { %2987 = vpow2.f32 %v2439_v10  ;;  %v2444_v25 = vmul.f32 -1.442695, %v3576_v16  ;;  %v411_v27 = vsel %vm3460_vm3, 0, %v410_v23  ;;  %v462_v30 = vmul.f32 %v2679_v20, %v3536_v50 }
  0x62   : > { %2989 = vpow2.f32 %v2440_v11  ;;  %v2445_v28 = vmul.f32 -1.442695, %v3579_v17  ;;  %412 = vst [vmem:[#allocation2 + $0x74] sm:$0x1] %v411_v27  ;;  %v463_v31 = vmul.f32 %v2680_v26, %v3536_v50  ;;  %v2683_v32 = vunpack.c.l.bf16 %v2705_v21 }
  0x63   : > { %2991 = vpow2.f32 %v2441_v13  ;;  %v3592_v33 = vadd.f32 %v3540_v52, %v461_v29  ;;  %v2684_v34 = vunpack.c.h.bf16 %v2705_v21  ;;  %v2687_v35 = vunpack.c.l.bf16 %v2706_v22 }
  0x64   : > { %2993 = vpow2.f32 %v2442_v14  ;;  %v3595_v36 = vadd.f32 %v3540_v52, %v462_v30  ;;  %v3598_v37 = vadd.f32 %v3540_v52, %v463_v31  ;;  %v464_v38 = vmul.f32 %v2683_v32, %v3536_v50 }
  0x65   : > { %2995 = vpow2.f32 %v2443_v24  ;;  %v2446_v39 = vmul.f32 -1.442695, %v3592_v33  ;;  %v465_v40 = vmul.f32 %v2684_v34, %v3536_v50  ;;  %v466_v45 = vmul.f32 %v2687_v35, %v3536_v50 }
  0x66   : > { %2997 = vpow2.f32 %v2444_v25  ;;  %v2447_v41 = vmul.f32 -1.442695, %v3595_v36  ;;  %v2448_v42 = vmul.f32 -1.442695, %v3598_v37  ;;  %v3606_v43 = vadd.f32 %v3540_v52, %v464_v38 }
  0x67   : > { %2999 = vpow2.f32 %v2445_v28  ;;  %v3609_v44 = vadd.f32 %v3540_v52, %v465_v40  ;;  %v2688_v51 = vunpack.c.h.bf16 %v2706_v22  ;;  %v2691_v55 = vunpack.c.l.bf16 %v2707_v46 }
  0x68   : > { %3001 = vpow2.f32 %v2446_v39  ;;  %v2449_v47 = vmul.f32 -1.442695, %v3606_v43  ;;  %v3616_v58 = vadd.f32 %v3540_v52, %v466_v45  ;;  %v2692_v8 = vunpack.c.h.bf16 %v2707_v46 }
  0x69   : > { %3003 = vpow2.f32 %v2447_v41  ;;  %v2450_v49 = vmul.f32 -1.442695, %v3609_v44  ;;  %v467_v3 = vmul.f32 %v2688_v51, %v3536_v50  ;;  %v468_v7 = vmul.f32 %v2691_v55, %v3536_v50 }
  0x6a   : > { %3005 = vpow2.f32 %v2448_v42  ;;  %v2451_v11 = vmul.f32 -1.442695, %v3616_v58  ;;  %v469_v22 = vmul.f32 %v2692_v8, %v3536_v50  ;;  %vm652_vm6 = vsmask.f32 4368 }
  0x6b   : > { %v2988_v48 = vpop.eup %2987  ;;  %3007 = vpow2.f32 %v2449_v47  ;;  %v3622_v14 = vadd.f32 %v3540_v52, %v467_v3  ;;  %v3625_v21 = vadd.f32 %v3540_v52, %v468_v7  ;;  %vm3646_vm7 = vmor %vm332_vm2, %vm652_vm6 }
  0x6c   : > { %v2990_v53 = vpop.eup %2989  ;;  %v540_v54 = vadd.f32 1.0, %v2988_v48  ;;  %3009 = vpow2.f32 %v2450_v49  ;;  %v3631_v34 = vadd.f32 %v3540_v52, %v469_v22 }
  0x6d   : > { %v2992_v56 = vpop.eup %2991  ;;  %v541_v57 = vadd.f32 1.0, %v2990_v53  ;;  %v2452_v29 = vmul.f32 -1.442695, %v3622_v14  ;;  %v2453_v32 = vmul.f32 -1.442695, %v3625_v21 }
  0x6e   : > { %v2994_v59 = vpop.eup %2993  ;;  %3011 = vrcp.f32 %v540_v54  ;;  %v542_v60 = vadd.f32 1.0, %v2992_v56  ;;  %v3638_v49 = vmul.f32 -1.442695, %v3631_v34 }
  0x6f   : > { %v2996_v61 = vpop.eup %2995  ;;  %3013 = vrcp.f32 %v541_v57  ;;  %v543_v2 = vadd.f32 1.0, %v2994_v59 }
  0x70   : > { %v2998_v4 = vpop.eup %2997  ;;  %3015 = vrcp.f32 %v542_v60  ;;  %v544_v6 = vadd.f32 1.0, %v2996_v61 }
  0x71   : > { %v3000_v9 = vpop.eup %2999  ;;  %3017 = vrcp.f32 %v543_v2  ;;  %v545_v10 = vadd.f32 1.0, %v2998_v4 }
  0x72   : > { %3019 = vrcp.f32 %v544_v6  ;;  %v546_v12 = vadd.f32 1.0, %v3000_v9  ;;  %v3002_v13 = vpop.eup %3001  ;;  %v815_v6 = vld [vmem:[#allocation2 + $0xc] sm:$0xf] }
  0x73   : > { %3021 = vrcp.f32 %v545_v10  ;;  %v3004_v19 = vpop.eup %3003  ;;  %v547_v20 = vadd.f32 1.0, %v3002_v13  ;;  %v819_v13 = vld [vmem:[#allocation2 + $0x14] sm:$0x1] }
  0x74   : > { %3023 = vrcp.f32 %v546_v12  ;;  %v3006_v23 = vpop.eup %3005  ;;  %v548_v24 = vadd.f32 1.0, %v3004_v19 }
  0x75   : > { %3025 = vpow2.f32 %v2451_v11  ;;  %v3008_v25 = vpop.eup %3007  ;;  %v549_v26 = vadd.f32 1.0, %v3006_v23 }
  0x76   : > { %3027 = vrcp.f32 %v547_v20  ;;  %v3010_v27 = vpop.eup %3009  ;;  %v550_v28 = vadd.f32 1.0, %v3008_v25  ;;  %v822_v25 = vld [vmem:[#allocation2 + $0x18] sm:$0xf] }
  0x77   : > { %3029 = vrcp.f32 %v548_v24  ;;  %v551_v31 = vadd.f32 1.0, %v3010_v27 }
  0x78   : > { %v3012_v30 = vpop.eup %3011  ;;  %3031 = vrcp.f32 %v549_v26 }
  0x79   : > { %v3014_v35 = vpop.eup %3013  ;;  %v588_v38 = vmul.f32 %v3012_v30, %v3549_v62  ;;  %3033 = vrcp.f32 %v550_v28 }
  0x7a   : > { %v3016_v39 = vpop.eup %3015  ;;  %v589_v40 = vmul.f32 %v3014_v35, %v3552_v63  ;;  %3035 = vrcp.f32 %v551_v31 }
  0x7b   : > { %v3018_v41 = vpop.eup %3017  ;;  %v2622_v42 = vpack.c.bf16 %v588_v38, %v588_v38  ;;  %v590_v45 = vmul.f32 %v3016_v39, %v3555_v0  ;;  %3037 = vpow2.f32 %v2452_v29 }
  0x7c   : > { %v3020_v46 = vpop.eup %3019  ;;  %v2623_v47 = vpack.c.bf16 %v589_v40, %v589_v40  ;;  %v591_v48 = vmul.f32 %v3018_v41, %v3560_v5  ;;  %3039 = vpow2.f32 %v2453_v32  ;;  %v826_v32 = vld [vmem:[#allocation2 + $0x20] sm:$0x1] }
  0x7d   : > { %v3022_v62 = vpop.eup %3021  ;;  %v655_v51 = vshrl.u32 %v2622_v42, 16  ;;  %v658_v53 = vshll.u32 %v2622_v42, 16  ;;  %v2624_v54 = vpack.c.bf16 %v590_v45, %v590_v45  ;;  %v592_v63 = vmul.f32 %v3020_v46, %v3573_v15  ;;  %v829_v45 = vld [vmem:[#allocation2 + $0x24] sm:$0xf] }
  0x7e   : > { %v3024_v55 = vpop.eup %3023  ;;  %v663_v56 = vshrl.u32 %v2623_v47, 16  ;;  %v666_v57 = vshll.u32 %v2623_v47, 16  ;;  %v2625_v59 = vpack.c.bf16 %v591_v48, %v591_v48  ;;  %v593_v0 = vmul.f32 %v3022_v62, %v3576_v16 }
  0x7f   : > { %v3642_v60 = vpop.eup %3025  ;;  %v657_v61 = vrot.slane %v655_v51, 7  ;;  %v672_v5 = vshrl.u32 %v2624_v54, 16  ;;  %v675_v2 = vshll.u32 %v2624_v54, 16  ;;  %v2626_v3 = vpack.c.bf16 %v592_v63, %v592_v63 }
  0x80   : > { %v3028_v4 = vpop.eup %3027  ;;  %v665_v7 = vrot.slane %v663_v56, 7  ;;  %v680_v8 = vshrl.u32 %v2625_v59, 16  ;;  %v683_v9 = vshll.u32 %v2625_v59, 16  ;;  %v2627_v10 = vpack.c.bf16 %v593_v0, %v593_v0 }
  0x81   : > { %v3030_v11 = vpop.eup %3029  ;;  %v660_v15 = vor.u32 %v658_v53, %v657_v61  ;;  %v661_v16 = vrot.slane %v657_v61, 4  ;;  %v674_v19 = vrot.slane %v672_v5, 7  ;;  %v689_v20 = vshrl.u32 %v2626_v3, 16 }
  0x82   : > { %v3032_v22 = vpop.eup %3031  ;;  %v668_v23 = vor.u32 %v666_v57, %v665_v7  ;;  %v670_v24 = vrot.slane %v665_v7, 4  ;;  %v682_v26 = vrot.slane %v680_v8, 7  ;;  %v692_v27 = vshll.u32 %v2626_v3, 16 }
  0x83   : > { %v3034_v28 = vpop.eup %3033  ;;  %v816_v29 = vsel %vm3492_vm5, %v660_v15, %v815_v6  ;;  %v677_v30 = vor.u32 %v675_v2, %v674_v19  ;;  %v678_v31 = vrot.slane %v674_v19, 4  ;;  %v691_v35 = vrot.slane %v689_v20, 7  ;;  %v833_v2 = vld [vmem:[#allocation2 + $0x2c] sm:$0x1] }
  0x84   : > { %v3036_v38 = vpop.eup %3035  ;;  %817 = vst [vmem:[#allocation2 + $0xc] sm:$0xf] %v816_v29  ;;  %v669_v39 = vsel %vm3646_vm7, %v661_v16, %v668_v23  ;;  %v820_v40 = vsel %vm3460_vm3, %v670_v24, %v819_v13  ;;  %v685_v41 = vor.u32 %v683_v9, %v682_v26  ;;  %v687_v42 = vrot.slane %v682_v26, 4  ;;  %v840_v29 = vld [vmem:[#allocation2 + $0x38] sm:$0x1] }
  0x85   : > { %v3656_v46 = vpop.eup %3037  ;;  %818 = vst.msk [vmem:[#allocation2 + $0x10] sm:$0xf] %vm364_vm0, %v669_v39  ;;  %821 = vst [vmem:[#allocation2 + $0x14] sm:$0x1] %v820_v40  ;;  %v823_v47 = vsel %vm3492_vm5, %v677_v30, %v822_v25  ;;  %v694_v48 = vor.u32 %v692_v27, %v691_v35  ;;  %v695_v62 = vrot.slane %v691_v35, 4  ;;  %v697_v51 = vshrl.u32 %v2627_v10, 16 }
  0x86   : > { %v3661_v53 = vpop.eup %3039  ;;  %824 = vst [vmem:[#allocation2 + $0x18] sm:$0xf] %v823_v47  ;;  %v686_v54 = vsel %vm3646_vm7, %v678_v31, %v685_v41  ;;  %v827_v63 = vsel %vm3460_vm3, %v687_v42, %v826_v32  ;;  %v700_v56 = vshll.u32 %v2627_v10, 16  ;;  %v594_v57 = vmul.f32 %v3024_v55, %v3579_v17 }
  0x87   : > { %825 = vst.msk [vmem:[#allocation2 + $0x1c] sm:$0xf] %vm364_vm0, %v686_v54  ;;  %828 = vst [vmem:[#allocation2 + $0x20] sm:$0x1] %v827_v63  ;;  %v830_v59 = vsel %vm3492_vm5, %v694_v48, %v829_v45  ;;  %v699_v0 = vrot.slane %v697_v51, 7  ;;  %v595_v61 = vmul.f32 %v3028_v4, %v3592_v33  ;;  %v596_v5 = vmul.f32 %v3030_v11, %v3595_v36 }
  0x88   : > { %831 = vst [vmem:[#allocation2 + $0x24] sm:$0xf] %v830_v59  ;;  %v2628_v3 = vpack.c.bf16 %v594_v57, %v594_v57  ;;  %v597_v6 = vmul.f32 %v3032_v22, %v3598_v37  ;;  %v598_v7 = vmul.f32 %v3034_v28, %v3606_v43  ;;  %v599_v17 = vmul.f32 %v3036_v38, %v3609_v44  ;;  %v836_v22 = vld [vmem:[#allocation2 + $0x30] sm:$0xf]  ;;  %v843_v38 = vld [vmem:[#allocation2 + $0x3c] sm:$0xf] }
  0x89   : > { %v702_v55 = vor.u32 %v700_v56, %v699_v0  ;;  %v704_v8 = vrot.slane %v699_v0, 4  ;;  %v2629_v9 = vpack.c.bf16 %v595_v61, %v595_v61  ;;  %v2630_v10 = vpack.c.bf16 %v596_v5, %v596_v5  ;;  %v847_v48 = vld [vmem:[#allocation2 + $0x44] sm:$0x1] }
  0x8a   : > { %v706_v15 = vshrl.u32 %v2628_v3, 16  ;;  %v709_v16 = vshll.u32 %v2628_v3, 16  ;;  %v2631_v13 = vpack.c.bf16 %v597_v6, %v597_v6  ;;  %v2632_v19 = vpack.c.bf16 %v598_v7, %v598_v7 }
  0x8b   : > { %v703_v33 = vsel %vm3646_vm7, %v695_v62, %v702_v55  ;;  %v834_v36 = vsel %vm3460_vm3, %v704_v8, %v833_v2  ;;  %v714_v4 = vshrl.u32 %v2629_v9, 16  ;;  %v717_v37 = vshll.u32 %v2629_v9, 16  ;;  %v850_v62 = vld [vmem:[#allocation2 + $0x48] sm:$0xf]  ;;  %v854_v8 = vld [vmem:[#allocation2 + $0x50] sm:$0x1] }
  0x8c   : > { %832 = vst.msk [vmem:[#allocation2 + $0x28] sm:$0xf] %vm364_vm0, %v703_v33  ;;  %835 = vst [vmem:[#allocation2 + $0x2c] sm:$0x1] %v834_v36  ;;  %v708_v43 = vrot.slane %v706_v15, 7  ;;  %v723_v44 = vshrl.u32 %v2630_v10, 16  ;;  %v2633_v40 = vpack.c.bf16 %v599_v17, %v599_v17  ;;  %3041 = vpow2.f32 %v3638_v49 }
  0x8d   : > { %v726_v11 = vshll.u32 %v2630_v10, 16  ;;  %v731_v20 = vshrl.u32 %v2631_v13, 16  ;;  %v716_v23 = vrot.slane %v714_v4, 7  ;;  %v734_v24 = vshll.u32 %v2631_v13, 16 }
  0x8e   : > { %v740_v25 = vshrl.u32 %v2632_v19, 16  ;;  %v743_v26 = vshll.u32 %v2632_v19, 16  ;;  %v711_v27 = vor.u32 %v709_v16, %v708_v43  ;;  %v712_v28 = vrot.slane %v708_v43, 4 }
  0x8f   : > { %v725_v30 = vrot.slane %v723_v44, 7  ;;  %v733_v31 = vrot.slane %v731_v20, 7  ;;  %v719_v32 = vor.u32 %v717_v37, %v716_v23  ;;  %v721_v35 = vrot.slane %v716_v23, 4 }
  0x90   : > { %v742_v39 = vrot.slane %v740_v25, 7  ;;  %v837_v41 = vsel %vm3492_vm5, %v711_v27, %v836_v22  ;;  %v748_v61 = vshrl.u32 %v2633_v40, 16  ;;  %v751_v3 = vshll.u32 %v2633_v40, 16 }
  0x91   : > { %v728_v42 = vor.u32 %v726_v11, %v725_v30  ;;  %v729_v45 = vrot.slane %v725_v30, 4  ;;  %v736_v47 = vor.u32 %v734_v24, %v733_v31  ;;  %838 = vst [vmem:[#allocation2 + $0x30] sm:$0xf] %v837_v41  ;;  %v720_v51 = vsel %vm3646_vm7, %v712_v28, %v719_v32  ;;  %v864_v32 = vld [vmem:[#allocation2 + $0x60] sm:$0xf] }
  0x92   : > { %v841_v54 = vsel %vm3460_vm3, %v721_v35, %v840_v29  ;;  %v738_v63 = vrot.slane %v733_v31, 4  ;;  %v745_v56 = vor.u32 %v743_v26, %v742_v39  ;;  %839 = vst.msk [vmem:[#allocation2 + $0x34] sm:$0xf] %vm364_vm0, %v720_v51  ;;  %v746_v0 = vrot.slane %v742_v39, 4  ;;  %v857_v26 = vld [vmem:[#allocation2 + $0x54] sm:$0xf] }
  0x93   : > { %842 = vst [vmem:[#allocation2 + $0x38] sm:$0x1] %v841_v54  ;;  %v844_v57 = vsel %vm3492_vm5, %v728_v42, %v843_v38  ;;  %v737_v59 = vsel %vm3646_vm7, %v729_v45, %v736_v47  ;;  %v552_v6 = vadd.f32 1.0, %v3642_v60  ;;  %v750_v7 = vrot.slane %v748_v61, 7  ;;  %v861_v29 = vld [vmem:[#allocation2 + $0x5c] sm:$0x1] }
  0x94   : > { %845 = vst [vmem:[#allocation2 + $0x3c] sm:$0xf] %v844_v57  ;;  %846 = vst.msk [vmem:[#allocation2 + $0x40] sm:$0xf] %vm364_vm0, %v737_v59  ;;  %v848_v5 = vsel %vm3460_vm3, %v738_v63, %v847_v48  ;;  %v851_v2 = vsel %vm3492_vm5, %v745_v56, %v850_v62  ;;  %v553_v17 = vadd.f32 1.0, %v3656_v46  ;;  %v554_v55 = vadd.f32 1.0, %v3661_v53 }
  0x95   : > { %849 = vst [vmem:[#allocation2 + $0x44] sm:$0x1] %v848_v5  ;;  %852 = vst [vmem:[#allocation2 + $0x48] sm:$0xf] %v851_v2  ;;  %3043 = vrcp.f32 %v552_v6  ;;  %v753_v9 = vor.u32 %v751_v3, %v750_v7  ;;  %v755_v10 = vrot.slane %v750_v7, 4 }
  0x96   : > { %3045 = vrcp.f32 %v553_v17  ;;  %v3042_v46 = vpop.eup %3041  ;;  %v868_v54 = vld [vmem:[#allocation2 + $0x68] sm:$0x1] }
  0x97   : > { %3047 = vrcp.f32 %v554_v55  ;;  %v754_v15 = vsel %vm3646_vm7, %v746_v0, %v753_v9  ;;  %v855_v60 = vsel %vm3460_vm3, %v755_v10, %v854_v8  ;;  %v555_v53 = vadd.f32 1.0, %v3042_v46 }
  0x98   : > { %853 = vst.msk [vmem:[#allocation2 + $0x4c] sm:$0xf] %vm364_vm0, %v754_v15  ;;  %856 = vst [vmem:[#allocation2 + $0x50] sm:$0x1] %v855_v60 }
  0x99   : > { %3049 = vrcp.f32 %v555_v53 }
  0x9f   : > { %v3044_v16 = vpop.eup %3043 }
  0xa0   : > { %v3046_v13 = vpop.eup %3045  ;;  %v600_v49 = vmul.f32 %v3044_v16, %v3616_v58 }
  0xa1   : > { %v3048_v19 = vpop.eup %3047  ;;  %v601_v33 = vmul.f32 %v3046_v13, %v3622_v14 }
  0xa2   : > { %v2634_v36 = vpack.c.bf16 %v600_v49, %v600_v49  ;;  %v602_v4 = vmul.f32 %v3048_v19, %v3625_v21 }
  0xa3   : > { %v2635_v37 = vpack.c.bf16 %v601_v33, %v601_v33  ;;  %v3050_v38 = vpop.eup %3049 }
  0xa4   : > { %v757_v43 = vshrl.u32 %v2634_v36, 16  ;;  %v760_v44 = vshll.u32 %v2634_v36, 16  ;;  %v2636_v11 = vpack.c.bf16 %v602_v4, %v602_v4  ;;  %v603_v42 = vmul.f32 %v3050_v38, %v3631_v34  ;;  %v2694_v34 = vld [vmem:[%s878_s16] sm:$0xff] (!%p2471_p7)  }
  0xa5   : > { %v765_v20 = vshrl.u32 %v2635_v37, 16  ;;  %v768_v22 = vshll.u32 %v2635_v37, 16  ;;  %v2695_v0 = vunpack.c.l.bf16 (!%p2471_p7), %v2694_v34  ;;  %v2696_v61 = vunpack.c.h.bf16 (!%p2471_p7), %v2694_v34  ;;  %v927_v37 = vld [vmem:[#allocation2] sm:$0xf] (!%p2471_p7) }
  0xa6   : > { %v759_v23 = vrot.slane %v757_v43, 7  ;;  %v774_v24 = vshrl.u32 %v2636_v11, 16  ;;  %v777_v25 = vshll.u32 %v2636_v11, 16  ;;  %v2637_v45 = vpack.c.bf16 %v603_v42, %v603_v42 }
  0xa7   : > { %v767_v27 = vrot.slane %v765_v20, 7  ;;  %v883_v5 = vmul.f32 (!%p2471_p7), %v2695_v0, %v3536_v50  ;;  %v884_v2 = vmul.f32 (!%p2471_p7), %v2696_v61, %v3536_v50  ;;  %v931_v20 = vld [vmem:[#allocation2 + $0x8] sm:$0x1] (!%p2471_p7) }
  0xa8   : > { %v762_v28 = vor.u32 %v760_v44, %v759_v23  ;;  %v763_v58 = vrot.slane %v759_v23, 4  ;;  %v776_v30 = vrot.slane %v774_v24, 7  ;;  %v782_v47 = vshrl.u32 %v2637_v45, 16 }
  0xa9   : > { %v770_v14 = vor.u32 %v768_v22, %v767_v27  ;;  %v772_v31 = vrot.slane %v767_v27, 4  ;;  %v785_v48 = vshll.u32 %v2637_v45, 16  ;;  %874 = sbr.rel (%p2471_p7) target bundleno = 211 (0xd3), region = 52  ;;  %v885_v3 = vadd.f32 (!%p2471_p7), %v3540_v52, %v883_v5 }
  0xaa   : > { %v858_v21 = vsel %vm3492_vm5, %v762_v28, %v857_v26  ;;  %v779_v35 = vor.u32 %v777_v25, %v776_v30  ;;  %v780_v62 = vrot.slane %v776_v30, 4  ;;  %v784_v51 = vrot.slane %v782_v47, 7 }
  0xab   : > { %859 = vst [vmem:[#allocation2 + $0x54] sm:$0xf] %v858_v21  ;;  %v771_v39 = vsel %vm3646_vm7, %v763_v58, %v770_v14  ;;  %v862_v40 = vsel %vm3460_vm3, %v772_v31, %v861_v29  ;;  %v886_v6 = vadd.f32 (!%p2471_p7), %v3540_v52, %v884_v2  ;;  %v2475_v7 = vmul.f32 (!%p2471_p7), -1.442695, %v885_v3 }
  0xac   : > { %860 = vst.msk [vmem:[#allocation2 + $0x58] sm:$0xf] %vm364_vm0, %v771_v39  ;;  %863 = vst [vmem:[#allocation2 + $0x5c] sm:$0x1] %v862_v40  ;;  %v865_v41 = vsel %vm3492_vm5, %v779_v35, %v864_v32  ;;  %v787_v63 = vor.u32 %v785_v48, %v784_v51  ;;  %v789_v56 = vrot.slane %v784_v51, 4 }
  0xad   : > { %866 = vst [vmem:[#allocation2 + $0x60] sm:$0xf] %v865_v41  ;;  %v2476_v17 = vmul.f32 (!%p2471_p7), -1.442695, %v886_v6  ;;  %3051 = vpow2.f32 (!%p2471_p7), %v2475_v7 }
  0xae   : > { %v788_v57 = vsel %vm3646_vm7, %v780_v62, %v787_v63  ;;  %v869_v59 = vsel %vm3460_vm3, %v789_v56, %v868_v54 }
  0xaf   : > { %867 = vst.msk [vmem:[#allocation2 + $0x64] sm:$0xf] %vm364_vm0, %v788_v57  ;;  %870 = vst [vmem:[#allocation2 + $0x68] sm:$0x1] %v869_v59  ;;  %3053 = vpow2.f32 (!%p2471_p7), %v2476_v17 }
  0xb7   : > { %v3052_v55 = vpop.eup %3051 }
  0xb8   : > { %v893_v9 = vadd.f32 1.0, %v3052_v55 }
  0xb9   : > { %v3054_v8 = vpop.eup %3053 }
  0xba   : > { %v894_v10 = vadd.f32 1.0, %v3054_v8  ;;  %3055 = vrcp.f32 %v893_v9 }
  0xbc   : > { %3057 = vrcp.f32 %v894_v10 }
  0xc4   : > { %v3056_v15 = vpop.eup %3055 }
  0xc5   : > { %v899_v46 = vmul.f32 %v3056_v15, %v885_v3 }
  0xc6   : > { %v3058_v60 = vpop.eup %3057 }
  0xc7   : > { %v900_v16 = vmul.f32 %v3058_v60, %v886_v6  ;;  %v2639_v53 = vpack.c.bf16 %v899_v46, %v899_v46 }
  0xc9   : > { %v2640_v13 = vpack.c.bf16 %v900_v16, %v900_v16  ;;  %v908_v49 = vshrl.u32 %v2639_v53, 16  ;;  %v911_v19 = vshll.u32 %v2639_v53, 16 }
  0xcb   : > { %v916_v33 = vshrl.u32 %v2640_v13, 16  ;;  %v919_v36 = vshll.u32 %v2640_v13, 16  ;;  %v910_v4 = vrot.slane %v908_v49, 7 }
  0xcd   : > { %v918_v43 = vrot.slane %v916_v33, 7  ;;  %v913_v44 = vor.u32 %v911_v19, %v910_v4  ;;  %v914_v11 = vrot.slane %v910_v4, 4 }
  0xcf   : > { %v921_v22 = vor.u32 %v919_v36, %v918_v43  ;;  %v923_v23 = vrot.slane %v918_v43, 4  ;;  %v928_v24 = vsel %vm3492_vm5, %v913_v44, %v927_v37 }
  0xd0   : > { %929 = vst [vmem:[#allocation2] sm:$0xf] %v928_v24 }
  0xd1   : > { %v922_v25 = vsel %vm3646_vm7, %v914_v11, %v921_v22  ;;  %v932_v26 = vsel %vm3460_vm3, %v923_v23, %v931_v20 }
  0xd2   : > { %930 = vst.msk [vmem:[#allocation2 + $0x4] sm:$0xf] %vm364_vm0, %v922_v25  ;;  %933 = vst [vmem:[#allocation2 + $0x8] sm:$0x1] %v932_v26 }
  0xd3 PF: > { %p2479_p2 = scmp.ge.s32.totalorder %s3231_s27, 1 }
  0xd4   : > { %v2708_v27 = vld [vmem:[%s3466_s18 + $0x40] sm:$0xff] (!%p2479_p2)   ;;  %v990_v56 = vld [vmem:[#allocation2 + $0x6c] sm:$0xf] (!%p2479_p2)  ;;  %v994_v0 = vld [vmem:[#allocation2 + $0x74] sm:$0x1] (!%p2479_p2) }
  0xd5   : > { %937 = sbr.rel (%p2479_p2) target bundleno = 258 (0x102), region = 56  ;;  %v2699_v28 = vunpack.c.l.bf16 (!%p2479_p2), %v2708_v27  ;;  %v2700_v58 = vunpack.c.h.bf16 (!%p2479_p2), %v2708_v27 }
  0xd7   : > { %v946_v29 = vmul.f32 (!%p2479_p2), %v2699_v28, %v3536_v50  ;;  %v947_v30 = vmul.f32 (!%p2479_p2), %v2700_v58, %v3536_v50 }
  0xd9   : > { %v948_v14 = vadd.f32 (!%p2479_p2), %v3540_v52, %v946_v29  ;;  %v949_v31 = vadd.f32 (!%p2479_p2), %v3540_v52, %v947_v30 }
  0xdb   : > { %v2484_v32 = vmul.f32 (!%p2479_p2), -1.442695, %v948_v14  ;;  %v2485_v21 = vmul.f32 (!%p2479_p2), -1.442695, %v949_v31 }
  0xdd   : > { %3059 = vpow2.f32 %v2484_v32 }
  0xde   : > { %3061 = vpow2.f32 %v2485_v21 }
  0xe7   : > { %v3060_v35 = vpop.eup %3059 }
  0xe8   : > { %v3062_v38 = vpop.eup %3061  ;;  %v956_v39 = vadd.f32 1.0, %v3060_v35 }
  0xe9   : > { %v957_v40 = vadd.f32 1.0, %v3062_v38 }
  0xea   : > { %3063 = vrcp.f32 %v956_v39 }
  0xeb   : > { %3065 = vrcp.f32 %v957_v40 }
  0xf4   : > { %v3064_v41 = vpop.eup %3063 }
  0xf5   : > { %v3066_v42 = vpop.eup %3065  ;;  %v962_v45 = vmul.f32 %v3064_v41, %v948_v14 }
  0xf6   : > { %v963_v47 = vmul.f32 %v3066_v42, %v949_v31 }
  0xf7   : > { %v2642_v48 = vpack.c.bf16 %v962_v45, %v962_v45 }
  0xf8   : > { %v2643_v50 = vpack.c.bf16 %v963_v47, %v963_v47 }
  0xf9   : > { %v971_v62 = vshrl.u32 %v2642_v48, 16  ;;  %v974_v51 = vshll.u32 %v2642_v48, 16 }
  0xfa   : > { %v979_v54 = vshrl.u32 %v2643_v50, 16  ;;  %v982_v52 = vshll.u32 %v2643_v50, 16 }
  0xfb   : > { %v973_v63 = vrot.slane %v971_v62, 7 }
  0xfc   : > { %v981_v57 = vrot.slane %v979_v54, 7 }
  0xfd   : > { %v976_v59 = vor.u32 %v974_v51, %v973_v63  ;;  %v977_v34 = vrot.slane %v973_v63, 4 }
  0xfe   : > { %v984_v61 = vor.u32 %v982_v52, %v981_v57  ;;  %v986_v5 = vrot.slane %v981_v57, 4 }
  0xff   : > { %v991_v2 = vsel %vm3492_vm5, %v976_v59, %v990_v56 }
 0x100   : > { %992 = vst [vmem:[#allocation2 + $0x6c] sm:$0xf] %v991_v2  ;;  %v985_v3 = vsel %vm3646_vm7, %v977_v34, %v984_v61  ;;  %v995_v6 = vsel %vm3460_vm3, %v986_v5, %v994_v0 }
 0x101   : > { %993 = vst.msk [vmem:[#allocation2 + $0x70] sm:$0xf] %vm364_vm0, %v985_v3  ;;  %996 = vst [vmem:[#allocation2 + $0x74] sm:$0x1] %v995_v6 }
 0x102 PF: > { %v1088_v7 = vld [vmem:[#allocation2] sm:$0xf]  ;;  %v1089_v17 = vld [vmem:[#allocation2 + $0x4] sm:$0xf]  ;;  %v1090_v55 = vld [vmem:[#allocation2 + $0x8] sm:$0x1]  ;;  %s4193_s12 = scalar_lea.vmem %s4165_s5, %s3457_s9 }
 0x103   : > { %vm1118_vm8 = vsmask.f32 3328  ;;  %vm1119_vm9 = vsmask.f32 7440  ;;  %v1122_v8 = vshrl.u32 %v1088_v7, 16  ;;  %v1125_v9 = vshll.u32 %v1088_v7, 16 }
 0x104   : > { %v1131_v18 = vshll.u32 %v1089_v17, 16  ;;  %v1135_v10 = vshrl.u32 %v1089_v17, 16  ;;  %v1141_v15 = vshll.u32 %v1090_v55, 16  ;;  %v1432_v60 = vld [vmem:[#allocation2] sm:$0xe]  ;;  %vm1492_vm10 = vcmask 1042432   ;;  %vm3761_vm11 = vmor %vm1118_vm8, %vm1119_vm9 }
 0x105   : > { %v1124_v12 = vrot.slane %v1122_v8, 4  ;;  %v1127_v46 = vrot.slane %v1125_v9, 5  ;;  %v1433_v16 = vld [vmem:[#allocation2 + $0x4] sm:$0xf]  ;;  %v1434_v1 = vld [vmem:[#allocation2 + $0x8] sm:$0x1] }
 0x106   : > { %v1133_v53 = vrot.slane %v1131_v18, 5  ;;  %v1137_v13 = vrot.slane %v1135_v10, 4  ;;  %v1143_v49 = vrot.slane %v1141_v15, 5  ;;  %v3067_v19 = vld [vmem:[%s4163_s3 + $0x30] sm:$0xff]   ;;  %vm1493_vm12 = vcmask 1046532   ;;  %v3068_v44 = vld [vmem:[%s4163_s3] sm:$0xff]  }
 0x107   : > { %v1128_v36 = vor.u32 %v1127_v46, %v1124_v12  ;;  %v2508_v4 = vrot.slane %v1432_v60, 9  ;;  %v1497_v37 = vrot.slane %v1433_v16, 5  ;;  %v1091_v43 = vld [vmem:[#allocation2 + $0xc] sm:$0xf]  ;;  %vm3768_vm13 = vmor %vm1492_vm10, %vm1493_vm12  ;;  %v1500_v22 = vrot.slane %v1434_v1, 5  ;;  %2751 = vmatprep.subr.bf16.mxu1 %v3067_v19  ;;  %2779 = vmatprep.subr.bf16.mxu0 %v3068_v44  ;;  %v3069_v29 = vld [vmem:[%s4163_s3 + $0x38] sm:$0xff]  }
 0x108   : > { %v1138_v11 = vor.u32 %v1137_v13, %v1133_v53  ;;  %v1092_v23 = vld [vmem:[#allocation2 + $0x10] sm:$0xf]  ;;  %v1093_v24 = vld [vmem:[#allocation2 + $0x14] sm:$0x1]  ;;  %v1146_v25 = vshrl.u32 %v1091_v43, 16  ;;  %v1149_v58 = vshll.u32 %v1091_v43, 16  ;;  %2752 = vmatpush3.bf16.msra.mxu1 %v3067_v19  ;;  %2780 = vmatpush3.bf16.msra.mxu0 %v3068_v44 }
 0x109   : > { %v1129_v26 = vrot.slane %v1128_v36, 4  ;;  %v1498_v27 = vsel %vm3768_vm13, %v2508_v4, %v1497_v37  ;;  %v1499_v28 = vrot.slane %v1497_v37, 4  ;;  %v1155_v31 = vshll.u32 %v1092_v23, 16  ;;  %v1094_v21 = vld [vmem:[#allocation2 + $0x18] sm:$0xf]  ;;  %2753 = vmatprep.subr.bf16.mxu1 %v3069_v29  ;;  %s3253_s13 = smov 64  }
 0x10a   : > { %v1139_v30 = vrot.slane %v1138_v11, 4  ;;  %v1148_v14 = vrot.slane %v1146_v25, 4  ;;  %v1159_v32 = vshrl.u32 %v1092_v23, 16  ;;  %v1151_v39 = vrot.slane %v1149_v58, 5  ;;  %v1095_v41 = vld [vmem:[#allocation2 + $0x1c] sm:$0xf] }
 0x10b   : > { %v1134_v35 = vsel %vm3761_vm11, %v1129_v26, %v1133_v53  ;;  %v1501_v38 = vsel %vm3768_vm13, %v1499_v28, %v1500_v22  ;;  %v1165_v40 = vshll.u32 %v1093_v24, 16  ;;  %v1157_v47 = vrot.slane %v1155_v31, 5  ;;  %v1096_v50 = vld [vmem:[#allocation2 + $0x20] sm:$0x1]  ;;  %v1435_v62 = vld [vmem:[#allocation2 + $0xc] sm:$0xe] }
 0x10c   : > { %v1144_v42 = vsel %vm3761_vm11, %v1139_v30, %v1143_v49  ;;  %v2518_v45 = vcombine.low %v1498_v27, %v1501_v38  ;;  %v1161_v48 = vrot.slane %v1159_v32, 4  ;;  %v1152_v54 = vor.u32 %v1151_v39, %v1148_v14  ;;  %v1436_v56 = vld [vmem:[#allocation2 + $0x10] sm:$0xf]  ;;  %v1437_v57 = vld [vmem:[#allocation2 + $0x14] sm:$0x1]  ;;  %2754 = vmatpush3.bf16.msra.mxu1 %v3069_v29  ;;  %v3070_v2 = vld [vmem:[%s4163_s3 + $0x8] sm:$0xff]  }
 0x10d   : > { %v2498_v51 = vcombine.low %v1134_v35, %v1144_v42  ;;  %v1167_v52 = vrot.slane %v1165_v40, 5  ;;  %v1170_v63 = vshrl.u32 %v1094_v21, 16  ;;  %v1173_v34 = vshll.u32 %v1094_v21, 16  ;;  %v1438_v5 = vld [vmem:[#allocation2 + $0x18] sm:$0xe]  ;;  %s3254_s16 = smov 32   ;;  %2781 = vmatprep.subr.bf16.mxu0 %v3070_v2 }
 0x10e   : > { %1595 = vrot.lane.b32.xlu1 %v2518_v45, %s3253_s13  ;;  %v1162_v59 = vor.u32 %v1161_v48, %v1157_v47  ;;  %v1179_v0 = vshll.u32 %v1095_v41, 16  ;;  %v1183_v61 = vshrl.u32 %v1095_v41, 16  ;;  %v1153_v3 = vrot.slane %v1152_v54, 4  ;;  %v1439_v55 = vld [vmem:[#allocation2 + $0x1c] sm:$0xf]  ;;  %2782 = vmatpush3.bf16.msra.mxu0 %v3070_v2  ;;  %v3072_v36 = vld [vmem:[%s4163_s3 + $0x40] sm:$0xff]  }
 0x10f   : > { %1391 = vrot.lane.b32.xlu0 %v2498_v51, %s3254_s16  ;;  %v1172_v6 = vrot.slane %v1170_v63, 4  ;;  %v1189_v7 = vshll.u32 %v1096_v50, 16  ;;  %v2509_v17 = vrot.slane %v1435_v62, 9  ;;  %v1175_v9 = vrot.slane %v1173_v34, 5  ;;  %v1440_v15 = vld [vmem:[#allocation2 + $0x20] sm:$0x1]  ;;  %2755 = vmatprep.subr.bf16.mxu1 %v3072_v36 }
 0x110   : > { %v1163_v8 = vrot.slane %v1162_v59, 4  ;;  %v1181_v18 = vrot.slane %v1179_v0, 5  ;;  %v1185_v10 = vrot.slane %v1183_v61, 4  ;;  %v1158_v60 = vsel %vm3761_vm11, %v1153_v3, %v1157_v47  ;;  %v1097_v1 = vld [vmem:[#allocation2 + $0x24] sm:$0xf]  ;;  %2756 = vmatpush3.bf16.msra.mxu1 %v3072_v36  ;;  %v3073_v38 = vld [vmem:[%s4163_s3 + $0x10] sm:$0xff]  }
 0x111   : > { %v1191_v12 = vrot.slane %v1189_v7, 5  ;;  %v1504_v46 = vrot.slane %v1436_v56, 5  ;;  %v1507_v16 = vrot.slane %v1437_v57, 5  ;;  %v1176_v13 = vor.u32 %v1175_v9, %v1172_v6  ;;  %v1098_v24 = vld [vmem:[#allocation2 + $0x28] sm:$0xf]  ;;  %2783 = vmatprep.subr.bf16.mxu0 %v3073_v38  ;;  %s2660_s9 = sshll.u32 %s3231_s27, 4 }
 0x112   : > { %v1168_v53 = vsel %vm3761_vm11, %v1163_v8, %v1167_v52  ;;  %v1186_v49 = vor.u32 %v1185_v10, %v1181_v18  ;;  %v2510_v19 = vrot.slane %v1438_v5, 9  ;;  %v1511_v44 = vrot.slane %v1439_v55, 5  ;;  %v1099_v58 = vld [vmem:[#allocation2 + $0x2c] sm:$0x1]  ;;  %v1100_v30 = vld [vmem:[#allocation2 + $0x30] sm:$0xf]  ;;  %2784 = vmatpush3.bf16.msra.mxu0 %v3073_v38 }
 0x113   : > { %v2499_v4 = vcombine.low %v1158_v60, %v1168_v53  ;;  %v1505_v37 = vsel %vm3768_vm13, %v2509_v17, %v1504_v46  ;;  %v1506_v43 = vrot.slane %v1504_v46, 4  ;;  %v1177_v11 = vrot.slane %v1176_v13, 4  ;;  %v1101_v35 = vld [vmem:[#allocation2 + $0x34] sm:$0xf]  ;;  %v1102_v45 = vld [vmem:[#allocation2 + $0x38] sm:$0x1] }
 0x114   : > { %v1187_v22 = vrot.slane %v1186_v49, 4  ;;  %v1514_v23 = vrot.slane %v1440_v15, 5  ;;  %v1194_v25 = vshrl.u32 %v1097_v1, 16  ;;  %v1512_v27 = vsel %vm3768_vm13, %v2510_v19, %v1511_v44  ;;  %v1441_v47 = vld [vmem:[#allocation2 + $0x24] sm:$0xe]  ;;  %v3075_v34 = vld [vmem:[%s4163_s3 + $0x48] sm:$0xff]  }
 0x115   : > { %1393 = vrot.lane.b32.xlu0 %v2499_v4, %s3254_s16  ;;  %v1508_v26 = vsel %vm3768_vm13, %v1506_v43, %v1507_v16  ;;  %v1513_v28 = vrot.slane %v1511_v44, 4  ;;  %v1197_v29 = vshll.u32 %v1097_v1, 16  ;;  %v1182_v14 = vsel %vm3761_vm11, %v1177_v11, %v1181_v18  ;;  %v1442_v54 = vld [vmem:[#allocation2 + $0x28] sm:$0xf]  ;;  %v1443_v59 = vld [vmem:[#allocation2 + $0x2c] sm:$0x1]  ;;  %2757 = vmatprep.subr.bf16.mxu1 %v3075_v34 }
 0x116   : > { %v1192_v31 = vsel %vm3761_vm11, %v1187_v22, %v1191_v12  ;;  %v2519_v32 = vcombine.low %v1505_v37, %v1508_v26  ;;  %v1196_v21 = vrot.slane %v1194_v25, 4  ;;  %v1203_v42 = vshll.u32 %v1098_v24, 16  ;;  %v1444_v3 = vld [vmem:[#allocation2 + $0x30] sm:$0xe]  ;;  %v1445_v8 = vld [vmem:[#allocation2 + $0x34] sm:$0xf]  ;;  %2758 = vmatpush3.bf16.msra.mxu1 %v3075_v34 }
 0x117   : > { %v2500_v39 = vcombine.low %v1182_v14, %v1192_v31  ;;  %v1515_v40 = vsel %vm3768_vm13, %v1513_v28, %v1514_v23  ;;  %v1199_v41 = vrot.slane %v1197_v29, 5  ;;  %v1207_v50 = vshrl.u32 %v1098_v24, 16  ;;  %v1446_v60 = vld [vmem:[#allocation2 + $0x38] sm:$0x1]  ;;  %v1103_v13 = vld [vmem:[#allocation2 + $0x3c] sm:$0xf] }
 0x118   : > { %v2520_v48 = vcombine.low %v1512_v27, %v1515_v40  ;;  %v1213_v62 = vshll.u32 %v1099_v58, 16  ;;  %v1218_v51 = vshrl.u32 %v1100_v30, 16  ;;  %v1205_v63 = vrot.slane %v1203_v42, 5  ;;  %v3076_v12 = vld [vmem:[%s4163_s3 + $0x18] sm:$0xff]   ;;  %v1104_v25 = vld [vmem:[#allocation2 + $0x40] sm:$0xf] }
 0x119   : > { %1395 = vrot.lane.b32.xlu1 %v2500_v39, %s3254_s16  ;;  %1597 = vrot.lane.b32.xlu0 %v2519_v32, %s3253_s13  ;;  %v1200_v52 = vor.u32 %v1199_v41, %v1196_v21  ;;  %v1221_v56 = vshll.u32 %v1100_v30, 16  ;;  %v1227_v57 = vshll.u32 %v1101_v35, 16  ;;  %v1209_v0 = vrot.slane %v1207_v50, 4  ;;  %v1105_v26 = vld [vmem:[#allocation2 + $0x44] sm:$0x1]  ;;  %s2615_s14 = sshll.u32 %s3235_s28, 5 }
 0x11a   : > { %v1215_v61 = vrot.slane %v1213_v62, 5  ;;  %v1220_v5 = vrot.slane %v1218_v51, 4  ;;  %v1231_v2 = vshrl.u32 %v1101_v35, 16  ;;  %v1237_v55 = vshll.u32 %v1102_v45, 16  ;;  %2785 = vmatprep.subr.bf16.mxu0 %v3076_v12  ;;  %v1106_v14 = vld [vmem:[#allocation2 + $0x48] sm:$0xf]  ;;  %s2299_s27 = sadd.s32 %s2660_s9, %s2615_s14 }
 0x11b   : > { %v1201_v6 = vrot.slane %v1200_v52, 4  ;;  %v1223_v7 = vrot.slane %v1221_v56, 5  ;;  %v1229_v17 = vrot.slane %v1227_v57, 5  ;;  %v1210_v9 = vor.u32 %v1209_v0, %v1205_v63  ;;  %2786 = vmatpush3.bf16.msra.mxu0 %v3076_v12  ;;  %v1107_v38 = vld [vmem:[#allocation2 + $0x4c] sm:$0xf]  ;;  %v3079_v52 = vld [vmem:[%s4163_s3 + $0x20] sm:$0xff]  }
 0x11c   : > { %v1233_v18 = vrot.slane %v1231_v2, 4  ;;  %v2511_v10 = vrot.slane %v1441_v47, 9  ;;  %v1518_v15 = vrot.slane %v1442_v54, 5  ;;  %v1239_v1 = vrot.slane %v1237_v55, 5  ;;  %v1108_v45 = vld [vmem:[#allocation2 + $0x50] sm:$0x1]  ;;  %2787 = vmatprep.subr.bf16.mxu0 %v3079_v52 }
 0x11d   : > { %1599 = vrot.lane.b32.xlu1 %v2520_v48, %s3253_s13  ;;  %v1206_v46 = vsel %vm3761_vm11, %v1201_v6, %v1205_v63  ;;  %v1224_v16 = vor.u32 %v1223_v7, %v1220_v5  ;;  %v1521_v53 = vrot.slane %v1443_v59, 5  ;;  %v1211_v49 = vrot.slane %v1210_v9, 4  ;;  %v3078_v47 = vld [vmem:[%s4163_s3 + $0x50] sm:$0xff]   ;;  %v1447_v54 = vld [vmem:[#allocation2 + $0x3c] sm:$0xe]  ;;  %s2616_s28 = sshll.u32 %s2299_s27, 6 }
 0x11e   : > { %v1234_v19 = vor.u32 %v1233_v18, %v1229_v17  ;;  %v1519_v36 = vsel %vm3768_vm13, %v2511_v10, %v1518_v15  ;;  %v1520_v4 = vrot.slane %v1518_v15, 4  ;;  %v2512_v43 = vrot.slane %v1444_v3, 9  ;;  %v1448_v34 = vld [vmem:[#allocation2 + $0x40] sm:$0xf]  ;;  %2759 = vmatprep.subr.bf16.mxu1 %v3078_v47  ;;  %v1449_v3 = vld [vmem:[#allocation2 + $0x44] sm:$0x1]  ;;  %s4085_s30 = scalar_lea.hbm %s4166_s6, %s2616_s28 }
 0x11f   : > { %v1225_v37 = vrot.slane %v1224_v16, 4  ;;  %v1525_v44 = vrot.slane %v1445_v8, 5  ;;  %v1528_v11 = vrot.slane %v1446_v60, 5  ;;  %v1216_v22 = vsel %vm3761_vm11, %v1211_v49, %v1215_v61  ;;  %2760 = vmatpush3.bf16.msra.mxu1 %v3078_v47  ;;  %v3081_v6 = vld [vmem:[%s4163_s3 + $0x58] sm:$0xff]   ;;  %v1450_v9 = vld [vmem:[#allocation2 + $0x48] sm:$0xe]  ;;  %2788 = vmatpush3.bf16.msra.mxu0 %v3079_v52 }
 0x120   : > { %v1235_v23 = vrot.slane %v1234_v19, 4  ;;  %v1522_v24 = vsel %vm3768_vm13, %v1520_v4, %v1521_v53  ;;  %v1242_v27 = vshrl.u32 %v1103_v13, 16  ;;  %v2501_v28 = vcombine.low %v1206_v46, %v1216_v22  ;;  %v3082_v18 = vld [vmem:[%s4163_s3 + $0x28] sm:$0xff]   ;;  %2761 = vmatprep.subr.bf16.mxu1 %v3081_v6  ;;  %v1452_v49 = vld [vmem:[#allocation2 + $0x50] sm:$0x1]  ;;  %s2302_s8 = sshll.u32 %s3725_s29, 4  ;;  %s4089_s8 = int_to_ptr.vmem [resolvable:$true] %s2302_s8 }
 0x121   : > { %v1230_v58 = vsel %vm3761_vm11, %v1225_v37, %v1229_v17  ;;  %v2521_v29 = vcombine.low %v1519_v36, %v1522_v24  ;;  %v1526_v30 = vsel %vm3768_vm13, %v2512_v43, %v1525_v44  ;;  %v1527_v32 = vrot.slane %v1525_v44, 4  ;;  %v1451_v46 = vld [vmem:[#allocation2 + $0x4c] sm:$0xf]  ;;  %2789 = vmatprep.subr.bf16.mxu0 %v3082_v18  ;;  %v1109_v43 = vld [vmem:[#allocation2 + $0x54] sm:$0xf]  ;;  %s4194_s15 = sand.u32 1, %s3211_s22  }
 0x122   : > { %v1240_v31 = vsel %vm3761_vm11, %v1235_v23, %v1239_v1  ;;  %v1244_v21 = vrot.slane %v1242_v27, 4  ;;  %v1245_v35 = vshll.u32 %v1103_v13, 16  ;;  %1397 = vrot.lane.b32.xlu0 %v2501_v28, %s3254_s16  ;;  %v1251_v40 = vshll.u32 %v1104_v25, 16  ;;  %v1110_v24 = vld [vmem:[#allocation2 + $0x58] sm:$0xf]  ;;  %s4097_s18 = scalar_lea.sflag [#allocation6], %s4194_s15 }
 0x123   : > { %v2502_v39 = vcombine.low %v1230_v58, %v1240_v31  ;;  %v1255_v41 = vshrl.u32 %v1104_v25, 16  ;;  %v1261_v42 = vshll.u32 %v1105_v26, 16  ;;  %v1529_v48 = vsel %vm3768_vm13, %v1527_v32, %v1528_v11  ;;  %2762 = vmatpush3.bf16.msra.mxu1 %v3081_v6  ;;  %v1111_v25 = vld [vmem:[#allocation2 + $0x5c] sm:$0x1]  ;;  %2790 = vmatpush3.bf16.msra.mxu0 %v3082_v18  ;;  %v1454_v47 = vld [vmem:[#allocation2 + $0x58] sm:$0xf] }
 0x124   : > { %v1247_v50 = vrot.slane %v1245_v35, 5  ;;  %v1266_v62 = vshrl.u32 %v1106_v14, 16  ;;  %v1269_v51 = vshll.u32 %v1106_v14, 16  ;;  %v2522_v63 = vcombine.low %v1526_v30, %v1529_v48  ;;  %v3865_v30 = vld [vmem:[%s4163_s3 + $0x60] sm:$0xff]   ;;  %s3125_s11 = scalar_lea.vmem %s4089_s8, 1024  ;;  %p4195_p0 = scmp.ne.s32.totalorder %s4179_s19, 0 }
 0x125   : > { %1399 = vrot.lane.b32.xlu1 %v2502_v39, %s3254_s16  ;;  %v1253_v56 = vrot.slane %v1251_v40, 5  ;;  %v1257_v57 = vrot.slane %v1255_v41, 4  ;;  %v1263_v59 = vrot.slane %v1261_v42, 5  ;;  %v1275_v2 = vshll.u32 %v1107_v38, 16  ;;  %v1113_v35 = vld [vmem:[#allocation2 + $0x64] sm:$0xf]  ;;  %2807 = vmatprep.subr.bf16.mxu0 %v3865_v30  ;;  %p3126_p4 = scmp.ne.s32.totalorder %s4089_s8, %s3125_s11 }
 0x126   : > { %v1248_v0 = vor.u32 %v1247_v50, %v1244_v21  ;;  %v1268_v61 = vrot.slane %v1266_v62, 4  ;;  %v1271_v5 = vrot.slane %v1269_v51, 5  ;;  %1601 = vrot.lane.b32.xlu0 %v2521_v29, %s3253_s13  ;;  %v1279_v17 = vshrl.u32 %v1107_v38, 16  ;;  %v1112_v29 = vld [vmem:[#allocation2 + $0x60] sm:$0xf]  ;;  %2835 = vmatprep.subr.bf16.mxu1 %v3865_v30 }
 0x127   : > { %v1258_v7 = vor.u32 %v1257_v57, %v1253_v56  ;;  %v1285_v55 = vshll.u32 %v1108_v45, 16  ;;  %v2513_v8 = vrot.slane %v1447_v54, 9  ;;  %v1277_v60 = vrot.slane %v1275_v2, 5  ;;  %v1114_v42 = vld [vmem:[#allocation2 + $0x68] sm:$0x1]  ;;  %p3127_p1 = pnand %p3126_p4, %p4195_p0 }
 0x128   : > { %v1249_v10 = vrot.slane %v1248_v0, 4  ;;  %v1272_v15 = vor.u32 %v1271_v5, %v1268_v61  ;;  %v1532_v12 = vrot.slane %v1448_v34, 5  ;;  %v1281_v1 = vrot.slane %v1279_v17, 4  ;;  %v1453_v45 = vld [vmem:[#allocation2 + $0x54] sm:$0xe] }
 0x129   : > { %1603 = vrot.lane.b32.xlu1 %v2522_v63, %s3253_s13  ;;  %v1259_v16 = vrot.slane %v1258_v7, 4  ;;  %v1287_v53 = vrot.slane %v1285_v55, 5  ;;  %v1535_v13 = vrot.slane %v1449_v3, 5  ;;  %v2514_v22 = vrot.slane %v1450_v9, 9  ;;  %v1455_v61 = vld [vmem:[#allocation2 + $0x5c] sm:$0x1]  ;;  %p3128_p6 = pneg %p3127_p1 }
 0x12a   : > { %v1254_v19 = vsel %vm3761_vm11, %v1249_v10, %v1253_v56  ;;  %v1273_v36 = vrot.slane %v1272_v15, 4  ;;  %v1533_v4 = vsel %vm3768_vm13, %v2513_v8, %v1532_v12  ;;  %v1534_v37 = vrot.slane %v1532_v12, 4  ;;  %v1456_v7 = vld [vmem:[#allocation2 + $0x60] sm:$0xe]  ;;  %v1457_v17 = vld [vmem:[#allocation2 + $0x64] sm:$0xf] }
 0x12b   : > { %v1264_v44 = vsel %vm3761_vm11, %v1259_v16, %v1263_v59  ;;  %v1282_v11 = vor.u32 %v1281_v1, %v1277_v60  ;;  %v1539_v23 = vrot.slane %v1451_v46, 5  ;;  %v1542_v58 = vrot.slane %v1452_v49, 5  ;;  %v1458_v55 = vld [vmem:[#allocation2 + $0x68] sm:$0x1]  ;;  %v1115_v16 = vld [vmem:[#allocation2 + $0x6c] sm:$0xf] }
 0x12c   : > { %v2503_v26 = vcombine.low %v1254_v19, %v1264_v44  ;;  %v1278_v27 = vsel %vm3761_vm11, %v1273_v36, %v1277_v60  ;;  %v1536_v28 = vsel %vm3768_vm13, %v1534_v37, %v1535_v13  ;;  %v1290_v38 = vshrl.u32 %v1109_v43, 16  ;;  %v1116_v19 = vld [vmem:[#allocation2 + $0x70] sm:$0xf] }
 0x12d   : > { %v1283_v14 = vrot.slane %v1282_v11, 4  ;;  %v2523_v31 = vcombine.low %v1533_v4, %v1536_v28  ;;  %v1540_v32 = vsel %vm3768_vm13, %v2514_v22, %v1539_v23  ;;  %v1541_v21 = vrot.slane %v1539_v23, 4 }
 0x12e   : > { %1401 = vrot.lane.b32.xlu0 %v2503_v26, %s3254_s16  ;;  %v1293_v39 = vshll.u32 %v1109_v43, 16  ;;  %v1299_v40 = vshll.u32 %v1110_v24, 16  ;;  %v1303_v41 = vshrl.u32 %v1110_v24, 16  ;;  %v1309_v62 = vshll.u32 %v1111_v25, 16  ;;  %v1117_v24 = vld [vmem:[#allocation2 + $0x74] sm:$0x1] }
 0x12f   : > { %v1288_v48 = vsel %vm3761_vm11, %v1283_v14, %v1287_v53  ;;  %v1543_v50 = vsel %vm3768_vm13, %v1541_v21, %v1542_v58  ;;  %v1314_v51 = vshrl.u32 %v1112_v29, 16  ;;  %v1292_v63 = vrot.slane %v1290_v38, 4  ;;  %v1459_v58 = vld [vmem:[#allocation2 + $0x6c] sm:$0xe]  ;;  %v1461_v14 = vld [vmem:[#allocation2 + $0x74] sm:$0x1] }
 0x130   : > { %v2504_v54 = vcombine.low %v1278_v27, %v1288_v48  ;;  %v2524_v52 = vcombine.low %v1540_v32, %v1543_v50  ;;  %v1295_v56 = vrot.slane %v1293_v39, 5  ;;  %v1301_v57 = vrot.slane %v1299_v40, 5  ;;  %v3071_v38 = vld [vmem:[#allocation2] sm:$0xff]   ;;  %v3074_v39 = vld [vmem:[#allocation2 + $0xc] sm:$0xff]   ;;  %v3077_v40 = vld [vmem:[#allocation2 + $0x18] sm:$0xff]  }
 0x131   : > { %v1305_v59 = vrot.slane %v1303_v41, 4  ;;  %v1311_v34 = vrot.slane %v1309_v62, 5  ;;  %v1316_v0 = vrot.slane %v1314_v51, 4  ;;  %v1317_v2 = vshll.u32 %v1112_v29, 16  ;;  %v1460_v29 = vld [vmem:[#allocation2 + $0x70] sm:$0xf] }
 0x132   : > { %1403 = vrot.lane.b32.xlu1 %v2504_v54, %s3254_s16  ;;  %1605 = vrot.lane.b32.xlu0 %v2523_v31, %s3253_s13  ;;  %v1296_v5 = vor.u32 %v1295_v56, %v1292_v63  ;;  %v1323_v3 = vshll.u32 %v1113_v35, 16  ;;  %v1327_v6 = vshrl.u32 %v1113_v35, 16  ;;  %v1333_v9 = vshll.u32 %v1114_v42, 16  ;;  %v3080_v41 = vld [vmem:[#allocation2 + $0x24] sm:$0xff]   ;;  %v3083_v42 = vld [vmem:[#allocation2 + $0x30] sm:$0xff]  }
 0x133   : > { %v1306_v8 = vor.u32 %v1305_v59, %v1301_v57  ;;  %v2515_v18 = vrot.slane %v1453_v45, 9  ;;  %v1546_v10 = vrot.slane %v1454_v47, 5  ;;  %v1319_v60 = vrot.slane %v1317_v2, 5  ;;  %v3085_v45 = vld [vmem:[#allocation2 + $0x3c] sm:$0xff]   ;;  %v3086_v47 = vld [vmem:[#allocation2 + $0x48] sm:$0xff]   ;;  %v3088_v48 = vld [vmem:[#allocation2 + $0x54] sm:$0xff]  }
 0x134   : > { %v1297_v15 = vrot.slane %v1296_v5, 4  ;;  %v1325_v12 = vrot.slane %v1323_v3, 5  ;;  %v1329_v46 = vrot.slane %v1327_v6, 4  ;;  %v1335_v53 = vrot.slane %v1333_v9, 5  ;;  %v3090_v5 = vld [vmem:[#allocation2 + $0x60] sm:$0xff]  }
 0x135   : > { %v1307_v1 = vrot.slane %v1306_v8, 4  ;;  %v1547_v13 = vsel %vm3768_vm13, %v2515_v18, %v1546_v10  ;;  %v1548_v49 = vrot.slane %v1546_v10, 4  ;;  %v1320_v4 = vor.u32 %v1319_v60, %v1316_v0 }
 0x136   : > { %1607 = vrot.lane.b32.xlu1 %v2524_v52, %s3253_s13  ;;  %v1302_v36 = vsel %vm3761_vm11, %v1297_v15, %v1301_v57  ;;  %v1330_v37 = vor.u32 %v1329_v46, %v1325_v12  ;;  %v1549_v43 = vrot.slane %v1455_v61, 5  ;;  %v2516_v11 = vrot.slane %v1456_v7, 9 }
 0x137   : > { %v1312_v44 = vsel %vm3761_vm11, %v1307_v1, %v1311_v34  ;;  %v1553_v22 = vrot.slane %v1457_v17, 5  ;;  %v1556_v23 = vrot.slane %v1458_v55, 5  ;;  %v1321_v26 = vrot.slane %v1320_v4, 4 }
 0x138   : > { %v2505_v25 = vcombine.low %v1302_v36, %v1312_v44  ;;  %v1331_v27 = vrot.slane %v1330_v37, 4  ;;  %v1550_v28 = vsel %vm3768_vm13, %v1548_v49, %v1549_v43  ;;  %v1338_v35 = vshrl.u32 %v1115_v16, 16  ;;  %v3087_v37 = vld [vmem:[%s4163_s3 + $0x68] sm:$0xff]  }
 0x139   : > { %v2525_v31 = vcombine.low %v1547_v13, %v1550_v28  ;;  %v1554_v32 = vsel %vm3768_vm13, %v2516_v11, %v1553_v22  ;;  %v1555_v21 = vrot.slane %v1553_v22, 4  ;;  %v1326_v50 = vsel %vm3761_vm11, %v1321_v26, %v1325_v12  ;;  %v3089_v11 = vld [vmem:[%s4163_s3 + $0x70] sm:$0xff]  }
 0x13a   : > { %1405 = vrot.lane.b32.xlu0 %v2505_v25, %s3254_s16  ;;  %v1336_v62 = vsel %vm3761_vm11, %v1331_v27, %v1335_v53  ;;  %v1341_v51 = vshll.u32 %v1115_v16, 16  ;;  %v1347_v54 = vshll.u32 %v1116_v19, 16  ;;  %v1340_v56 = vrot.slane %v1338_v35, 4  ;;  %v3094_v53 = vld [vmem:[#allocation2 + $0x6c] sm:$0xff]   ;;  %v3091_v25 = vld [vmem:[%s4163_s3 + $0x78] sm:$0xff]  }
 0x13b   : > { %v2506_v52 = vcombine.low %v1326_v50, %v1336_v62  ;;  %v1557_v63 = vsel %vm3768_vm13, %v1555_v21, %v1556_v23  ;;  %v1351_v57 = vshrl.u32 %v1116_v19, 16  ;;  %v1357_v61 = vshll.u32 %v1117_v24, 16 }
 0x13c   : > { %v2526_v59 = vcombine.low %v1554_v32, %v1557_v63  ;;  %v1343_v34 = vrot.slane %v1341_v51, 5  ;;  %v1349_v0 = vrot.slane %v1347_v54, 5  ;;  %v2517_v3 = vrot.slane %v1459_v58, 9  ;;  %v3093_v58 = vld [vmem:[%s4163_s3 + $0x88] sm:$0xff]  }
 0x13d   : > { %1407 = vrot.lane.b32.xlu1 %v2506_v52, %s3254_s16  ;;  %v1353_v2 = vrot.slane %v1351_v57, 4  ;;  %v1560_v6 = vrot.slane %v1460_v29, 5  ;;  %v1563_v7 = vrot.slane %v1461_v14, 5  ;;  %vm1077_vm14 = vcmask 261120  }
 0x13e   : > { %1609 = vrot.lane.b32.xlu0 %v2525_v31, %s3253_s13  ;;  %v1344_v17 = vor.u32 %v1343_v34, %v1340_v56  ;;  %v1359_v8 = vrot.slane %v1357_v61, 5  ;;  %1078 = vst.msk [vmem:[#allocation3] sm:$0xff] %vm1077_vm14, %v3071_v38  ;;  %1079 = vst.msk [vmem:[#allocation3 + $0x8] sm:$0xff] %vm1077_vm14, %v3074_v39  ;;  %vm1421_vm15 = vcmask 523520   ;;  %vm1625_vm0 = vcmask 785920  }
 0x13f   : > { %v1354_v55 = vor.u32 %v1353_v2, %v1349_v0  ;;  %v1561_v9 = vsel %vm3768_vm13, %v2517_v3, %v1560_v6  ;;  %v1562_v18 = vrot.slane %v1560_v6, 4  ;;  %1080 = vst.msk [vmem:[#allocation3 + $0x10] sm:$0xff] %vm1077_vm14, %v3077_v40  ;;  %1081 = vst.msk [vmem:[#allocation3 + $0x18] sm:$0xff] %vm1077_vm14, %v3080_v41  ;;  %vm1706_vm1 = vcmask 785408  }
 0x140   : > { %1082 = vst.msk [vmem:[#allocation3 + $0x20] sm:$0xff] %vm1077_vm14, %v3083_v42  ;;  %1083 = vst.msk [vmem:[#allocation3 + $0x28] sm:$0xff] %vm1077_vm14, %v3085_v45  ;;  %v1345_v10 = vrot.slane %v1344_v17, 4  ;;  %vm2268_vm2 = vcmask 519168  }
 0x141   : > { %1084 = vst.msk [vmem:[#allocation3 + $0x30] sm:$0xff] %vm1077_vm14, %v3086_v47  ;;  %1085 = vst.msk [vmem:[#allocation3 + $0x38] sm:$0xff] %vm1077_vm14, %v3088_v48  ;;  %1611 = vrot.lane.b32.xlu1 %v2526_v59, %s3253_s13  ;;  %v1355_v15 = vrot.slane %v1354_v55, 4  ;;  %v1564_v60 = vsel %vm3768_vm13, %v1562_v18, %v1563_v7 }
 0x142   : > { %1086 = vst.msk [vmem:[#allocation3 + $0x40] sm:$0xff] %vm1077_vm14, %v3090_v5  ;;  %v1350_v12 = vsel %vm3761_vm11, %v1345_v10, %v1349_v0  ;;  %v2527_v46 = vcombine.low %v1561_v9, %v1564_v60  ;;  %1087 = vst.msk [vmem:[#allocation3 + $0x48] sm:$0xff] %vm1077_vm14, %v3094_v53 }
 0x143   : > { %v1360_v16 = vsel %vm3761_vm11, %v1355_v15, %v1359_v8 }
 0x144   : > { %v2507_v1 = vcombine.low %v1350_v12, %v1360_v16 }
 0x145   : > { %1613 = vrot.lane.b32.xlu1 %v2527_v46, %s3253_s13 }
 0x146   : > { %1409 = vrot.lane.b32.xlu0 %v2507_v1, %s3254_s16 }
 0x180   : > { %v1596_v13 = vpop.permute.xlu1 %1595 }
 0x181   : > { %v1392_v20 = vpop.permute.xlu0 %1391 }
 0x182   : > { %1422 = vst.msk [vmem:[#allocation3] sm:$0xff] %vm1421_vm15, %v1392_v20 }
 0x183   : > { %1626 = vst.msk [vmem:[#allocation3] sm:$0xff] %vm1625_vm0, %v1596_v13 }
 0x187   : > { %v1394_v49 = vpop.permute.xlu0 %1393 }
 0x188   : > { %1423 = vst.msk [vmem:[#allocation3 + $0x8] sm:$0xff] %vm1421_vm15, %v1394_v49 }
 0x18a   : > { %v1636_v33 = vld [vmem:[#allocation3] sm:$0xff] }
 0x18b   : > { %v1396_v19 = vpop.permute.xlu1 %1395  ;;  %v1598_v36 = vpop.permute.xlu0 %1597  ;;  %2791 = vmatprep.mubr.msk.bf16.mxu0 %vm1706_vm1, %v1636_v33 }
 0x18c   : > { %1424 = vst.msk [vmem:[#allocation3 + $0x10] sm:$0xff] %vm1421_vm15, %v1396_v19  ;;  %v4004_v19 = vld [vmem:[%s4164_s4] ss:$0 sm:$0xff] }
 0x18d   : > { %1627 = vst.msk [vmem:[#allocation3 + $0x8] sm:$0xff] %vm1625_vm0, %v1598_v36 }
 0x18f   : > { %v1600_v4 = vpop.permute.xlu1 %1599 }
 0x190   : > { %1628 = vst.msk [vmem:[#allocation3 + $0x10] sm:$0xff] %vm1625_vm0, %v1600_v4 }
 0x194   : > { %v1637_v43 = vld [vmem:[#allocation3 + $0x8] sm:$0xff]  ;;  %v1398_v44 = vpop.permute.xlu0 %1397 }
 0x195   : > { %2763 = vmatprep.mubr.msk.bf16.mxu1 %vm1706_vm1, %v1637_v43  ;;  %2792 = vmatmul.mubr.msk.bf16.vlgmr.msra.gmra.mrb[0].mxu0 %vm1706_vm1, %v1637_v43  ;;  %1425 = vst.msk [vmem:[#allocation3 + $0x18] sm:$0xff] %vm1421_vm15, %v1398_v44 }
 0x196   : > { %2808 = vmatpush3.bf16.msra.mxu0 %v3865_v30 }
 0x197   : > { %2809 = vmatprep.subr.bf16.mxu0 %v3087_v37  ;;  %v1400_v22 = vpop.permute.xlu1 %1399  ;;  %v3936_v23 = vld [vmem:[#allocation3 + $0x10] sm:$0xff] }
 0x198   : > { %1426 = vst.msk [vmem:[#allocation3 + $0x20] sm:$0xff] %vm1421_vm15, %v1400_v22  ;;  %2764 = vmatmul.mubr.msk.bf16.vlgmr.msra.gmra.mrb[0].mxu1 %vm1706_vm1, %v3936_v23  ;;  %2795 = vmatprep.mubr.msk.bf16.mxu0 %vm1706_vm1, %v3936_v23  ;;  %v1602_v24 = vpop.permute.xlu0 %1601 }
 0x199   : > { %2841 = vmatpush3.bf16.msra.mxu1 %v3865_v30  ;;  %1629 = vst.msk [vmem:[#allocation3 + $0x18] sm:$0xff] %vm1625_vm0, %v1602_v24  ;;  %v3092_v30 = vld [vmem:[%s4163_s3 + $0x80] sm:$0xff]  }
 0x19a   : > { %2810 = vmatpush3.bf16.msra.mxu0 %v3087_v37  ;;  %2836 = vmatprep.subr.bf16.mxu1 %v3087_v37 }
 0x19b   : > { %2811 = vmatprep.subr.bf16.mxu0 %v3089_v11  ;;  %v1604_v26 = vpop.permute.xlu1 %1603 }
 0x19c   : > { %1630 = vst.msk [vmem:[#allocation3 + $0x20] sm:$0xff] %vm1625_vm0, %v1604_v26 }
 0x19d   : > { %2842 = vmatpush3.bf16.msra.mxu1 %v3087_v37  ;;  %v4011_v37 = vld [vmem:[%s4193_s12] ss:$0 sm:$0xff]  ;;  %s3255_s12 = smov [#allocation7]  }
 0x19e   : > { %2812 = vmatpush3.bf16.msra.mxu0 %v3089_v11  ;;  %2837 = vmatprep.subr.bf16.mxu1 %v3089_v11  ;;  %s3129_s9 = sshll.u32 %s3255_s12, 4  ;;  %s3130_s9 = int_to_ptr.vmem [resolvable:$false] %s3129_s9 }
 0x19f   : > { %2813 = vmatprep.subr.bf16.mxu0 %v3091_v25  ;;  %s3131_s14 = scalar_lea.vmem %s3130_s9, 2048  ;;  %p3132_p9 = scmp.lt.s32.totalorder %s4089_s8, %s3130_s9 }
 0x1a0   : > { %v1402_v27 = vpop.permute.xlu0 %1401  ;;  %v1639_v28 = vld [vmem:[#allocation3 + $0x18] sm:$0xff]  ;;  %p3133_p3 = scmp.lt.s32.totalorder %s3131_s14, %s3125_s11 }
 0x1a1   : > { %1427 = vst.msk [vmem:[#allocation3 + $0x28] sm:$0xff] %vm1421_vm15, %v1402_v27  ;;  %2843 = vmatpush3.bf16.msra.mxu1 %v3089_v11  ;;  %2767 = vmatprep.mubr.msk.bf16.mxu1 %vm1706_vm1, %v1639_v28 }
 0x1a2   : > { %2814 = vmatpush3.bf16.msra.mxu0 %v3091_v25  ;;  %2838 = vmatprep.subr.bf16.mxu1 %v3091_v25  ;;  %p3134_p11 = por %p3133_p3, %p3132_p9 }
 0x1a3   : > { %2796 = vmatmul.mubr.msk.bf16.gmra.mrb[4].mxu0 %vm1706_vm1, %v1639_v28  ;;  %v1640_v29 = vld [vmem:[#allocation3 + $0x20] sm:$0xff]  ;;  %2815 = vmatprep.subr.bf16.mxu0 %v3092_v30 }
 0x1a4   : > { %v1404_v14 = vpop.permute.xlu1 %1403  ;;  %v1606_v31 = vpop.permute.xlu0 %1605  ;;  %2768 = vmatmul.mubr.msk.bf16.gmra.mrb[4].mxu1 %vm1706_vm1, %v1640_v29  ;;  %2799 = vmatprep.mubr.msk.bf16.mxu0 %vm1706_vm1, %v1640_v29  ;;  %p3135_p13 = pnand %p3134_p11, %p3128_p6 }
 0x1a5   : > { %1428 = vst.msk [vmem:[#allocation3 + $0x30] sm:$0xff] %vm1421_vm15, %v1404_v14  ;;  %2844 = vmatpush3.bf16.msra.mxu1 %v3091_v25 }
 0x1a6   : > { %1631 = vst.msk [vmem:[#allocation3 + $0x28] sm:$0xff] %vm1625_vm0, %v1606_v31  ;;  %2816 = vmatpush3.bf16.msra.mxu0 %v3092_v30  ;;  %2839 = vmatprep.subr.bf16.mxu1 %v3092_v30 }
 0x1a7   : > { %2817 = vmatprep.subr.bf16.mxu0 %v3093_v58 }
 0x1a8   : > { %v1608_v32 = vpop.permute.xlu1 %1607 }
 0x1a9   : > { %1632 = vst.msk [vmem:[#allocation3 + $0x30] sm:$0xff] %vm1625_vm0, %v1608_v32  ;;  %2845 = vmatpush3.bf16.msra.mxu1 %v3092_v30 }
 0x1aa   : > { %2818 = vmatpush3.bf16.msra.mxu0 %v3093_v58  ;;  %2840 = vmatprep.subr.bf16.mxu1 %v3093_v58 }
 0x1ac   : > { %v1406_v21 = vpop.permute.xlu0 %1405 }
 0x1ad   : > { %v1641_v35 = vld [vmem:[#allocation3 + $0x28] sm:$0xff]  ;;  %1429 = vst.msk [vmem:[#allocation3 + $0x38] sm:$0xff] %vm1421_vm15, %v1406_v21  ;;  %2846 = vmatpush3.bf16.msra.mxu1 %v3093_v58 }
 0x1ae   : > { %2771 = vmatprep.mubr.msk.bf16.mxu1 %vm1706_vm1, %v1641_v35  ;;  %2800 = vmatmul.mubr.msk.bf16.gmra.mrb[8].mxu0 %vm1706_vm1, %v1641_v35 }
 0x1af   : > { %v1408_v38 = vpop.permute.xlu1 %1407 }
 0x1b0   : > { %1430 = vst.msk [vmem:[#allocation3 + $0x40] sm:$0xff] %vm1421_vm15, %v1408_v38  ;;  %v1610_v39 = vpop.permute.xlu0 %1609  ;;  %v1642_v40 = vld [vmem:[#allocation3 + $0x30] sm:$0xff] }
 0x1b1   : > { %1633 = vst.msk [vmem:[#allocation3 + $0x38] sm:$0xff] %vm1625_vm0, %v1610_v39  ;;  %2772 = vmatmul.mubr.msk.bf16.gmra.mrb[8].mxu1 %vm1706_vm1, %v1642_v40  ;;  %2803 = vmatprep.mubr.msk.bf16.mxu0 %vm1706_vm1, %v1642_v40 }
 0x1b3   : > { %v1612_v41 = vpop.permute.xlu1 %1611 }
 0x1b4   : > { %1634 = vst.msk [vmem:[#allocation3 + $0x40] sm:$0xff] %vm1625_vm0, %v1612_v41 }
 0x1b7   : > { %v1614_v42 = vpop.permute.xlu1 %1613 }
 0x1b8   : > { %v1643_v45 = vld [vmem:[#allocation3 + $0x38] sm:$0xff]  ;;  %v1410_v47 = vpop.permute.xlu0 %1409 }
 0x1b9   : > { %2775 = vmatprep.mubr.msk.bf16.mxu1 %vm1706_vm1, %v1643_v45  ;;  %2804 = vmatmul.mubr.msk.bf16.gmra.mrb[12].mxu0 %vm1706_vm1, %v1643_v45  ;;  %1431 = vst.msk [vmem:[#allocation3 + $0x48] sm:$0xff] %vm1421_vm15, %v1410_v47 }
 0x1ba   : > { %2819 = vmatprep.mubr.msk.bf16.mxu0 %vm1706_vm1, %v3936_v23  ;;  %1635 = vst.msk [vmem:[#allocation3 + $0x48] sm:$0xff] %vm1625_vm0, %v1614_v42 }
 0x1bb   : > { %v1656_v48 = vld [vmem:[#allocation3 + $0x40] sm:$0xff] }
 0x1bc   : > { %2776 = vmatmul.mubr.msk.bf16.gmra.mrb[12].mxu1 %vm1706_vm1, %v1656_v48 }
 0x1bd   : > { %2827 = vmatprep.mubr.msk.bf16.mxu1 %vm1706_vm1, %v1642_v40 }
 0x1c1   : > { %2820 = vmatmul.mubr.msk.bf16.vlgmr.msra.gmra.mrb[0].mxu0 %vm1706_vm1, %v1639_v28  ;;  %v1971_v50 = vld [vmem:[#allocation3 + $0x48] sm:$0xff] }
 0x1c2   : > { %2823 = vmatprep.mubr.msk.bf16.mxu0 %vm1706_vm1, %v1640_v29 }
 0x1c4   : > { %2828 = vmatmul.mubr.msk.bf16.vlgmr.msra.gmra.mrb[16].mxu1 %vm1706_vm1, %v1643_v45 }
 0x1c5   : > { %2831 = vmatprep.mubr.msk.bf16.mxu1 %vm1706_vm1, %v1656_v48 }
 0x1c9   : > { %2824 = vmatmul.mubr.msk.bf16.gmra.mrb[4].mxu0 %vm1706_vm1, %v1641_v35 }
 0x1cc   : > { %2832 = vmatmul.mubr.msk.bf16.gmra.mrb[20].mxu1 %vm1706_vm1, %v1971_v50 }
 0x26b   : > { %v2765_v62 = vpop.f32.mrb[0].mxu1 }
 0x26c   : > { %v1765_v51 = vpop.f32.mrb[1].mxu1 }
 0x26d   : > { %v2766_v54 = vpop.f32.mrb[2].mxu1 }
 0x26e   : > { %v1768_v52 = vpop.f32.mrb[3].mxu1 }
 0x277   : > { %v3985_v63 = vpop.f32.mrb[4].mxu1 }
 0x278   : > { %v3987_v56 = vpop.f32.mrb[5].mxu1 }
 0x279   : > { %v3989_v57 = vpop.f32.mrb[6].mxu1 }
 0x27a   : > { %v3991_v59 = vpop.f32.mrb[7].mxu1 }
 0x281   : > { %v2801_v34 = vpop.f32.mrb[8].mxu0 }
 0x282   : > { %v1933_v0 = vpop.f32.mrb[9].mxu0 }
 0x283   : > { %v2802_v61 = vpop.f32.mrb[10].mxu0 }
 0x284   : > { %v1936_v5 = vpop.f32.mrb[11].mxu0  ;;  %v2773_v2 = vpop.f32.mrb[8].mxu1 }
 0x285   : > { %v1942_v3 = vadd.f32 %v2801_v34, %v2773_v2  ;;  %v1797_v6 = vpop.f32.mrb[9].mxu1 }
 0x286   : > { %v1934_v7 = vadd.f32 %v1933_v0, %v1797_v6  ;;  %v2774_v17 = vpop.f32.mrb[10].mxu1 }
 0x287   : > { %v1945_v55 = vadd.f32 %v2802_v61, %v2774_v17  ;;  %v1800_v8 = vpop.f32.mrb[11].mxu1 }
 0x288   : > { %v1937_v9 = vadd.f32 %v1936_v5, %v1800_v8 }
 0x28c   : > { %v2805_v18 = vpop.f32.mrb[12].mxu0 }
 0x28d   : > { %v1949_v10 = vpop.f32.mrb[13].mxu0 }
 0x28e   : > { %v2806_v15 = vpop.f32.mrb[14].mxu0 }
 0x28f   : > { %v2777_v60 = vpop.f32.mrb[12].mxu1  ;;  %v1952_v12 = vpop.f32.mrb[15].mxu0 }
 0x290   : > { %v3993_v46 = vadd.f32 %v2805_v18, %v2777_v60  ;;  %v1813_v16 = vpop.f32.mrb[13].mxu1 }
 0x291   : > { %v3995_v1 = vadd.f32 %v1949_v10, %v1813_v16  ;;  %v2778_v53 = vpop.f32.mrb[14].mxu1 }
 0x292   : > { %v3997_v13 = vadd.f32 %v2806_v15, %v2778_v53  ;;  %v1816_v20 = vpop.f32.mrb[15].mxu1 }
 0x293   : > { %v3999_v49 = vadd.f32 %v1952_v12, %v1816_v20 }
 0x294   : > { %v2821_v33 = vpop.f32.mrb[0].mxu0 }
 0x295   : > { %v2847_v36 = vadd.f32 %v2821_v33, %v2765_v62  ;;  %v2079_v4 = vpop.f32.mrb[1].mxu0 }
 0x296   : > { %v2848_v43 = vadd.f32 %v2079_v4, %v1765_v51  ;;  %v2822_v44 = vpop.f32.mrb[2].mxu0 }
 0x297   : > { %v2167_v11 = vadd.f32 %v2847_v36, %v4004_v19  ;;  %v2829_v22 = vpop.f32.mrb[16].mxu1  ;;  %v2849_v23 = vadd.f32 %v2822_v44, %v2766_v54  ;;  %v2082_v24 = vpop.f32.mrb[3].mxu0 }
 0x298   : > { %v2165_v25 = vadd.f32 %v2848_v43, %v4004_v19  ;;  %v2152_v26 = vadd.f32 %v2829_v22, %v1942_v3  ;;  %v2111_v30 = vpop.f32.mrb[17].mxu1  ;;  %v2850_v27 = vadd.f32 %v2082_v24, %v1768_v52 }
 0x299   : > { %v2190_v28 = vadd.f32 %v4011_v37, %v2167_v11  ;;  %v2168_v58 = vadd.f32 %v2849_v23, %v4004_v19  ;;  %v2150_v29 = vadd.f32 %v2111_v30, %v1934_v7  ;;  %v2830_v14 = vpop.f32.mrb[18].mxu1 }
 0x29a   : > { %v2188_v31 = vadd.f32 %v4011_v37, %v2165_v25  ;;  %v2175_v32 = vadd.f32 %v4004_v19, %v2152_v26  ;;  %v2166_v21 = vadd.f32 %v2850_v27, %v4004_v19  ;;  %v2153_v35 = vadd.f32 %v2830_v14, %v1945_v55  ;;  %v2114_v38 = vpop.f32.mrb[19].mxu1 }
 0x29b   : > { %v2646_v39 = vpack.c.bf16 %v2190_v28, %v2190_v28  ;;  %v2191_v40 = vadd.f32 %v4011_v37, %v2168_v58  ;;  %v2173_v41 = vadd.f32 %v4004_v19, %v2150_v29  ;;  %v2151_v42 = vadd.f32 %v2114_v38, %v1937_v9 }
 0x29c   : > { %v2644_v45 = vpack.c.bf16 %v2188_v31, %v2188_v31  ;;  %v2198_v47 = vadd.f32 %v4011_v37, %v2175_v32  ;;  %v2189_v48 = vadd.f32 %v4011_v37, %v2166_v21  ;;  %v2176_v50 = vadd.f32 %v4004_v19, %v2153_v35  ;;  %v2825_v62 = vpop.f32.mrb[4].mxu0 }
 0x29d   : > { %2271 = vst.msk [vmem:[%s3725_s29 + $0x8] sm:$0xf] %vm2268_vm2, %v2646_v39  ;;  %v2647_v51 = vpack.c.bf16 %v2191_v40, %v2191_v40  ;;  %v2196_v54 = vadd.f32 %v4011_v37, %v2173_v41  ;;  %v2174_v52 = vadd.f32 %v4004_v19, %v2151_v42  ;;  %v2851_v34 = vadd.f32 %v2825_v62, %v3985_v63  ;;  %v2095_v0 = vpop.f32.mrb[5].mxu0 }
 0x29e   : > { %2269 = vst.msk [vmem:[%s3725_s29] sm:$0xf] %vm2268_vm2, %v2644_v45  ;;  %v2654_v61 = vpack.c.bf16 %v2198_v47, %v2198_v47  ;;  %v2645_v5 = vpack.c.bf16 %v2189_v48, %v2189_v48  ;;  %v2199_v2 = vadd.f32 %v4011_v37, %v2176_v50  ;;  %v2852_v3 = vadd.f32 %v2095_v0, %v3987_v56  ;;  %v2826_v6 = vpop.f32.mrb[6].mxu0 }
 0x29f   : > { %2272 = vst.msk [vmem:[%s3725_s29 + $0xc] sm:$0xf] %vm2268_vm2, %v2647_v51  ;;  %v2652_v7 = vpack.c.bf16 %v2196_v54, %v2196_v54  ;;  %v2197_v17 = vadd.f32 %v4011_v37, %v2174_v52  ;;  %v2171_v63 = vadd.f32 %v2851_v34, %v4004_v19  ;;  %v2833_v55 = vpop.f32.mrb[20].mxu1  ;;  %v2853_v8 = vadd.f32 %v2826_v6, %v3989_v57  ;;  %v2098_v9 = vpop.f32.mrb[7].mxu0 }
 0x2a0   : > { %2279 = vst.msk [vmem:[%s3725_s29 + $0x28] sm:$0xf] %vm2268_vm2, %v2654_v61  ;;  %2270 = vst.msk [vmem:[%s3725_s29 + $0x4] sm:$0xf] %vm2268_vm2, %v2645_v5  ;;  %v2655_v56 = vpack.c.bf16 %v2199_v2, %v2199_v2  ;;  %v2169_v18 = vadd.f32 %v2852_v3, %v4004_v19  ;;  %v2156_v10 = vadd.f32 %v2833_v55, %v3993_v46  ;;  %v2127_v15 = vpop.f32.mrb[21].mxu1 }
 0x2a1   : > { %v2854_v60 = vadd.f32 %v2098_v9, %v3991_v59  ;;  %2277 = vst.msk [vmem:[%s3725_s29 + $0x20] sm:$0xf] %vm2268_vm2, %v2652_v7  ;;  %v2653_v57 = vpack.c.bf16 %v2197_v17, %v2197_v17  ;;  %v2194_v12 = vadd.f32 %v4011_v37, %v2171_v63  ;;  %v2172_v16 = vadd.f32 %v2853_v8, %v4004_v19  ;;  %v2834_v20 = vpop.f32.mrb[22].mxu1 }
 0x2a2   : > { %v2154_v53 = vadd.f32 %v2127_v15, %v3995_v1  ;;  %2280 = vst.msk [vmem:[%s3725_s29 + $0x2c] sm:$0xf] %vm2268_vm2, %v2655_v56  ;;  %v2192_v33 = vadd.f32 %v4011_v37, %v2169_v18  ;;  %v2179_v46 = vadd.f32 %v4004_v19, %v2156_v10  ;;  %v2157_v59 = vadd.f32 %v2834_v20, %v3997_v13  ;;  %v2130_v4 = vpop.f32.mrb[23].mxu1 }
 0x2a3   : > { %v2170_v36 = vadd.f32 %v2854_v60, %v4004_v19  ;;  %2278 = vst.msk [vmem:[%s3725_s29 + $0x24] sm:$0xf] %vm2268_vm2, %v2653_v57  ;;  %v2650_v43 = vpack.c.bf16 %v2194_v12, %v2194_v12  ;;  %v2195_v1 = vadd.f32 %v4011_v37, %v2172_v16  ;;  %v2155_v11 = vadd.f32 %v2130_v4, %v3999_v49 }
 0x2a4   : > { %v2177_v44 = vadd.f32 %v4004_v19, %v2154_v53  ;;  %v2648_v22 = vpack.c.bf16 %v2192_v33, %v2192_v33  ;;  %v2202_v23 = vadd.f32 %v4011_v37, %v2179_v46  ;;  %v2180_v24 = vadd.f32 %v4004_v19, %v2157_v59 }
 0x2a5   : > { %v2193_v13 = vadd.f32 %v4011_v37, %v2170_v36  ;;  %2275 = vst.msk [vmem:[%s3725_s29 + $0x18] sm:$0xf] %vm2268_vm2, %v2650_v43  ;;  %v2651_v25 = vpack.c.bf16 %v2195_v1, %v2195_v1  ;;  %v2178_v30 = vadd.f32 %v4004_v19, %v2155_v11 }
 0x2a6   : > { %v2200_v26 = vadd.f32 %v4011_v37, %v2177_v44  ;;  %2273 = vst.msk [vmem:[%s3725_s29 + $0x10] sm:$0xf] %vm2268_vm2, %v2648_v22  ;;  %v2658_v49 = vpack.c.bf16 %v2202_v23, %v2202_v23  ;;  %v2203_v28 = vadd.f32 %v4011_v37, %v2180_v24 }
 0x2a7   : > { %v2649_v27 = vpack.c.bf16 %v2193_v13, %v2193_v13  ;;  %2276 = vst.msk [vmem:[%s3725_s29 + $0x1c] sm:$0xf] %vm2268_vm2, %v2651_v25  ;;  %v2201_v29 = vadd.f32 %v4011_v37, %v2178_v30 }
 0x2a8   : > { %v2656_v58 = vpack.c.bf16 %v2200_v26, %v2200_v26  ;;  %2283 = vst.msk [vmem:[%s3725_s29 + $0x38] sm:$0xf] %vm2268_vm2, %v2658_v49  ;;  %v2659_v19 = vpack.c.bf16 %v2203_v28, %v2203_v28 }
 0x2a9   : > { %2274 = vst.msk [vmem:[%s3725_s29 + $0x14] sm:$0xf] %vm2268_vm2, %v2649_v27  ;;  %v2657_v14 = vpack.c.bf16 %v2201_v29, %v2201_v29 }
 0x2aa   : > { %2281 = vst.msk [vmem:[%s3725_s29 + $0x30] sm:$0xf] %vm2268_vm2, %v2656_v58  ;;  %2284 = vst.msk [vmem:[%s3725_s29 + $0x3c] sm:$0xf] %vm2268_vm2, %v2659_v19 }
 0x2ab   : > { %2282 = vst.msk [vmem:[%s3725_s29 + $0x34] sm:$0xf] %vm2268_vm2, %v2657_v14 }
 0x2ac   : > { %3138 = shalt.err (!%p3135_p13)
}
 0x2ad   : > { %s3139_s29 = scalar_lea.hbm %s4085_s30, 1024  ;;  %s3143_s17 = scalar_lea.hbm %s4166_s6, 4096 }
 0x2ae   : > { %p3140_p5 = scmp.ne.s32.totalorder %s4085_s30, %s3139_s29  ;;  %p3144_p12 = scmp.lt.u32.totalorder %s4085_s30, %s4166_s6 }
 0x2af   : > { %p3145_p7 = scmp.lt.u32.totalorder %s3143_s17, %s3139_s29  ;;  %p3147_p4 = scmp.lt.u32.totalorder %s3139_s29, %s4085_s30 }
 0x2b0   : > { %p3141_p8 = pnand %p3140_p5, %p4195_p0 }
 0x2b1   : > { %p3146_p2 = por %p3145_p7, %p3144_p12 }
 0x2b2   : > { %p3142_p10 = pneg %p3141_p8 }
 0x2b3   : > { %p3148_p1 = por %p3147_p4, %p3146_p2 }
 0x2b5   : > { %p3149_p6 = pnand %p3148_p1, %p3142_p10 }
 0x2b7   : > { %3152 = shalt.err (!%p3149_p6)
}
 0x2b8   : > { %s3256_s11 = smov 4  }
 0x2b9   : > { %2881 = dma.vmem_to_hbm [thread:$0]  (%p4195_p0), %s4089_s8, 1024, %s4085_s30, %s4097_s18, %s3253_s13, %s3253_s13, %s3256_s11  }
 0x2ba PF: > { %p2892_p9 = scmp.ge.s32.totalorder %s3247_s7, 2  ;;  %s2317_s12 = sand.u32 1, %s3207_s21  }
 0x2bb   : > { %p4196_p3 = scmp.ne.s32.totalorder %s4180_s10, 0  ;;  %s2318_s9 = scalar_lea.sflag [#allocation6], %s2317_s12 }
 0x2bd   : > { %p2888_p11 = pnand %p2892_p9, %p4196_p3 }
 0x2bf   : > { %3202 = dma.done.wait (!%p2888_p11), %s2318_s9, 1024  }
 0x2c0   : > { %3204 = vsyncadd (!%p2888_p11), %s2318_s9, 4294966272  ;;  %s22_s7 = sadd.s32 1, %s3247_s7   ;;  %s4197_s27 = sld [smem:[#allocation10_spill]] }
 0x2c1   : > { %p19_p13 = scmp.ge.s32.totalorder %s22_s7, 6   ;;  %s4198_s28 = sld [smem:[#allocation11_spill]] }
 0x2c2   : > { %s4199_s29 = sld [smem:[#allocation12_spill]]  ;;  %s4200_s30 = sld [smem:[#allocation13_spill]] }
 0x2c3   : > { %s4201_s21 = smov %s3211_s22  ;;  %s4202_s22 = smov %s3215_s23 }
 0x2c4   : > { %s4203_s23 = smov %s3382_s24  ;;  %s4204_s24 = smov %s3223_s25 }
 0x2c5   : > { %s4205_s25 = smov %s3227_s26  ;;  %s4206_s26 = smov %s3379_s20 }
 0x2c6   :  { %21 = sbr.rel (!%p19_p13) target bundleno = 9 (0x9), region = 113 }
 0x2cd   :  { %2323 = vsyncpa [#allocation5], 1 }
 0x2ce   :  { %2325 = vsyncpa [#allocation5 + $0x1], 1 }
 0x2cf   :  { %2326 = vsyncpa [#allocation6], 1 }
 0x2d0   :  { %2328 = vsyncpa [#allocation6 + $0x1], 1 }

// kernel: tpu_custom_call.1
= control target key start
LH: loop header
LB: loop body
LE: loop exit
PB: predicated region body
PF: predicated region fallthrough
CT: control target
= control target key end

     0   :  { %11 = vsyncpa [#allocation5], 0  ;;  %s4160_s0 = inlined_call_operand.hbm [shape: bf16[2,16,16,32], index: 0, kind: input, shape index: {}]   ;;  %s4161_s1 = inlined_call_operand.vmem [shape: f32[2,1,32], index: 1, kind: input, shape index: {}]   ;;  %s4162_s2 = inlined_call_operand.vmem [shape: f32[2,1,32], index: 2, kind: input, shape index: {}]   ;;  %s4163_s3 = inlined_call_operand.vmem [shape: bf16[3,96,64], index: 3, kind: input, shape index: {}]   ;;  %s4164_s4 = inlined_call_operand.vmem [shape: f32[1,64], index: 4, kind: input, shape index: {}]   ;;  %s4165_s5 = inlined_call_operand.vmem [shape: f32[2,1,64], index: 5, kind: input, shape index: {}]   ;;  %s4166_s6 = inlined_call_operand.hbm [shape: bf16[2,16,16,64], index: 6, kind: output, shape index: {}]  }
   0x1   :  { %13 = vsyncpa [#allocation5 + $0x1], 0 }
   0x2   :  { %14 = vsyncpa [#allocation6], 0 }
   0x3   :  { %16 = vsyncpa [#allocation6 + $0x1], 0  ;;  %s3292_s21 = smov 0   ;;  %s3294_s22 = smov 0  }
   0x4   :  { %s3296_s23 = smov 0   ;;  %s3298_s24 = smov 0  }
   0x5   :  { %s3300_s25 = smov 0   ;;  %s3302_s26 = smov 0  }
   0x6   :  { %s3304_s27 = smov 0   ;;  %s3306_s28 = smov 0  }
   0x7   :  { %s3308_s29 = smov 0   ;;  %s3310_s30 = smov 0  }
   0x8   :  { %s3312_s7 = smov 0  }
   0x9 LB: > { %4173 = sst [smem:[#allocation10_spill]] %s3239_s29  ;;  %s2424_s8 = sadd.s32 4294967295, %s3247_s7   ;;  %s3247_s7 = sphi %s3312_s7, %s22_s7   ;;  %s3243_s30 = sphi %s3310_s30, %s4200_s30   ;;  %s3239_s29 = sphi %s3308_s29, %s4199_s29   ;;  %s3235_s28 = sphi %s3306_s28, %s4198_s28   ;;  %s3231_s27 = sphi %s3304_s27, %s4197_s27   ;;  %s3227_s26 = sphi %s3302_s26, %s4206_s26   ;;  %s3223_s25 = sphi %s3300_s25, %s4205_s25   ;;  %s3219_s24 = sphi %s3298_s24, %s4204_s24   ;;  %s3215_s23 = sphi %s3296_s23, %s4203_s23   ;;  %s3211_s22 = sphi %s3294_s22, %s4202_s22   ;;  %s3207_s21 = sphi %s3292_s21, %s4201_s21  }
   0xa   : > { %4174 = sst [smem:[#allocation11_spill]] %s3243_s30  ;;  %s2425_s9 = sadd.s32 4294967294, %s3247_s7  }
   0xb   : > { %s31_s10 = sadd.s32 1, %s3239_s29  ;;  %s34_s11 = sadd.s32 1, %s3243_s30 }
   0xc   : > { %p32_p0 = scmp.ge.s32.totalorder %s31_s10, 2  ;;  %s41_s12 = sadd.s32 1, %s3227_s26 }
   0xd   : > { %p48_p1 = scmp.ne.s32.totalorder %s3227_s26, %s3223_s25  ;;  %p49_p2 = scmp.eq.s32.totalorder %s3247_s7, 0 }
   0xe   : > { %s4208_s10 = smov (%p32_p0, %s31_s10), 0  ;;  %s4210_s11 = smov (!%p32_p0, %s34_s11), %s3243_s30 }
   0xf   : > { %4175 = sst [smem:[#allocation12_spill]] %s4208_s10  ;;  %p3356_p3 = por %p49_p2, %p48_p1 }
  0x10   : > { %p54_p4 = scmp.ne.s32.totalorder %s3223_s25, %s3219_s24  ;;  %p36_p5 = scmp.ge.s32.totalorder %s4210_s11, 2 }
  0x11   : > { %p55_p6 = scmp.eq.s32.totalorder %s2424_s8, 0  ;;  %s185_s14 = ssub.s32 %s3239_s29, %s4208_s10 }
  0x12   : > { %s189_s15 = sadd.s32 1, %s3215_s23  ;;  %s4212_s11 = smov (%p36_p5, %s4210_s11), 0 }
  0x13   : > { %4177 = sst [smem:[#allocation13_spill]] %s4212_s11  ;;  %p3366_p7 = por %p55_p6, %p54_p4 }
  0x14   : > { %p199_p8 = scmp.ne.s32.totalorder %s3215_s23, %s3211_s22  ;;  %s38_s17 = ssub.s32 %s3243_s30, %s4212_s11 }
  0x15   : > { %p200_p9 = scmp.eq.s32.totalorder %s2424_s8, 3  ;;  %p39_p10 = scmp.eq.s32.totalorder %s38_s17, 0 }
  0x16   : > { %s186_s18 = sor.u32 %s185_s14, %s38_s17  ;;  %p205_p13 = scmp.ne.s32.totalorder %s3211_s22, %s3207_s21 }
  0x17   : > { %p187_p11 = scmp.eq.s32.totalorder %s186_s18, 0  ;;  %p3374_p12 = por %p200_p9, %p199_p8 }
  0x18   : > { %s3379_s20 = scalar_select %p39_p10, %s3227_s26, %s41_s12  }
  0x19   : > { %s4179_s19 = scalar_select %p3374_p12, 1, 0 }
  0x1a   : > { %s3382_s24 = scalar_select %p187_p11, %s3215_s23, %s189_s15  }
  0x1b   : > { %p206_p0 = scmp.eq.s32.totalorder %s2425_s9, 3  ;;  %p2891_p1 = scmp.lt.s32.totalorder %s3247_s7, 4 }
  0x1c   : > { %s232_s8 = sand.u32 1, %s3227_s26   ;;  %s2619_s17 = sshll.u32 %s3243_s30, 11 }
  0x1d   : > { %p3387_p2 = por %p206_p0, %p205_p13  ;;  %s2428_s14 = sshll.u32 %s232_s8, 7 }
  0x1e   : > { %s3396_s29 = scalar_lea.hbm %s4160_s0, %s2619_s17  ;;  %s236_s12 = scalar_lea.vmem [#allocation4], %s2428_s14 }
  0x1f   : > { %s4180_s10 = scalar_select %p3387_p2, 1, 0 }
  0x20   : > { %s243_s15 = sshll.u32 %s236_s12, 4  ;;  %p3402_p4 = pnand %p2891_p1, %p3356_p3  ;;  %s3398_s15 = int_to_ptr.vmem [resolvable:$true] %s243_s15 }
  0x21   : > { %s3407_s30 = scalar_lea.sflag [#allocation5], %s232_s8  ;;  %s3095_s11 = scalar_lea.hbm %s3396_s29, 2048 }
  0x22   : > { %p3096_p6 = scmp.ne.s32.totalorder %s3396_s29, %s3095_s11  ;;  %p3097_p8 = pneg %p3402_p4 }
  0x23   : > { %s3100_s13 = scalar_lea.hbm %s4160_s0, 4096  ;;  %p3101_p3 = scmp.lt.u32.totalorder %s3396_s29, %s4160_s0 }
  0x24   : > { %p3098_p9 = pnand %p3097_p8, %p3096_p6  ;;  %p3102_p11 = scmp.lt.u32.totalorder %s3100_s13, %s3095_s11 }
  0x25   : > { %p3104_p0 = scmp.lt.u32.totalorder %s3095_s11, %s3396_s29 }
  0x26   : > { %p3099_p10 = pneg %p3098_p9  ;;  %p3103_p13 = por %p3102_p11, %p3101_p3 }
  0x28   : > { %p3105_p1 = por %p3104_p0, %p3103_p13 }
  0x2a   : > { %p3106_p5 = pnand %p3105_p1, %p3099_p10 }
  0x2c   : > { %3109 = shalt.err (!%p3106_p5)
}
  0x2d   : > { %s3110_s8 = scalar_lea.vmem %s3398_s15, 2048  ;;  %s3249_s14 = smov [#allocation4]  }
  0x2e   : > { %p3111_p6 = scmp.ne.s32.totalorder %s3398_s15, %s3110_s8  ;;  %s3115_s17 = sshll.u32 %s3249_s14, 4  ;;  %s3116_s17 = int_to_ptr.vmem [resolvable:$false] %s3115_s17 }
  0x2f   : > { %s3117_s18 = scalar_lea.vmem %s3116_s17, 4096  ;;  %p3118_p12 = scmp.lt.s32.totalorder %s3398_s15, %s3116_s17 }
  0x30   : > { %p3113_p9 = pnand %p3111_p6, %p3097_p8  ;;  %p3119_p3 = scmp.lt.s32.totalorder %s3117_s18, %s3110_s8 }
  0x32   : > { %p3114_p2 = pneg %p3113_p9  ;;  %p3120_p11 = por %p3119_p3, %p3118_p12 }
  0x34   : > { %p3121_p13 = pnand %p3120_p11, %p3114_p2 }
  0x36   : > { %3124 = shalt.err (!%p3121_p13)
}
  0x37   : > { %s3250_s11 = smov 64   ;;  %s3251_s13 = smov 4  }
  0x38   : > { %2886 = dma.hbm_to_vmem [thread:$0]  (!%p3402_p4), %s3396_s29, 2048, %s3398_s15, %s3407_s30, %s3250_s11, %s3250_s11, %s3251_s13  }
  0x39   : > { %p269_p5 = scmp.lt.s32.totalorder %s3247_s7, 5  ;;  %p4182_p8 = scmp.ge.s32.totalorder %s3247_s7, 1 }
  0x3b   : > { %p270_p10 = pnand %p4182_p8, %p269_p5 }
  0x3c   : > { %s275_s12 = sand.u32 (!%p270_p10), 1, %s3223_s25  }
  0x3d   : > { %273 = sbr.rel (%p270_p10) target bundleno = 698 (0x2ba), region = 44  ;;  %s3439_s8 = sshll.u32 (!%p270_p10), %s275_s12, 7 }
  0x3e   : > { %s276_s14 = scalar_lea.sflag (!%p270_p10), [#allocation5], %s275_s12  ;;  %s279_s17 = scalar_lea.vmem (!%p270_p10), [#allocation4], %s3439_s8 }
  0x44   : > { %3198 = dma.done.wait (%p3366_p7), %s276_s14, 2048  }
  0x45   : > { %3200 = vsyncadd (%p3366_p7), %s276_s14, 4294965248  ;;  %s4172_s29 = sand.u32 1, %s3211_s22   ;;  %s2434_s30 = sshll.u32 %s3231_s27, 3  ;;  %vm364_vm0 = vcmask 257024   ;;  %vm331_vm1 = vcmask 253952   ;;  %v3252_v0 = vmov 0  }
  0x46   : > { %s3450_s15 = sshll.u32 %s4172_s29, 6  ;;  %p317_p12 = scmp.lt.s32.totalorder %s3235_s28, 1  ;;  %vm332_vm2 = vsmask.f32 256  ;;  %401 = vst.msk [vmem:[#allocation2 + $0x4] sm:$0xf] %vm364_vm0, %v3252_v0 }
  0x47   : > { %409 = vst.msk [vmem:[#allocation2 + $0x70] sm:$0xf] %vm364_vm0, %v3252_v0  ;;  %s2621_s16 = sshll.u32 %s3231_s27, 6  ;;  %vm3460_vm3 = vmand %vm331_vm1, %vm332_vm2  ;;  %vm365_vm4 = vsmask.f32 7938  ;;  %s3725_s29 = scalar_lea.vmem [#allocation7], %s3450_s15 }
  0x48   : > { %s3457_s9 = scalar_select %p317_p12, %s3235_s28, 1  ;;  %v334_v2 = vld [vmem:[#allocation2] sm:$0x1]  ;;  %v337_v3 = vld [vmem:[#allocation2 + $0xc] sm:$0x1]  ;;  %vm3492_vm5 = vmand %vm364_vm0, %vm365_vm4 }
  0x49   : > { %s3466_s18 = scalar_lea.vmem %s279_s17, %s2621_s16 [#allocation4]  ;;  %v340_v4 = vld [vmem:[#allocation2 + $0x18] sm:$0x1]  ;;  %v335_v5 = vsel %vm3460_vm3, 0, %v334_v2  ;;  %v338_v6 = vsel %vm3460_vm3, 0, %v337_v3  ;;  %v343_v8 = vld [vmem:[#allocation2 + $0x24] sm:$0x1] }
  0x4a   : > { %v341_v7 = vsel %vm3460_vm3, 0, %v340_v4  ;;  %v3479_v9 = vld [vmem:[%s3466_s18] sm:$0xff]   ;;  %336 = vst [vmem:[#allocation2] sm:$0x1] %v335_v5  ;;  %339 = vst [vmem:[#allocation2 + $0xc] sm:$0x1] %v338_v6  ;;  %s319_s11 = scalar_lea.vmem %s4161_s1, %s3457_s9  ;;  %s322_s12 = scalar_lea.vmem %s4162_s2, %s3457_s9 }
  0x4b   : > { %342 = vst [vmem:[#allocation2 + $0x18] sm:$0x1] %v341_v7  ;;  %v344_v10 = vsel %vm3460_vm3, 0, %v343_v8  ;;  %v346_v11 = vld [vmem:[#allocation2 + $0x30] sm:$0x1]  ;;  %v3484_v13 = vld [vmem:[%s3466_s18 + $0x8] sm:$0xff]   ;;  %v2663_v31 = vunpack.c.l.bf16 %v3479_v9  ;;  %v2664_v36 = vunpack.c.h.bf16 %v3479_v9 }
  0x4c   : > { %v349_v12 = vld [vmem:[#allocation2 + $0x3c] sm:$0x1]  ;;  %345 = vst [vmem:[#allocation2 + $0x24] sm:$0x1] %v344_v10  ;;  %v347_v14 = vsel %vm3460_vm3, 0, %v346_v11  ;;  %v2667_v37 = vunpack.c.l.bf16 %v3484_v13  ;;  %v2668_v42 = vunpack.c.h.bf16 %v3484_v13  ;;  %v2702_v56 = vld [vmem:[%s3466_s18 + $0x10] sm:$0xff]  }
  0x4d   : > { %v350_v15 = vsel %vm3460_vm3, 0, %v349_v12  ;;  %v352_v16 = vld [vmem:[#allocation2 + $0x48] sm:$0x1]  ;;  %v355_v17 = vld [vmem:[#allocation2 + $0x54] sm:$0x1]  ;;  %v2671_v58 = vunpack.c.l.bf16 %v2702_v56  ;;  %v2672_v59 = vunpack.c.h.bf16 %v2702_v56  ;;  %v2703_v60 = vld [vmem:[%s3466_s18 + $0x18] sm:$0xff]  }
  0x4e   : > { %348 = vst [vmem:[#allocation2 + $0x30] sm:$0x1] %v347_v14  ;;  %351 = vst [vmem:[#allocation2 + $0x3c] sm:$0x1] %v350_v15  ;;  %v353_v19 = vsel %vm3460_vm3, 0, %v352_v16  ;;  %v356_v20 = vsel %vm3460_vm3, 0, %v355_v17  ;;  %v2675_v2 = vunpack.c.l.bf16 %v2703_v60 }
  0x4f   : > { %v358_v21 = vld [vmem:[#allocation2 + $0x60] sm:$0x1]  ;;  %v361_v22 = vld [vmem:[#allocation2 + $0x6c] sm:$0x1]  ;;  %354 = vst [vmem:[#allocation2 + $0x48] sm:$0x1] %v353_v19  ;;  %v2676_v19 = vunpack.c.h.bf16 %v2703_v60 }
  0x50   : > { %357 = vst [vmem:[#allocation2 + $0x54] sm:$0x1] %v356_v20  ;;  %v359_v23 = vsel %vm3460_vm3, 0, %v358_v21  ;;  %v362_v24 = vsel %vm3460_vm3, 0, %v361_v22  ;;  %v367_v25 = vld [vmem:[#allocation2 + $0x8] sm:$0xf] }
  0x51   : > { %v370_v26 = vld [vmem:[#allocation2 + $0x14] sm:$0xf]  ;;  %360 = vst [vmem:[#allocation2 + $0x60] sm:$0x1] %v359_v23  ;;  %363 = vst [vmem:[#allocation2 + $0x6c] sm:$0x1] %v362_v24 }
  0x52   : > { %v368_v27 = vsel %vm3492_vm5, 0, %v367_v25  ;;  %v371_v28 = vsel %vm3492_vm5, 0, %v370_v26  ;;  %v373_v29 = vld [vmem:[#allocation2 + $0x20] sm:$0xf]  ;;  %v376_v30 = vld [vmem:[#allocation2 + $0x2c] sm:$0xf] }
  0x53   : > { %369 = vst [vmem:[#allocation2 + $0x8] sm:$0xf] %v368_v27  ;;  %372 = vst [vmem:[#allocation2 + $0x14] sm:$0xf] %v371_v28  ;;  %v374_v32 = vsel %vm3492_vm5, 0, %v373_v29  ;;  %v377_v33 = vsel %vm3492_vm5, 0, %v376_v30 }
  0x54   : > { %v379_v34 = vld [vmem:[#allocation2 + $0x38] sm:$0xf]  ;;  %v382_v35 = vld [vmem:[#allocation2 + $0x44] sm:$0xf]  ;;  %375 = vst [vmem:[#allocation2 + $0x20] sm:$0xf] %v374_v32 }
  0x55   : > { %378 = vst [vmem:[#allocation2 + $0x2c] sm:$0xf] %v377_v33  ;;  %v380_v38 = vsel %vm3492_vm5, 0, %v379_v34  ;;  %v383_v39 = vsel %vm3492_vm5, 0, %v382_v35  ;;  %v385_v40 = vld [vmem:[#allocation2 + $0x50] sm:$0xf] }
  0x56   : > { %v388_v41 = vld [vmem:[#allocation2 + $0x5c] sm:$0xf]  ;;  %381 = vst [vmem:[#allocation2 + $0x38] sm:$0xf] %v380_v38  ;;  %384 = vst [vmem:[#allocation2 + $0x44] sm:$0xf] %v383_v39 }
  0x57   : > { %v386_v43 = vsel %vm3492_vm5, 0, %v385_v40  ;;  %v389_v44 = vsel %vm3492_vm5, 0, %v388_v41  ;;  %v391_v45 = vld [vmem:[#allocation2 + $0x68] sm:$0xf]  ;;  %v394_v46 = vld [vmem:[#allocation2 + $0x74] sm:$0xf] }
  0x58   : > { %387 = vst [vmem:[#allocation2 + $0x50] sm:$0xf] %v386_v43  ;;  %390 = vst [vmem:[#allocation2 + $0x5c] sm:$0xf] %v389_v44  ;;  %v392_v47 = vsel %vm3492_vm5, 0, %v391_v45  ;;  %v395_v48 = vsel %vm3492_vm5, 0, %v394_v46 }
  0x59   : > { %v397_v49 = vld [vmem:[#allocation2] sm:$0xf]  ;;  %393 = vst [vmem:[#allocation2 + $0x68] sm:$0xf] %v392_v47  ;;  %396 = vst [vmem:[#allocation2 + $0x74] sm:$0xf] %v395_v48 }
  0x5a   : > { %v3536_v50 = vld [vmem:[%s319_s11] ss:$0 sm:$0xff]  ;;  %v398_v51 = vsel %vm3492_vm5, 0, %v397_v49  ;;  %v406_v61 = vld [vmem:[#allocation2 + $0x6c] sm:$0xf]  ;;  %v2706_v22 = vld [vmem:[%s3466_s18 + $0x30] sm:$0xff]  }
  0x5b   : > { %v3540_v52 = vld [vmem:[%s322_s12] ss:$0 sm:$0xff]  ;;  %v454_v53 = vmul.f32 %v2663_v31, %v3536_v50  ;;  %v455_v54 = vmul.f32 %v2664_v36, %v3536_v50  ;;  %v456_v55 = vmul.f32 %v2667_v37, %v3536_v50  ;;  %399 = vst [vmem:[#allocation2] sm:$0xf] %v398_v51  ;;  %v457_v57 = vmul.f32 %v2668_v42, %v3536_v50  ;;  %v402_v3 = vld [vmem:[#allocation2 + $0x8] sm:$0x1] }
  0x5c   : > { %v407_v4 = vsel %vm3492_vm5, 0, %v406_v61  ;;  %v458_v6 = vmul.f32 %v2671_v58, %v3536_v50  ;;  %v459_v7 = vmul.f32 %v2672_v59, %v3536_v50  ;;  %v2704_v8 = vld [vmem:[%s3466_s18 + $0x20] sm:$0xff]   ;;  %v403_v9 = vsel %vm3460_vm3, 0, %v402_v3  ;;  %v2705_v21 = vld [vmem:[%s3466_s18 + $0x28] sm:$0xff]   ;;  %v2707_v46 = vld [vmem:[%s3466_s18 + $0x38] sm:$0xff]   ;;  %p2471_p7 = scmp.le.s32.totalorder %s3231_s27, 0 }
  0x5d   : > { %v3549_v62 = vadd.f32 %v3540_v52, %v454_v53  ;;  %v3552_v63 = vadd.f32 %v3540_v52, %v455_v54  ;;  %v3555_v0 = vadd.f32 %v3540_v52, %v456_v55  ;;  %v3560_v5 = vadd.f32 %v3540_v52, %v457_v57  ;;  %408 = vst [vmem:[#allocation2 + $0x6c] sm:$0xf] %v407_v4  ;;  %s2472_s12 = sadd.s32 (!%p2471_p7), 4294967295, %s2434_s30 }
  0x5e   : > { %v460_v12 = vmul.f32 %v2675_v2, %v3536_v50  ;;  %404 = vst [vmem:[#allocation2 + $0x8] sm:$0x1] %v403_v9  ;;  %v3573_v15 = vadd.f32 %v3540_v52, %v458_v6  ;;  %v3576_v16 = vadd.f32 %v3540_v52, %v459_v7  ;;  %v2679_v20 = vunpack.c.l.bf16 %v2704_v8  ;;  %s2638_s14 = sshll.u32 (!%p2471_p7), %s2472_s12, 3 }
  0x5f   : > { %v2439_v10 = vmul.f32 -1.442695, %v3549_v62  ;;  %v2440_v11 = vmul.f32 -1.442695, %v3552_v63  ;;  %v2441_v13 = vmul.f32 -1.442695, %v3555_v0  ;;  %v2680_v26 = vunpack.c.h.bf16 %v2704_v8  ;;  %s878_s16 = scalar_lea.vmem (!%p2471_p7), %s279_s17, %s2638_s14 [#allocation4] }
  0x60   : > { %v2442_v14 = vmul.f32 -1.442695, %v3560_v5  ;;  %v3579_v17 = vadd.f32 %v3540_v52, %v460_v12  ;;  %v410_v23 = vld [vmem:[#allocation2 + $0x74] sm:$0x1]  ;;  %v2443_v24 = vmul.f32 -1.442695, %v3573_v15  ;;  %v461_v29 = vmul.f32 %v2676_v19, %v3536_v50 }
  0x61   : > { %2987 = vpow2.f32 %v2439_v10  ;;  %v2444_v25 = vmul.f32 -1.442695, %v3576_v16  ;;  %v411_v27 = vsel %vm3460_vm3, 0, %v410_v23  ;;  %v462_v30 = vmul.f32 %v2679_v20, %v3536_v50 }
  0x62   : > { %2989 = vpow2.f32 %v2440_v11  ;;  %v2445_v28 = vmul.f32 -1.442695, %v3579_v17  ;;  %412 = vst [vmem:[#allocation2 + $0x74] sm:$0x1] %v411_v27  ;;  %v463_v31 = vmul.f32 %v2680_v26, %v3536_v50  ;;  %v2683_v32 = vunpack.c.l.bf16 %v2705_v21 }
  0x63   : > { %2991 = vpow2.f32 %v2441_v13  ;;  %v3592_v33 = vadd.f32 %v3540_v52, %v461_v29  ;;  %v2684_v34 = vunpack.c.h.bf16 %v2705_v21  ;;  %v2687_v35 = vunpack.c.l.bf16 %v2706_v22 }
  0x64   : > { %2993 = vpow2.f32 %v2442_v14  ;;  %v3595_v36 = vadd.f32 %v3540_v52, %v462_v30  ;;  %v3598_v37 = vadd.f32 %v3540_v52, %v463_v31  ;;  %v464_v38 = vmul.f32 %v2683_v32, %v3536_v50 }
  0x65   : > { %2995 = vpow2.f32 %v2443_v24  ;;  %v2446_v39 = vmul.f32 -1.442695, %v3592_v33  ;;  %v465_v40 = vmul.f32 %v2684_v34, %v3536_v50  ;;  %v466_v45 = vmul.f32 %v2687_v35, %v3536_v50 }
  0x66   : > { %2997 = vpow2.f32 %v2444_v25  ;;  %v2447_v41 = vmul.f32 -1.442695, %v3595_v36  ;;  %v2448_v42 = vmul.f32 -1.442695, %v3598_v37  ;;  %v3606_v43 = vadd.f32 %v3540_v52, %v464_v38 }
  0x67   : > { %2999 = vpow2.f32 %v2445_v28  ;;  %v3609_v44 = vadd.f32 %v3540_v52, %v465_v40  ;;  %v2688_v51 = vunpack.c.h.bf16 %v2706_v22  ;;  %v2691_v55 = vunpack.c.l.bf16 %v2707_v46 }
  0x68   : > { %3001 = vpow2.f32 %v2446_v39  ;;  %v2449_v47 = vmul.f32 -1.442695, %v3606_v43  ;;  %v3616_v58 = vadd.f32 %v3540_v52, %v466_v45  ;;  %v2692_v8 = vunpack.c.h.bf16 %v2707_v46 }
  0x69   : > { %3003 = vpow2.f32 %v2447_v41  ;;  %v2450_v49 = vmul.f32 -1.442695, %v3609_v44  ;;  %v467_v3 = vmul.f32 %v2688_v51, %v3536_v50  ;;  %v468_v7 = vmul.f32 %v2691_v55, %v3536_v50 }
  0x6a   : > { %3005 = vpow2.f32 %v2448_v42  ;;  %v2451_v11 = vmul.f32 -1.442695, %v3616_v58  ;;  %v469_v22 = vmul.f32 %v2692_v8, %v3536_v50  ;;  %vm652_vm6 = vsmask.f32 4368 }
  0x6b   : > { %v2988_v48 = vpop.eup %2987  ;;  %3007 = vpow2.f32 %v2449_v47  ;;  %v3622_v14 = vadd.f32 %v3540_v52, %v467_v3  ;;  %v3625_v21 = vadd.f32 %v3540_v52, %v468_v7  ;;  %vm3646_vm7 = vmor %vm332_vm2, %vm652_vm6 }
  0x6c   : > { %v2990_v53 = vpop.eup %2989  ;;  %v540_v54 = vadd.f32 1.0, %v2988_v48  ;;  %3009 = vpow2.f32 %v2450_v49  ;;  %v3631_v34 = vadd.f32 %v3540_v52, %v469_v22 }
  0x6d   : > { %v2992_v56 = vpop.eup %2991  ;;  %v541_v57 = vadd.f32 1.0, %v2990_v53  ;;  %v2452_v29 = vmul.f32 -1.442695, %v3622_v14  ;;  %v2453_v32 = vmul.f32 -1.442695, %v3625_v21 }
  0x6e   : > { %v2994_v59 = vpop.eup %2993  ;;  %3011 = vrcp.f32 %v540_v54  ;;  %v542_v60 = vadd.f32 1.0, %v2992_v56  ;;  %v3638_v49 = vmul.f32 -1.442695, %v3631_v34 }
  0x6f   : > { %v2996_v61 = vpop.eup %2995  ;;  %3013 = vrcp.f32 %v541_v57  ;;  %v543_v2 = vadd.f32 1.0, %v2994_v59 }
  0x70   : > { %v2998_v4 = vpop.eup %2997  ;;  %3015 = vrcp.f32 %v542_v60  ;;  %v544_v6 = vadd.f32 1.0, %v2996_v61 }
  0x71   : > { %v3000_v9 = vpop.eup %2999  ;;  %3017 = vrcp.f32 %v543_v2  ;;  %v545_v10 = vadd.f32 1.0, %v2998_v4 }
  0x72   : > { %3019 = vrcp.f32 %v544_v6  ;;  %v546_v12 = vadd.f32 1.0, %v3000_v9  ;;  %v3002_v13 = vpop.eup %3001  ;;  %v815_v6 = vld [vmem:[#allocation2 + $0xc] sm:$0xf] }
  0x73   : > { %3021 = vrcp.f32 %v545_v10  ;;  %v3004_v19 = vpop.eup %3003  ;;  %v547_v20 = vadd.f32 1.0, %v3002_v13  ;;  %v819_v13 = vld [vmem:[#allocation2 + $0x14] sm:$0x1] }
  0x74   : > { %3023 = vrcp.f32 %v546_v12  ;;  %v3006_v23 = vpop.eup %3005  ;;  %v548_v24 = vadd.f32 1.0, %v3004_v19 }
  0x75   : > { %3025 = vpow2.f32 %v2451_v11  ;;  %v3008_v25 = vpop.eup %3007  ;;  %v549_v26 = vadd.f32 1.0, %v3006_v23 }
  0x76   : > { %3027 = vrcp.f32 %v547_v20  ;;  %v3010_v27 = vpop.eup %3009  ;;  %v550_v28 = vadd.f32 1.0, %v3008_v25  ;;  %v822_v25 = vld [vmem:[#allocation2 + $0x18] sm:$0xf] }
  0x77   : > { %3029 = vrcp.f32 %v548_v24  ;;  %v551_v31 = vadd.f32 1.0, %v3010_v27 }
  0x78   : > { %v3012_v30 = vpop.eup %3011  ;;  %3031 = vrcp.f32 %v549_v26 }
  0x79   : > { %v3014_v35 = vpop.eup %3013  ;;  %v588_v38 = vmul.f32 %v3012_v30, %v3549_v62  ;;  %3033 = vrcp.f32 %v550_v28 }
  0x7a   : > { %v3016_v39 = vpop.eup %3015  ;;  %v589_v40 = vmul.f32 %v3014_v35, %v3552_v63  ;;  %3035 = vrcp.f32 %v551_v31 }
  0x7b   : > { %v3018_v41 = vpop.eup %3017  ;;  %v2622_v42 = vpack.c.bf16 %v588_v38, %v588_v38  ;;  %v590_v45 = vmul.f32 %v3016_v39, %v3555_v0  ;;  %3037 = vpow2.f32 %v2452_v29 }
  0x7c   : > { %v3020_v46 = vpop.eup %3019  ;;  %v2623_v47 = vpack.c.bf16 %v589_v40, %v589_v40  ;;  %v591_v48 = vmul.f32 %v3018_v41, %v3560_v5  ;;  %3039 = vpow2.f32 %v2453_v32  ;;  %v826_v32 = vld [vmem:[#allocation2 + $0x20] sm:$0x1] }
  0x7d   : > { %v3022_v62 = vpop.eup %3021  ;;  %v655_v51 = vshrl.u32 %v2622_v42, 16  ;;  %v658_v53 = vshll.u32 %v2622_v42, 16  ;;  %v2624_v54 = vpack.c.bf16 %v590_v45, %v590_v45  ;;  %v592_v63 = vmul.f32 %v3020_v46, %v3573_v15  ;;  %v829_v45 = vld [vmem:[#allocation2 + $0x24] sm:$0xf] }
  0x7e   : > { %v3024_v55 = vpop.eup %3023  ;;  %v663_v56 = vshrl.u32 %v2623_v47, 16  ;;  %v666_v57 = vshll.u32 %v2623_v47, 16  ;;  %v2625_v59 = vpack.c.bf16 %v591_v48, %v591_v48  ;;  %v593_v0 = vmul.f32 %v3022_v62, %v3576_v16 }
  0x7f   : > { %v3642_v60 = vpop.eup %3025  ;;  %v657_v61 = vrot.slane %v655_v51, 7  ;;  %v672_v5 = vshrl.u32 %v2624_v54, 16  ;;  %v675_v2 = vshll.u32 %v2624_v54, 16  ;;  %v2626_v3 = vpack.c.bf16 %v592_v63, %v592_v63 }
  0x80   : > { %v3028_v4 = vpop.eup %3027  ;;  %v665_v7 = vrot.slane %v663_v56, 7  ;;  %v680_v8 = vshrl.u32 %v2625_v59, 16  ;;  %v683_v9 = vshll.u32 %v2625_v59, 16  ;;  %v2627_v10 = vpack.c.bf16 %v593_v0, %v593_v0 }
  0x81   : > { %v3030_v11 = vpop.eup %3029  ;;  %v660_v15 = vor.u32 %v658_v53, %v657_v61  ;;  %v661_v16 = vrot.slane %v657_v61, 4  ;;  %v674_v19 = vrot.slane %v672_v5, 7  ;;  %v689_v20 = vshrl.u32 %v2626_v3, 16 }
  0x82   : > { %v3032_v22 = vpop.eup %3031  ;;  %v668_v23 = vor.u32 %v666_v57, %v665_v7  ;;  %v670_v24 = vrot.slane %v665_v7, 4  ;;  %v682_v26 = vrot.slane %v680_v8, 7  ;;  %v692_v27 = vshll.u32 %v2626_v3, 16 }
  0x83   : > { %v3034_v28 = vpop.eup %3033  ;;  %v816_v29 = vsel %vm3492_vm5, %v660_v15, %v815_v6  ;;  %v677_v30 = vor.u32 %v675_v2, %v674_v19  ;;  %v678_v31 = vrot.slane %v674_v19, 4  ;;  %v691_v35 = vrot.slane %v689_v20, 7  ;;  %v833_v2 = vld [vmem:[#allocation2 + $0x2c] sm:$0x1] }
  0x84   : > { %v3036_v38 = vpop.eup %3035  ;;  %817 = vst [vmem:[#allocation2 + $0xc] sm:$0xf] %v816_v29  ;;  %v669_v39 = vsel %vm3646_vm7, %v661_v16, %v668_v23  ;;  %v820_v40 = vsel %vm3460_vm3, %v670_v24, %v819_v13  ;;  %v685_v41 = vor.u32 %v683_v9, %v682_v26  ;;  %v687_v42 = vrot.slane %v682_v26, 4  ;;  %v840_v29 = vld [vmem:[#allocation2 + $0x38] sm:$0x1] }
  0x85   : > { %v3656_v46 = vpop.eup %3037  ;;  %818 = vst.msk [vmem:[#allocation2 + $0x10] sm:$0xf] %vm364_vm0, %v669_v39  ;;  %821 = vst [vmem:[#allocation2 + $0x14] sm:$0x1] %v820_v40  ;;  %v823_v47 = vsel %vm3492_vm5, %v677_v30, %v822_v25  ;;  %v694_v48 = vor.u32 %v692_v27, %v691_v35  ;;  %v695_v62 = vrot.slane %v691_v35, 4  ;;  %v697_v51 = vshrl.u32 %v2627_v10, 16 }
  0x86   : > { %v3661_v53 = vpop.eup %3039  ;;  %824 = vst [vmem:[#allocation2 + $0x18] sm:$0xf] %v823_v47  ;;  %v686_v54 = vsel %vm3646_vm7, %v678_v31, %v685_v41  ;;  %v827_v63 = vsel %vm3460_vm3, %v687_v42, %v826_v32  ;;  %v700_v56 = vshll.u32 %v2627_v10, 16  ;;  %v594_v57 = vmul.f32 %v3024_v55, %v3579_v17 }
  0x87   : > { %825 = vst.msk [vmem:[#allocation2 + $0x1c] sm:$0xf] %vm364_vm0, %v686_v54  ;;  %828 = vst [vmem:[#allocation2 + $0x20] sm:$0x1] %v827_v63  ;;  %v830_v59 = vsel %vm3492_vm5, %v694_v48, %v829_v45  ;;  %v699_v0 = vrot.slane %v697_v51, 7  ;;  %v595_v61 = vmul.f32 %v3028_v4, %v3592_v33  ;;  %v596_v5 = vmul.f32 %v3030_v11, %v3595_v36 }
  0x88   : > { %831 = vst [vmem:[#allocation2 + $0x24] sm:$0xf] %v830_v59  ;;  %v2628_v3 = vpack.c.bf16 %v594_v57, %v594_v57  ;;  %v597_v6 = vmul.f32 %v3032_v22, %v3598_v37  ;;  %v598_v7 = vmul.f32 %v3034_v28, %v3606_v43  ;;  %v599_v17 = vmul.f32 %v3036_v38, %v3609_v44  ;;  %v836_v22 = vld [vmem:[#allocation2 + $0x30] sm:$0xf]  ;;  %v843_v38 = vld [vmem:[#allocation2 + $0x3c] sm:$0xf] }
  0x89   : > { %v702_v55 = vor.u32 %v700_v56, %v699_v0  ;;  %v704_v8 = vrot.slane %v699_v0, 4  ;;  %v2629_v9 = vpack.c.bf16 %v595_v61, %v595_v61  ;;  %v2630_v10 = vpack.c.bf16 %v596_v5, %v596_v5  ;;  %v847_v48 = vld [vmem:[#allocation2 + $0x44] sm:$0x1] }
  0x8a   : > { %v706_v15 = vshrl.u32 %v2628_v3, 16  ;;  %v709_v16 = vshll.u32 %v2628_v3, 16  ;;  %v2631_v13 = vpack.c.bf16 %v597_v6, %v597_v6  ;;  %v2632_v19 = vpack.c.bf16 %v598_v7, %v598_v7 }
  0x8b   : > { %v703_v33 = vsel %vm3646_vm7, %v695_v62, %v702_v55  ;;  %v834_v36 = vsel %vm3460_vm3, %v704_v8, %v833_v2  ;;  %v714_v4 = vshrl.u32 %v2629_v9, 16  ;;  %v717_v37 = vshll.u32 %v2629_v9, 16  ;;  %v850_v62 = vld [vmem:[#allocation2 + $0x48] sm:$0xf]  ;;  %v854_v8 = vld [vmem:[#allocation2 + $0x50] sm:$0x1] }
  0x8c   : > { %832 = vst.msk [vmem:[#allocation2 + $0x28] sm:$0xf] %vm364_vm0, %v703_v33  ;;  %835 = vst [vmem:[#allocation2 + $0x2c] sm:$0x1] %v834_v36  ;;  %v708_v43 = vrot.slane %v706_v15, 7  ;;  %v723_v44 = vshrl.u32 %v2630_v10, 16  ;;  %v2633_v40 = vpack.c.bf16 %v599_v17, %v599_v17  ;;  %3041 = vpow2.f32 %v3638_v49 }
  0x8d   : > { %v726_v11 = vshll.u32 %v2630_v10, 16  ;;  %v731_v20 = vshrl.u32 %v2631_v13, 16  ;;  %v716_v23 = vrot.slane %v714_v4, 7  ;;  %v734_v24 = vshll.u32 %v2631_v13, 16 }
  0x8e   : > { %v740_v25 = vshrl.u32 %v2632_v19, 16  ;;  %v743_v26 = vshll.u32 %v2632_v19, 16  ;;  %v711_v27 = vor.u32 %v709_v16, %v708_v43  ;;  %v712_v28 = vrot.slane %v708_v43, 4 }
  0x8f   : > { %v725_v30 = vrot.slane %v723_v44, 7  ;;  %v733_v31 = vrot.slane %v731_v20, 7  ;;  %v719_v32 = vor.u32 %v717_v37, %v716_v23  ;;  %v721_v35 = vrot.slane %v716_v23, 4 }
  0x90   : > { %v742_v39 = vrot.slane %v740_v25, 7  ;;  %v837_v41 = vsel %vm3492_vm5, %v711_v27, %v836_v22  ;;  %v748_v61 = vshrl.u32 %v2633_v40, 16  ;;  %v751_v3 = vshll.u32 %v2633_v40, 16 }
  0x91   : > { %v728_v42 = vor.u32 %v726_v11, %v725_v30  ;;  %v729_v45 = vrot.slane %v725_v30, 4  ;;  %v736_v47 = vor.u32 %v734_v24, %v733_v31  ;;  %838 = vst [vmem:[#allocation2 + $0x30] sm:$0xf] %v837_v41  ;;  %v720_v51 = vsel %vm3646_vm7, %v712_v28, %v719_v32  ;;  %v864_v32 = vld [vmem:[#allocation2 + $0x60] sm:$0xf] }
  0x92   : > { %v841_v54 = vsel %vm3460_vm3, %v721_v35, %v840_v29  ;;  %v738_v63 = vrot.slane %v733_v31, 4  ;;  %v745_v56 = vor.u32 %v743_v26, %v742_v39  ;;  %839 = vst.msk [vmem:[#allocation2 + $0x34] sm:$0xf] %vm364_vm0, %v720_v51  ;;  %v746_v0 = vrot.slane %v742_v39, 4  ;;  %v857_v26 = vld [vmem:[#allocation2 + $0x54] sm:$0xf] }
  0x93   : > { %842 = vst [vmem:[#allocation2 + $0x38] sm:$0x1] %v841_v54  ;;  %v844_v57 = vsel %vm3492_vm5, %v728_v42, %v843_v38  ;;  %v737_v59 = vsel %vm3646_vm7, %v729_v45, %v736_v47  ;;  %v552_v6 = vadd.f32 1.0, %v3642_v60  ;;  %v750_v7 = vrot.slane %v748_v61, 7  ;;  %v861_v29 = vld [vmem:[#allocation2 + $0x5c] sm:$0x1] }
  0x94   : > { %845 = vst [vmem:[#allocation2 + $0x3c] sm:$0xf] %v844_v57  ;;  %846 = vst.msk [vmem:[#allocation2 + $0x40] sm:$0xf] %vm364_vm0, %v737_v59  ;;  %v848_v5 = vsel %vm3460_vm3, %v738_v63, %v847_v48  ;;  %v851_v2 = vsel %vm3492_vm5, %v745_v56, %v850_v62  ;;  %v553_v17 = vadd.f32 1.0, %v3656_v46  ;;  %v554_v55 = vadd.f32 1.0, %v3661_v53 }
  0x95   : > { %849 = vst [vmem:[#allocation2 + $0x44] sm:$0x1] %v848_v5  ;;  %852 = vst [vmem:[#allocation2 + $0x48] sm:$0xf] %v851_v2  ;;  %3043 = vrcp.f32 %v552_v6  ;;  %v753_v9 = vor.u32 %v751_v3, %v750_v7  ;;  %v755_v10 = vrot.slane %v750_v7, 4 }
  0x96   : > { %3045 = vrcp.f32 %v553_v17  ;;  %v3042_v46 = vpop.eup %3041  ;;  %v868_v54 = vld [vmem:[#allocation2 + $0x68] sm:$0x1] }
  0x97   : > { %3047 = vrcp.f32 %v554_v55  ;;  %v754_v15 = vsel %vm3646_vm7, %v746_v0, %v753_v9  ;;  %v855_v60 = vsel %vm3460_vm3, %v755_v10, %v854_v8  ;;  %v555_v53 = vadd.f32 1.0, %v3042_v46 }
  0x98   : > { %853 = vst.msk [vmem:[#allocation2 + $0x4c] sm:$0xf] %vm364_vm0, %v754_v15  ;;  %856 = vst [vmem:[#allocation2 + $0x50] sm:$0x1] %v855_v60 }
  0x99   : > { %3049 = vrcp.f32 %v555_v53 }
  0x9f   : > { %v3044_v16 = vpop.eup %3043 }
  0xa0   : > { %v3046_v13 = vpop.eup %3045  ;;  %v600_v49 = vmul.f32 %v3044_v16, %v3616_v58 }
  0xa1   : > { %v3048_v19 = vpop.eup %3047  ;;  %v601_v33 = vmul.f32 %v3046_v13, %v3622_v14 }
  0xa2   : > { %v2634_v36 = vpack.c.bf16 %v600_v49, %v600_v49  ;;  %v602_v4 = vmul.f32 %v3048_v19, %v3625_v21 }
  0xa3   : > { %v2635_v37 = vpack.c.bf16 %v601_v33, %v601_v33  ;;  %v3050_v38 = vpop.eup %3049 }
  0xa4   : > { %v757_v43 = vshrl.u32 %v2634_v36, 16  ;;  %v760_v44 = vshll.u32 %v2634_v36, 16  ;;  %v2636_v11 = vpack.c.bf16 %v602_v4, %v602_v4  ;;  %v603_v42 = vmul.f32 %v3050_v38, %v3631_v34  ;;  %v2694_v34 = vld [vmem:[%s878_s16] sm:$0xff] (!%p2471_p7)  }
  0xa5   : > { %v765_v20 = vshrl.u32 %v2635_v37, 16  ;;  %v768_v22 = vshll.u32 %v2635_v37, 16  ;;  %v2695_v0 = vunpack.c.l.bf16 (!%p2471_p7), %v2694_v34  ;;  %v2696_v61 = vunpack.c.h.bf16 (!%p2471_p7), %v2694_v34  ;;  %v927_v37 = vld [vmem:[#allocation2] sm:$0xf] (!%p2471_p7) }
  0xa6   : > { %v759_v23 = vrot.slane %v757_v43, 7  ;;  %v774_v24 = vshrl.u32 %v2636_v11, 16  ;;  %v777_v25 = vshll.u32 %v2636_v11, 16  ;;  %v2637_v45 = vpack.c.bf16 %v603_v42, %v603_v42 }
  0xa7   : > { %v767_v27 = vrot.slane %v765_v20, 7  ;;  %v883_v5 = vmul.f32 (!%p2471_p7), %v2695_v0, %v3536_v50  ;;  %v884_v2 = vmul.f32 (!%p2471_p7), %v2696_v61, %v3536_v50  ;;  %v931_v20 = vld [vmem:[#allocation2 + $0x8] sm:$0x1] (!%p2471_p7) }
  0xa8   : > { %v762_v28 = vor.u32 %v760_v44, %v759_v23  ;;  %v763_v58 = vrot.slane %v759_v23, 4  ;;  %v776_v30 = vrot.slane %v774_v24, 7  ;;  %v782_v47 = vshrl.u32 %v2637_v45, 16 }
  0xa9   : > { %v770_v14 = vor.u32 %v768_v22, %v767_v27  ;;  %v772_v31 = vrot.slane %v767_v27, 4  ;;  %v785_v48 = vshll.u32 %v2637_v45, 16  ;;  %874 = sbr.rel (%p2471_p7) target bundleno = 211 (0xd3), region = 52  ;;  %v885_v3 = vadd.f32 (!%p2471_p7), %v3540_v52, %v883_v5 }
  0xaa   : > { %v858_v21 = vsel %vm3492_vm5, %v762_v28, %v857_v26  ;;  %v779_v35 = vor.u32 %v777_v25, %v776_v30  ;;  %v780_v62 = vrot.slane %v776_v30, 4  ;;  %v784_v51 = vrot.slane %v782_v47, 7 }
  0xab   : > { %859 = vst [vmem:[#allocation2 + $0x54] sm:$0xf] %v858_v21  ;;  %v771_v39 = vsel %vm3646_vm7, %v763_v58, %v770_v14  ;;  %v862_v40 = vsel %vm3460_vm3, %v772_v31, %v861_v29  ;;  %v886_v6 = vadd.f32 (!%p2471_p7), %v3540_v52, %v884_v2  ;;  %v2475_v7 = vmul.f32 (!%p2471_p7), -1.442695, %v885_v3 }
  0xac   : > { %860 = vst.msk [vmem:[#allocation2 + $0x58] sm:$0xf] %vm364_vm0, %v771_v39  ;;  %863 = vst [vmem:[#allocation2 + $0x5c] sm:$0x1] %v862_v40  ;;  %v865_v41 = vsel %vm3492_vm5, %v779_v35, %v864_v32  ;;  %v787_v63 = vor.u32 %v785_v48, %v784_v51  ;;  %v789_v56 = vrot.slane %v784_v51, 4 }
  0xad   : > { %866 = vst [vmem:[#allocation2 + $0x60] sm:$0xf] %v865_v41  ;;  %v2476_v17 = vmul.f32 (!%p2471_p7), -1.442695, %v886_v6  ;;  %3051 = vpow2.f32 (!%p2471_p7), %v2475_v7 }
  0xae   : > { %v788_v57 = vsel %vm3646_vm7, %v780_v62, %v787_v63  ;;  %v869_v59 = vsel %vm3460_vm3, %v789_v56, %v868_v54 }
  0xaf   : > { %867 = vst.msk [vmem:[#allocation2 + $0x64] sm:$0xf] %vm364_vm0, %v788_v57  ;;  %870 = vst [vmem:[#allocation2 + $0x68] sm:$0x1] %v869_v59  ;;  %3053 = vpow2.f32 (!%p2471_p7), %v2476_v17 }
  0xb7   : > { %v3052_v55 = vpop.eup %3051 }
  0xb8   : > { %v893_v9 = vadd.f32 1.0, %v3052_v55 }
  0xb9   : > { %v3054_v8 = vpop.eup %3053 }
  0xba   : > { %v894_v10 = vadd.f32 1.0, %v3054_v8  ;;  %3055 = vrcp.f32 %v893_v9 }
  0xbc   : > { %3057 = vrcp.f32 %v894_v10 }
  0xc4   : > { %v3056_v15 = vpop.eup %3055 }
  0xc5   : > { %v899_v46 = vmul.f32 %v3056_v15, %v885_v3 }
  0xc6   : > { %v3058_v60 = vpop.eup %3057 }
  0xc7   : > { %v900_v16 = vmul.f32 %v3058_v60, %v886_v6  ;;  %v2639_v53 = vpack.c.bf16 %v899_v46, %v899_v46 }
  0xc9   : > { %v2640_v13 = vpack.c.bf16 %v900_v16, %v900_v16  ;;  %v908_v49 = vshrl.u32 %v2639_v53, 16  ;;  %v911_v19 = vshll.u32 %v2639_v53, 16 }
  0xcb   : > { %v916_v33 = vshrl.u32 %v2640_v13, 16  ;;  %v919_v36 = vshll.u32 %v2640_v13, 16  ;;  %v910_v4 = vrot.slane %v908_v49, 7 }
  0xcd   : > { %v918_v43 = vrot.slane %v916_v33, 7  ;;  %v913_v44 = vor.u32 %v911_v19, %v910_v4  ;;  %v914_v11 = vrot.slane %v910_v4, 4 }
  0xcf   : > { %v921_v22 = vor.u32 %v919_v36, %v918_v43  ;;  %v923_v23 = vrot.slane %v918_v43, 4  ;;  %v928_v24 = vsel %vm3492_vm5, %v913_v44, %v927_v37 }
  0xd0   : > { %929 = vst [vmem:[#allocation2] sm:$0xf] %v928_v24 }
  0xd1   : > { %v922_v25 = vsel %vm3646_vm7, %v914_v11, %v921_v22  ;;  %v932_v26 = vsel %vm3460_vm3, %v923_v23, %v931_v20 }
  0xd2   : > { %930 = vst.msk [vmem:[#allocation2 + $0x4] sm:$0xf] %vm364_vm0, %v922_v25  ;;  %933 = vst [vmem:[#allocation2 + $0x8] sm:$0x1] %v932_v26 }
  0xd3 PF: > { %p2479_p2 = scmp.ge.s32.totalorder %s3231_s27, 1 }
  0xd4   : > { %v2708_v27 = vld [vmem:[%s3466_s18 + $0x40] sm:$0xff] (!%p2479_p2)   ;;  %v990_v56 = vld [vmem:[#allocation2 + $0x6c] sm:$0xf] (!%p2479_p2)  ;;  %v994_v0 = vld [vmem:[#allocation2 + $0x74] sm:$0x1] (!%p2479_p2) }
  0xd5   : > { %937 = sbr.rel (%p2479_p2) target bundleno = 258 (0x102), region = 56  ;;  %v2699_v28 = vunpack.c.l.bf16 (!%p2479_p2), %v2708_v27  ;;  %v2700_v58 = vunpack.c.h.bf16 (!%p2479_p2), %v2708_v27 }
  0xd7   : > { %v946_v29 = vmul.f32 (!%p2479_p2), %v2699_v28, %v3536_v50  ;;  %v947_v30 = vmul.f32 (!%p2479_p2), %v2700_v58, %v3536_v50 }
  0xd9   : > { %v948_v14 = vadd.f32 (!%p2479_p2), %v3540_v52, %v946_v29  ;;  %v949_v31 = vadd.f32 (!%p2479_p2), %v3540_v52, %v947_v30 }
  0xdb   : > { %v2484_v32 = vmul.f32 (!%p2479_p2), -1.442695, %v948_v14  ;;  %v2485_v21 = vmul.f32 (!%p2479_p2), -1.442695, %v949_v31 }
  0xdd   : > { %3059 = vpow2.f32 %v2484_v32 }
  0xde   : > { %3061 = vpow2.f32 %v2485_v21 }
  0xe7   : > { %v3060_v35 = vpop.eup %3059 }
  0xe8   : > { %v3062_v38 = vpop.eup %3061  ;;  %v956_v39 = vadd.f32 1.0, %v3060_v35 }
  0xe9   : > { %v957_v40 = vadd.f32 1.0, %v3062_v38 }
  0xea   : > { %3063 = vrcp.f32 %v956_v39 }
  0xeb   : > { %3065 = vrcp.f32 %v957_v40 }
  0xf4   : > { %v3064_v41 = vpop.eup %3063 }
  0xf5   : > { %v3066_v42 = vpop.eup %3065  ;;  %v962_v45 = vmul.f32 %v3064_v41, %v948_v14 }
  0xf6   : > { %v963_v47 = vmul.f32 %v3066_v42, %v949_v31 }
  0xf7   : > { %v2642_v48 = vpack.c.bf16 %v962_v45, %v962_v45 }
  0xf8   : > { %v2643_v50 = vpack.c.bf16 %v963_v47, %v963_v47 }
  0xf9   : > { %v971_v62 = vshrl.u32 %v2642_v48, 16  ;;  %v974_v51 = vshll.u32 %v2642_v48, 16 }
  0xfa   : > { %v979_v54 = vshrl.u32 %v2643_v50, 16  ;;  %v982_v52 = vshll.u32 %v2643_v50, 16 }
  0xfb   : > { %v973_v63 = vrot.slane %v971_v62, 7 }
  0xfc   : > { %v981_v57 = vrot.slane %v979_v54, 7 }
  0xfd   : > { %v976_v59 = vor.u32 %v974_v51, %v973_v63  ;;  %v977_v34 = vrot.slane %v973_v63, 4 }
  0xfe   : > { %v984_v61 = vor.u32 %v982_v52, %v981_v57  ;;  %v986_v5 = vrot.slane %v981_v57, 4 }
  0xff   : > { %v991_v2 = vsel %vm3492_vm5, %v976_v59, %v990_v56 }
 0x100   : > { %992 = vst [vmem:[#allocation2 + $0x6c] sm:$0xf] %v991_v2  ;;  %v985_v3 = vsel %vm3646_vm7, %v977_v34, %v984_v61  ;;  %v995_v6 = vsel %vm3460_vm3, %v986_v5, %v994_v0 }
 0x101   : > { %993 = vst.msk [vmem:[#allocation2 + $0x70] sm:$0xf] %vm364_vm0, %v985_v3  ;;  %996 = vst [vmem:[#allocation2 + $0x74] sm:$0x1] %v995_v6 }
 0x102 PF: > { %v1088_v7 = vld [vmem:[#allocation2] sm:$0xf]  ;;  %v1089_v17 = vld [vmem:[#allocation2 + $0x4] sm:$0xf]  ;;  %v1090_v55 = vld [vmem:[#allocation2 + $0x8] sm:$0x1]  ;;  %s4193_s12 = scalar_lea.vmem %s4165_s5, %s3457_s9 }
 0x103   : > { %vm1118_vm8 = vsmask.f32 3328  ;;  %vm1119_vm9 = vsmask.f32 7440  ;;  %v1122_v8 = vshrl.u32 %v1088_v7, 16  ;;  %v1125_v9 = vshll.u32 %v1088_v7, 16 }
 0x104   : > { %v1131_v18 = vshll.u32 %v1089_v17, 16  ;;  %v1135_v10 = vshrl.u32 %v1089_v17, 16  ;;  %v1141_v15 = vshll.u32 %v1090_v55, 16  ;;  %v1432_v60 = vld [vmem:[#allocation2] sm:$0xe]  ;;  %vm1492_vm10 = vcmask 1042432   ;;  %vm3761_vm11 = vmor %vm1118_vm8, %vm1119_vm9 }
 0x105   : > { %v1124_v12 = vrot.slane %v1122_v8, 4  ;;  %v1127_v46 = vrot.slane %v1125_v9, 5  ;;  %v1433_v16 = vld [vmem:[#allocation2 + $0x4] sm:$0xf]  ;;  %v1434_v1 = vld [vmem:[#allocation2 + $0x8] sm:$0x1] }
 0x106   : > { %v1133_v53 = vrot.slane %v1131_v18, 5  ;;  %v1137_v13 = vrot.slane %v1135_v10, 4  ;;  %v1143_v49 = vrot.slane %v1141_v15, 5  ;;  %v3067_v19 = vld [vmem:[%s4163_s3 + $0x30] sm:$0xff]   ;;  %vm1493_vm12 = vcmask 1046532   ;;  %v3068_v44 = vld [vmem:[%s4163_s3] sm:$0xff]  }
 0x107   : > { %v1128_v36 = vor.u32 %v1127_v46, %v1124_v12  ;;  %v2508_v4 = vrot.slane %v1432_v60, 9  ;;  %v1497_v37 = vrot.slane %v1433_v16, 5  ;;  %v1091_v43 = vld [vmem:[#allocation2 + $0xc] sm:$0xf]  ;;  %vm3768_vm13 = vmor %vm1492_vm10, %vm1493_vm12  ;;  %v1500_v22 = vrot.slane %v1434_v1, 5  ;;  %2751 = vmatprep.subr.bf16.mxu1 %v3067_v19  ;;  %2779 = vmatprep.subr.bf16.mxu0 %v3068_v44  ;;  %v3069_v29 = vld [vmem:[%s4163_s3 + $0x38] sm:$0xff]  }
 0x108   : > { %v1138_v11 = vor.u32 %v1137_v13, %v1133_v53  ;;  %v1092_v23 = vld [vmem:[#allocation2 + $0x10] sm:$0xf]  ;;  %v1093_v24 = vld [vmem:[#allocation2 + $0x14] sm:$0x1]  ;;  %v1146_v25 = vshrl.u32 %v1091_v43, 16  ;;  %v1149_v58 = vshll.u32 %v1091_v43, 16  ;;  %2752 = vmatpush3.bf16.msra.mxu1 %v3067_v19  ;;  %2780 = vmatpush3.bf16.msra.mxu0 %v3068_v44 }
 0x109   : > { %v1129_v26 = vrot.slane %v1128_v36, 4  ;;  %v1498_v27 = vsel %vm3768_vm13, %v2508_v4, %v1497_v37  ;;  %v1499_v28 = vrot.slane %v1497_v37, 4  ;;  %v1155_v31 = vshll.u32 %v1092_v23, 16  ;;  %v1094_v21 = vld [vmem:[#allocation2 + $0x18] sm:$0xf]  ;;  %2753 = vmatprep.subr.bf16.mxu1 %v3069_v29  ;;  %s3253_s13 = smov 64  }
 0x10a   : > { %v1139_v30 = vrot.slane %v1138_v11, 4  ;;  %v1148_v14 = vrot.slane %v1146_v25, 4  ;;  %v1159_v32 = vshrl.u32 %v1092_v23, 16  ;;  %v1151_v39 = vrot.slane %v1149_v58, 5  ;;  %v1095_v41 = vld [vmem:[#allocation2 + $0x1c] sm:$0xf] }
 0x10b   : > { %v1134_v35 = vsel %vm3761_vm11, %v1129_v26, %v1133_v53  ;;  %v1501_v38 = vsel %vm3768_vm13, %v1499_v28, %v1500_v22  ;;  %v1165_v40 = vshll.u32 %v1093_v24, 16  ;;  %v1157_v47 = vrot.slane %v1155_v31, 5  ;;  %v1096_v50 = vld [vmem:[#allocation2 + $0x20] sm:$0x1]  ;;  %v1435_v62 = vld [vmem:[#allocation2 + $0xc] sm:$0xe] }
 0x10c   : > { %v1144_v42 = vsel %vm3761_vm11, %v1139_v30, %v1143_v49  ;;  %v2518_v45 = vcombine.low %v1498_v27, %v1501_v38  ;;  %v1161_v48 = vrot.slane %v1159_v32, 4  ;;  %v1152_v54 = vor.u32 %v1151_v39, %v1148_v14  ;;  %v1436_v56 = vld [vmem:[#allocation2 + $0x10] sm:$0xf]  ;;  %v1437_v57 = vld [vmem:[#allocation2 + $0x14] sm:$0x1]  ;;  %2754 = vmatpush3.bf16.msra.mxu1 %v3069_v29  ;;  %v3070_v2 = vld [vmem:[%s4163_s3 + $0x8] sm:$0xff]  }
 0x10d   : > { %v2498_v51 = vcombine.low %v1134_v35, %v1144_v42  ;;  %v1167_v52 = vrot.slane %v1165_v40, 5  ;;  %v1170_v63 = vshrl.u32 %v1094_v21, 16  ;;  %v1173_v34 = vshll.u32 %v1094_v21, 16  ;;  %v1438_v5 = vld [vmem:[#allocation2 + $0x18] sm:$0xe]  ;;  %s3254_s16 = smov 32   ;;  %2781 = vmatprep.subr.bf16.mxu0 %v3070_v2 }
 0x10e   : > { %1595 = vrot.lane.b32.xlu1 %v2518_v45, %s3253_s13  ;;  %v1162_v59 = vor.u32 %v1161_v48, %v1157_v47  ;;  %v1179_v0 = vshll.u32 %v1095_v41, 16  ;;  %v1183_v61 = vshrl.u32 %v1095_v41, 16  ;;  %v1153_v3 = vrot.slane %v1152_v54, 4  ;;  %v1439_v55 = vld [vmem:[#allocation2 + $0x1c] sm:$0xf]  ;;  %2782 = vmatpush3.bf16.msra.mxu0 %v3070_v2  ;;  %v3072_v36 = vld [vmem:[%s4163_s3 + $0x40] sm:$0xff]  }
 0x10f   : > { %1391 = vrot.lane.b32.xlu0 %v2498_v51, %s3254_s16  ;;  %v1172_v6 = vrot.slane %v1170_v63, 4  ;;  %v1189_v7 = vshll.u32 %v1096_v50, 16  ;;  %v2509_v17 = vrot.slane %v1435_v62, 9  ;;  %v1175_v9 = vrot.slane %v1173_v34, 5  ;;  %v1440_v15 = vld [vmem:[#allocation2 + $0x20] sm:$0x1]  ;;  %2755 = vmatprep.subr.bf16.mxu1 %v3072_v36 }
 0x110   : > { %v1163_v8 = vrot.slane %v1162_v59, 4  ;;  %v1181_v18 = vrot.slane %v1179_v0, 5  ;;  %v1185_v10 = vrot.slane %v1183_v61, 4  ;;  %v1158_v60 = vsel %vm3761_vm11, %v1153_v3, %v1157_v47  ;;  %v1097_v1 = vld [vmem:[#allocation2 + $0x24] sm:$0xf]  ;;  %2756 = vmatpush3.bf16.msra.mxu1 %v3072_v36  ;;  %v3073_v38 = vld [vmem:[%s4163_s3 + $0x10] sm:$0xff]  }
 0x111   : > { %v1191_v12 = vrot.slane %v1189_v7, 5  ;;  %v1504_v46 = vrot.slane %v1436_v56, 5  ;;  %v1507_v16 = vrot.slane %v1437_v57, 5  ;;  %v1176_v13 = vor.u32 %v1175_v9, %v1172_v6  ;;  %v1098_v24 = vld [vmem:[#allocation2 + $0x28] sm:$0xf]  ;;  %2783 = vmatprep.subr.bf16.mxu0 %v3073_v38  ;;  %s2660_s9 = sshll.u32 %s3231_s27, 4 }
 0x112   : > { %v1168_v53 = vsel %vm3761_vm11, %v1163_v8, %v1167_v52  ;;  %v1186_v49 = vor.u32 %v1185_v10, %v1181_v18  ;;  %v2510_v19 = vrot.slane %v1438_v5, 9  ;;  %v1511_v44 = vrot.slane %v1439_v55, 5  ;;  %v1099_v58 = vld [vmem:[#allocation2 + $0x2c] sm:$0x1]  ;;  %v1100_v30 = vld [vmem:[#allocation2 + $0x30] sm:$0xf]  ;;  %2784 = vmatpush3.bf16.msra.mxu0 %v3073_v38 }
 0x113   : > { %v2499_v4 = vcombine.low %v1158_v60, %v1168_v53  ;;  %v1505_v37 = vsel %vm3768_vm13, %v2509_v17, %v1504_v46  ;;  %v1506_v43 = vrot.slane %v1504_v46, 4  ;;  %v1177_v11 = vrot.slane %v1176_v13, 4  ;;  %v1101_v35 = vld [vmem:[#allocation2 + $0x34] sm:$0xf]  ;;  %v1102_v45 = vld [vmem:[#allocation2 + $0x38] sm:$0x1] }
 0x114   : > { %v1187_v22 = vrot.slane %v1186_v49, 4  ;;  %v1514_v23 = vrot.slane %v1440_v15, 5  ;;  %v1194_v25 = vshrl.u32 %v1097_v1, 16  ;;  %v1512_v27 = vsel %vm3768_vm13, %v2510_v19, %v1511_v44  ;;  %v1441_v47 = vld [vmem:[#allocation2 + $0x24] sm:$0xe]  ;;  %v3075_v34 = vld [vmem:[%s4163_s3 + $0x48] sm:$0xff]  }
 0x115   : > { %1393 = vrot.lane.b32.xlu0 %v2499_v4, %s3254_s16  ;;  %v1508_v26 = vsel %vm3768_vm13, %v1506_v43, %v1507_v16  ;;  %v1513_v28 = vrot.slane %v1511_v44, 4  ;;  %v1197_v29 = vshll.u32 %v1097_v1, 16  ;;  %v1182_v14 = vsel %vm3761_vm11, %v1177_v11, %v1181_v18  ;;  %v1442_v54 = vld [vmem:[#allocation2 + $0x28] sm:$0xf]  ;;  %v1443_v59 = vld [vmem:[#allocation2 + $0x2c] sm:$0x1]  ;;  %2757 = vmatprep.subr.bf16.mxu1 %v3075_v34 }
 0x116   : > { %v1192_v31 = vsel %vm3761_vm11, %v1187_v22, %v1191_v12  ;;  %v2519_v32 = vcombine.low %v1505_v37, %v1508_v26  ;;  %v1196_v21 = vrot.slane %v1194_v25, 4  ;;  %v1203_v42 = vshll.u32 %v1098_v24, 16  ;;  %v1444_v3 = vld [vmem:[#allocation2 + $0x30] sm:$0xe]  ;;  %v1445_v8 = vld [vmem:[#allocation2 + $0x34] sm:$0xf]  ;;  %2758 = vmatpush3.bf16.msra.mxu1 %v3075_v34 }
 0x117   : > { %v2500_v39 = vcombine.low %v1182_v14, %v1192_v31  ;;  %v1515_v40 = vsel %vm3768_vm13, %v1513_v28, %v1514_v23  ;;  %v1199_v41 = vrot.slane %v1197_v29, 5  ;;  %v1207_v50 = vshrl.u32 %v1098_v24, 16  ;;  %v1446_v60 = vld [vmem:[#allocation2 + $0x38] sm:$0x1]  ;;  %v1103_v13 = vld [vmem:[#allocation2 + $0x3c] sm:$0xf] }
 0x118   : > { %v2520_v48 = vcombine.low %v1512_v27, %v1515_v40  ;;  %v1213_v62 = vshll.u32 %v1099_v58, 16  ;;  %v1218_v51 = vshrl.u32 %v1100_v30, 16  ;;  %v1205_v63 = vrot.slane %v1203_v42, 5  ;;  %v3076_v12 = vld [vmem:[%s4163_s3 + $0x18] sm:$0xff]   ;;  %v1104_v25 = vld [vmem:[#allocation2 + $0x40] sm:$0xf] }
 0x119   : > { %1395 = vrot.lane.b32.xlu1 %v2500_v39, %s3254_s16  ;;  %1597 = vrot.lane.b32.xlu0 %v2519_v32, %s3253_s13  ;;  %v1200_v52 = vor.u32 %v1199_v41, %v1196_v21  ;;  %v1221_v56 = vshll.u32 %v1100_v30, 16  ;;  %v1227_v57 = vshll.u32 %v1101_v35, 16  ;;  %v1209_v0 = vrot.slane %v1207_v50, 4  ;;  %v1105_v26 = vld [vmem:[#allocation2 + $0x44] sm:$0x1]  ;;  %s2615_s14 = sshll.u32 %s3235_s28, 5 }
 0x11a   : > { %v1215_v61 = vrot.slane %v1213_v62, 5  ;;  %v1220_v5 = vrot.slane %v1218_v51, 4  ;;  %v1231_v2 = vshrl.u32 %v1101_v35, 16  ;;  %v1237_v55 = vshll.u32 %v1102_v45, 16  ;;  %2785 = vmatprep.subr.bf16.mxu0 %v3076_v12  ;;  %v1106_v14 = vld [vmem:[#allocation2 + $0x48] sm:$0xf]  ;;  %s2299_s27 = sadd.s32 %s2660_s9, %s2615_s14 }
 0x11b   : > { %v1201_v6 = vrot.slane %v1200_v52, 4  ;;  %v1223_v7 = vrot.slane %v1221_v56, 5  ;;  %v1229_v17 = vrot.slane %v1227_v57, 5  ;;  %v1210_v9 = vor.u32 %v1209_v0, %v1205_v63  ;;  %2786 = vmatpush3.bf16.msra.mxu0 %v3076_v12  ;;  %v1107_v38 = vld [vmem:[#allocation2 + $0x4c] sm:$0xf]  ;;  %v3079_v52 = vld [vmem:[%s4163_s3 + $0x20] sm:$0xff]  }
 0x11c   : > { %v1233_v18 = vrot.slane %v1231_v2, 4  ;;  %v2511_v10 = vrot.slane %v1441_v47, 9  ;;  %v1518_v15 = vrot.slane %v1442_v54, 5  ;;  %v1239_v1 = vrot.slane %v1237_v55, 5  ;;  %v1108_v45 = vld [vmem:[#allocation2 + $0x50] sm:$0x1]  ;;  %2787 = vmatprep.subr.bf16.mxu0 %v3079_v52 }
 0x11d   : > { %1599 = vrot.lane.b32.xlu1 %v2520_v48, %s3253_s13  ;;  %v1206_v46 = vsel %vm3761_vm11, %v1201_v6, %v1205_v63  ;;  %v1224_v16 = vor.u32 %v1223_v7, %v1220_v5  ;;  %v1521_v53 = vrot.slane %v1443_v59, 5  ;;  %v1211_v49 = vrot.slane %v1210_v9, 4  ;;  %v3078_v47 = vld [vmem:[%s4163_s3 + $0x50] sm:$0xff]   ;;  %v1447_v54 = vld [vmem:[#allocation2 + $0x3c] sm:$0xe]  ;;  %s2616_s28 = sshll.u32 %s2299_s27, 6 }
 0x11e   : > { %v1234_v19 = vor.u32 %v1233_v18, %v1229_v17  ;;  %v1519_v36 = vsel %vm3768_vm13, %v2511_v10, %v1518_v15  ;;  %v1520_v4 = vrot.slane %v1518_v15, 4  ;;  %v2512_v43 = vrot.slane %v1444_v3, 9  ;;  %v1448_v34 = vld [vmem:[#allocation2 + $0x40] sm:$0xf]  ;;  %2759 = vmatprep.subr.bf16.mxu1 %v3078_v47  ;;  %v1449_v3 = vld [vmem:[#allocation2 + $0x44] sm:$0x1]  ;;  %s4085_s30 = scalar_lea.hbm %s4166_s6, %s2616_s28 }
 0x11f   : > { %v1225_v37 = vrot.slane %v1224_v16, 4  ;;  %v1525_v44 = vrot.slane %v1445_v8, 5  ;;  %v1528_v11 = vrot.slane %v1446_v60, 5  ;;  %v1216_v22 = vsel %vm3761_vm11, %v1211_v49, %v1215_v61  ;;  %2760 = vmatpush3.bf16.msra.mxu1 %v3078_v47  ;;  %v3081_v6 = vld [vmem:[%s4163_s3 + $0x58] sm:$0xff]   ;;  %v1450_v9 = vld [vmem:[#allocation2 + $0x48] sm:$0xe]  ;;  %2788 = vmatpush3.bf16.msra.mxu0 %v3079_v52 }
 0x120   : > { %v1235_v23 = vrot.slane %v1234_v19, 4  ;;  %v1522_v24 = vsel %vm3768_vm13, %v1520_v4, %v1521_v53  ;;  %v1242_v27 = vshrl.u32 %v1103_v13, 16  ;;  %v2501_v28 = vcombine.low %v1206_v46, %v1216_v22  ;;  %v3082_v18 = vld [vmem:[%s4163_s3 + $0x28] sm:$0xff]   ;;  %2761 = vmatprep.subr.bf16.mxu1 %v3081_v6  ;;  %v1452_v49 = vld [vmem:[#allocation2 + $0x50] sm:$0x1]  ;;  %s2302_s8 = sshll.u32 %s3725_s29, 4  ;;  %s4089_s8 = int_to_ptr.vmem [resolvable:$true] %s2302_s8 }
 0x121   : > { %v1230_v58 = vsel %vm3761_vm11, %v1225_v37, %v1229_v17  ;;  %v2521_v29 = vcombine.low %v1519_v36, %v1522_v24  ;;  %v1526_v30 = vsel %vm3768_vm13, %v2512_v43, %v1525_v44  ;;  %v1527_v32 = vrot.slane %v1525_v44, 4  ;;  %v1451_v46 = vld [vmem:[#allocation2 + $0x4c] sm:$0xf]  ;;  %2789 = vmatprep.subr.bf16.mxu0 %v3082_v18  ;;  %v1109_v43 = vld [vmem:[#allocation2 + $0x54] sm:$0xf]  ;;  %s4194_s15 = sand.u32 1, %s3211_s22  }
 0x122   : > { %v1240_v31 = vsel %vm3761_vm11, %v1235_v23, %v1239_v1  ;;  %v1244_v21 = vrot.slane %v1242_v27, 4  ;;  %v1245_v35 = vshll.u32 %v1103_v13, 16  ;;  %1397 = vrot.lane.b32.xlu0 %v2501_v28, %s3254_s16  ;;  %v1251_v40 = vshll.u32 %v1104_v25, 16  ;;  %v1110_v24 = vld [vmem:[#allocation2 + $0x58] sm:$0xf]  ;;  %s4097_s18 = scalar_lea.sflag [#allocation6], %s4194_s15 }
 0x123   : > { %v2502_v39 = vcombine.low %v1230_v58, %v1240_v31  ;;  %v1255_v41 = vshrl.u32 %v1104_v25, 16  ;;  %v1261_v42 = vshll.u32 %v1105_v26, 16  ;;  %v1529_v48 = vsel %vm3768_vm13, %v1527_v32, %v1528_v11  ;;  %2762 = vmatpush3.bf16.msra.mxu1 %v3081_v6  ;;  %v1111_v25 = vld [vmem:[#allocation2 + $0x5c] sm:$0x1]  ;;  %2790 = vmatpush3.bf16.msra.mxu0 %v3082_v18  ;;  %v1454_v47 = vld [vmem:[#allocation2 + $0x58] sm:$0xf] }
 0x124   : > { %v1247_v50 = vrot.slane %v1245_v35, 5  ;;  %v1266_v62 = vshrl.u32 %v1106_v14, 16  ;;  %v1269_v51 = vshll.u32 %v1106_v14, 16  ;;  %v2522_v63 = vcombine.low %v1526_v30, %v1529_v48  ;;  %v3865_v30 = vld [vmem:[%s4163_s3 + $0x60] sm:$0xff]   ;;  %s3125_s11 = scalar_lea.vmem %s4089_s8, 1024  ;;  %p4195_p0 = scmp.ne.s32.totalorder %s4179_s19, 0 }
 0x125   : > { %1399 = vrot.lane.b32.xlu1 %v2502_v39, %s3254_s16  ;;  %v1253_v56 = vrot.slane %v1251_v40, 5  ;;  %v1257_v57 = vrot.slane %v1255_v41, 4  ;;  %v1263_v59 = vrot.slane %v1261_v42, 5  ;;  %v1275_v2 = vshll.u32 %v1107_v38, 16  ;;  %v1113_v35 = vld [vmem:[#allocation2 + $0x64] sm:$0xf]  ;;  %2807 = vmatprep.subr.bf16.mxu0 %v3865_v30  ;;  %p3126_p4 = scmp.ne.s32.totalorder %s4089_s8, %s3125_s11 }
 0x126   : > { %v1248_v0 = vor.u32 %v1247_v50, %v1244_v21  ;;  %v1268_v61 = vrot.slane %v1266_v62, 4  ;;  %v1271_v5 = vrot.slane %v1269_v51, 5  ;;  %1601 = vrot.lane.b32.xlu0 %v2521_v29, %s3253_s13  ;;  %v1279_v17 = vshrl.u32 %v1107_v38, 16  ;;  %v1112_v29 = vld [vmem:[#allocation2 + $0x60] sm:$0xf]  ;;  %2835 = vmatprep.subr.bf16.mxu1 %v3865_v30 }
 0x127   : > { %v1258_v7 = vor.u32 %v1257_v57, %v1253_v56  ;;  %v1285_v55 = vshll.u32 %v1108_v45, 16  ;;  %v2513_v8 = vrot.slane %v1447_v54, 9  ;;  %v1277_v60 = vrot.slane %v1275_v2, 5  ;;  %v1114_v42 = vld [vmem:[#allocation2 + $0x68] sm:$0x1]  ;;  %p3127_p1 = pnand %p3126_p4, %p4195_p0 }
 0x128   : > { %v1249_v10 = vrot.slane %v1248_v0, 4  ;;  %v1272_v15 = vor.u32 %v1271_v5, %v1268_v61  ;;  %v1532_v12 = vrot.slane %v1448_v34, 5  ;;  %v1281_v1 = vrot.slane %v1279_v17, 4  ;;  %v1453_v45 = vld [vmem:[#allocation2 + $0x54] sm:$0xe] }
 0x129   : > { %1603 = vrot.lane.b32.xlu1 %v2522_v63, %s3253_s13  ;;  %v1259_v16 = vrot.slane %v1258_v7, 4  ;;  %v1287_v53 = vrot.slane %v1285_v55, 5  ;;  %v1535_v13 = vrot.slane %v1449_v3, 5  ;;  %v2514_v22 = vrot.slane %v1450_v9, 9  ;;  %v1455_v61 = vld [vmem:[#allocation2 + $0x5c] sm:$0x1]  ;;  %p3128_p6 = pneg %p3127_p1 }
 0x12a   : > { %v1254_v19 = vsel %vm3761_vm11, %v1249_v10, %v1253_v56  ;;  %v1273_v36 = vrot.slane %v1272_v15, 4  ;;  %v1533_v4 = vsel %vm3768_vm13, %v2513_v8, %v1532_v12  ;;  %v1534_v37 = vrot.slane %v1532_v12, 4  ;;  %v1456_v7 = vld [vmem:[#allocation2 + $0x60] sm:$0xe]  ;;  %v1457_v17 = vld [vmem:[#allocation2 + $0x64] sm:$0xf] }
 0x12b   : > { %v1264_v44 = vsel %vm3761_vm11, %v1259_v16, %v1263_v59  ;;  %v1282_v11 = vor.u32 %v1281_v1, %v1277_v60  ;;  %v1539_v23 = vrot.slane %v1451_v46, 5  ;;  %v1542_v58 = vrot.slane %v1452_v49, 5  ;;  %v1458_v55 = vld [vmem:[#allocation2 + $0x68] sm:$0x1]  ;;  %v1115_v16 = vld [vmem:[#allocation2 + $0x6c] sm:$0xf] }
 0x12c   : > { %v2503_v26 = vcombine.low %v1254_v19, %v1264_v44  ;;  %v1278_v27 = vsel %vm3761_vm11, %v1273_v36, %v1277_v60  ;;  %v1536_v28 = vsel %vm3768_vm13, %v1534_v37, %v1535_v13  ;;  %v1290_v38 = vshrl.u32 %v1109_v43, 16  ;;  %v1116_v19 = vld [vmem:[#allocation2 + $0x70] sm:$0xf] }
 0x12d   : > { %v1283_v14 = vrot.slane %v1282_v11, 4  ;;  %v2523_v31 = vcombine.low %v1533_v4, %v1536_v28  ;;  %v1540_v32 = vsel %vm3768_vm13, %v2514_v22, %v1539_v23  ;;  %v1541_v21 = vrot.slane %v1539_v23, 4 }
 0x12e   : > { %1401 = vrot.lane.b32.xlu0 %v2503_v26, %s3254_s16  ;;  %v1293_v39 = vshll.u32 %v1109_v43, 16  ;;  %v1299_v40 = vshll.u32 %v1110_v24, 16  ;;  %v1303_v41 = vshrl.u32 %v1110_v24, 16  ;;  %v1309_v62 = vshll.u32 %v1111_v25, 16  ;;  %v1117_v24 = vld [vmem:[#allocation2 + $0x74] sm:$0x1] }
 0x12f   : > { %v1288_v48 = vsel %vm3761_vm11, %v1283_v14, %v1287_v53  ;;  %v1543_v50 = vsel %vm3768_vm13, %v1541_v21, %v1542_v58  ;;  %v1314_v51 = vshrl.u32 %v1112_v29, 16  ;;  %v1292_v63 = vrot.slane %v1290_v38, 4  ;;  %v1459_v58 = vld [vmem:[#allocation2 + $0x6c] sm:$0xe]  ;;  %v1461_v14 = vld [vmem:[#allocation2 + $0x74] sm:$0x1] }
 0x130   : > { %v2504_v54 = vcombine.low %v1278_v27, %v1288_v48  ;;  %v2524_v52 = vcombine.low %v1540_v32, %v1543_v50  ;;  %v1295_v56 = vrot.slane %v1293_v39, 5  ;;  %v1301_v57 = vrot.slane %v1299_v40, 5  ;;  %v3071_v38 = vld [vmem:[#allocation2] sm:$0xff]   ;;  %v3074_v39 = vld [vmem:[#allocation2 + $0xc] sm:$0xff]   ;;  %v3077_v40 = vld [vmem:[#allocation2 + $0x18] sm:$0xff]  }
 0x131   : > { %v1305_v59 = vrot.slane %v1303_v41, 4  ;;  %v1311_v34 = vrot.slane %v1309_v62, 5  ;;  %v1316_v0 = vrot.slane %v1314_v51, 4  ;;  %v1317_v2 = vshll.u32 %v1112_v29, 16  ;;  %v1460_v29 = vld [vmem:[#allocation2 + $0x70] sm:$0xf] }
 0x132   : > { %1403 = vrot.lane.b32.xlu1 %v2504_v54, %s3254_s16  ;;  %1605 = vrot.lane.b32.xlu0 %v2523_v31, %s3253_s13  ;;  %v1296_v5 = vor.u32 %v1295_v56, %v1292_v63  ;;  %v1323_v3 = vshll.u32 %v1113_v35, 16  ;;  %v1327_v6 = vshrl.u32 %v1113_v35, 16  ;;  %v1333_v9 = vshll.u32 %v1114_v42, 16  ;;  %v3080_v41 = vld [vmem:[#allocation2 + $0x24] sm:$0xff]   ;;  %v3083_v42 = vld [vmem:[#allocation2 + $0x30] sm:$0xff]  }
 0x133   : > { %v1306_v8 = vor.u32 %v1305_v59, %v1301_v57  ;;  %v2515_v18 = vrot.slane %v1453_v45, 9  ;;  %v1546_v10 = vrot.slane %v1454_v47, 5  ;;  %v1319_v60 = vrot.slane %v1317_v2, 5  ;;  %v3085_v45 = vld [vmem:[#allocation2 + $0x3c] sm:$0xff]   ;;  %v3086_v47 = vld [vmem:[#allocation2 + $0x48] sm:$0xff]   ;;  %v3088_v48 = vld [vmem:[#allocation2 + $0x54] sm:$0xff]  }
 0x134   : > { %v1297_v15 = vrot.slane %v1296_v5, 4  ;;  %v1325_v12 = vrot.slane %v1323_v3, 5  ;;  %v1329_v46 = vrot.slane %v1327_v6, 4  ;;  %v1335_v53 = vrot.slane %v1333_v9, 5  ;;  %v3090_v5 = vld [vmem:[#allocation2 + $0x60] sm:$0xff]  }
 0x135   : > { %v1307_v1 = vrot.slane %v1306_v8, 4  ;;  %v1547_v13 = vsel %vm3768_vm13, %v2515_v18, %v1546_v10  ;;  %v1548_v49 = vrot.slane %v1546_v10, 4  ;;  %v1320_v4 = vor.u32 %v1319_v60, %v1316_v0 }
 0x136   : > { %1607 = vrot.lane.b32.xlu1 %v2524_v52, %s3253_s13  ;;  %v1302_v36 = vsel %vm3761_vm11, %v1297_v15, %v1301_v57  ;;  %v1330_v37 = vor.u32 %v1329_v46, %v1325_v12  ;;  %v1549_v43 = vrot.slane %v1455_v61, 5  ;;  %v2516_v11 = vrot.slane %v1456_v7, 9 }
 0x137   : > { %v1312_v44 = vsel %vm3761_vm11, %v1307_v1, %v1311_v34  ;;  %v1553_v22 = vrot.slane %v1457_v17, 5  ;;  %v1556_v23 = vrot.slane %v1458_v55, 5  ;;  %v1321_v26 = vrot.slane %v1320_v4, 4 }
 0x138   : > { %v2505_v25 = vcombine.low %v1302_v36, %v1312_v44  ;;  %v1331_v27 = vrot.slane %v1330_v37, 4  ;;  %v1550_v28 = vsel %vm3768_vm13, %v1548_v49, %v1549_v43  ;;  %v1338_v35 = vshrl.u32 %v1115_v16, 16  ;;  %v3087_v37 = vld [vmem:[%s4163_s3 + $0x68] sm:$0xff]  }
 0x139   : > { %v2525_v31 = vcombine.low %v1547_v13, %v1550_v28  ;;  %v1554_v32 = vsel %vm3768_vm13, %v2516_v11, %v1553_v22  ;;  %v1555_v21 = vrot.slane %v1553_v22, 4  ;;  %v1326_v50 = vsel %vm3761_vm11, %v1321_v26, %v1325_v12  ;;  %v3089_v11 = vld [vmem:[%s4163_s3 + $0x70] sm:$0xff]  }
 0x13a   : > { %1405 = vrot.lane.b32.xlu0 %v2505_v25, %s3254_s16  ;;  %v1336_v62 = vsel %vm3761_vm11, %v1331_v27, %v1335_v53  ;;  %v1341_v51 = vshll.u32 %v1115_v16, 16  ;;  %v1347_v54 = vshll.u32 %v1116_v19, 16  ;;  %v1340_v56 = vrot.slane %v1338_v35, 4  ;;  %v3094_v53 = vld [vmem:[#allocation2 + $0x6c] sm:$0xff]   ;;  %v3091_v25 = vld [vmem:[%s4163_s3 + $0x78] sm:$0xff]  }
 0x13b   : > { %v2506_v52 = vcombine.low %v1326_v50, %v1336_v62  ;;  %v1557_v63 = vsel %vm3768_vm13, %v1555_v21, %v1556_v23  ;;  %v1351_v57 = vshrl.u32 %v1116_v19, 16  ;;  %v1357_v61 = vshll.u32 %v1117_v24, 16 }
 0x13c   : > { %v2526_v59 = vcombine.low %v1554_v32, %v1557_v63  ;;  %v1343_v34 = vrot.slane %v1341_v51, 5  ;;  %v1349_v0 = vrot.slane %v1347_v54, 5  ;;  %v2517_v3 = vrot.slane %v1459_v58, 9  ;;  %v3093_v58 = vld [vmem:[%s4163_s3 + $0x88] sm:$0xff]  }
 0x13d   : > { %1407 = vrot.lane.b32.xlu1 %v2506_v52, %s3254_s16  ;;  %v1353_v2 = vrot.slane %v1351_v57, 4  ;;  %v1560_v6 = vrot.slane %v1460_v29, 5  ;;  %v1563_v7 = vrot.slane %v1461_v14, 5  ;;  %vm1077_vm14 = vcmask 261120  }
 0x13e   : > { %1609 = vrot.lane.b32.xlu0 %v2525_v31, %s3253_s13  ;;  %v1344_v17 = vor.u32 %v1343_v34, %v1340_v56  ;;  %v1359_v8 = vrot.slane %v1357_v61, 5  ;;  %1078 = vst.msk [vmem:[#allocation3] sm:$0xff] %vm1077_vm14, %v3071_v38  ;;  %1079 = vst.msk [vmem:[#allocation3 + $0x8] sm:$0xff] %vm1077_vm14, %v3074_v39  ;;  %vm1421_vm15 = vcmask 523520   ;;  %vm1625_vm0 = vcmask 785920  }
 0x13f   : > { %v1354_v55 = vor.u32 %v1353_v2, %v1349_v0  ;;  %v1561_v9 = vsel %vm3768_vm13, %v2517_v3, %v1560_v6  ;;  %v1562_v18 = vrot.slane %v1560_v6, 4  ;;  %1080 = vst.msk [vmem:[#allocation3 + $0x10] sm:$0xff] %vm1077_vm14, %v3077_v40  ;;  %1081 = vst.msk [vmem:[#allocation3 + $0x18] sm:$0xff] %vm1077_vm14, %v3080_v41  ;;  %vm1706_vm1 = vcmask 785408  }
 0x140   : > { %1082 = vst.msk [vmem:[#allocation3 + $0x20] sm:$0xff] %vm1077_vm14, %v3083_v42  ;;  %1083 = vst.msk [vmem:[#allocation3 + $0x28] sm:$0xff] %vm1077_vm14, %v3085_v45  ;;  %v1345_v10 = vrot.slane %v1344_v17, 4  ;;  %vm2268_vm2 = vcmask 519168  }
 0x141   : > { %1084 = vst.msk [vmem:[#allocation3 + $0x30] sm:$0xff] %vm1077_vm14, %v3086_v47  ;;  %1085 = vst.msk [vmem:[#allocation3 + $0x38] sm:$0xff] %vm1077_vm14, %v3088_v48  ;;  %1611 = vrot.lane.b32.xlu1 %v2526_v59, %s3253_s13  ;;  %v1355_v15 = vrot.slane %v1354_v55, 4  ;;  %v1564_v60 = vsel %vm3768_vm13, %v1562_v18, %v1563_v7 }
 0x142   : > { %1086 = vst.msk [vmem:[#allocation3 + $0x40] sm:$0xff] %vm1077_vm14, %v3090_v5  ;;  %v1350_v12 = vsel %vm3761_vm11, %v1345_v10, %v1349_v0  ;;  %v2527_v46 = vcombine.low %v1561_v9, %v1564_v60  ;;  %1087 = vst.msk [vmem:[#allocation3 + $0x48] sm:$0xff] %vm1077_vm14, %v3094_v53 }
 0x143   : > { %v1360_v16 = vsel %vm3761_vm11, %v1355_v15, %v1359_v8 }
 0x144   : > { %v2507_v1 = vcombine.low %v1350_v12, %v1360_v16 }
 0x145   : > { %1613 = vrot.lane.b32.xlu1 %v2527_v46, %s3253_s13 }
 0x146   : > { %1409 = vrot.lane.b32.xlu0 %v2507_v1, %s3254_s16 }
 0x180   : > { %v1596_v13 = vpop.permute.xlu1 %1595 }
 0x181   : > { %v1392_v20 = vpop.permute.xlu0 %1391 }
 0x182   : > { %1422 = vst.msk [vmem:[#allocation3] sm:$0xff] %vm1421_vm15, %v1392_v20 }
 0x183   : > { %1626 = vst.msk [vmem:[#allocation3] sm:$0xff] %vm1625_vm0, %v1596_v13 }
 0x187   : > { %v1394_v49 = vpop.permute.xlu0 %1393 }
 0x188   : > { %1423 = vst.msk [vmem:[#allocation3 + $0x8] sm:$0xff] %vm1421_vm15, %v1394_v49 }
 0x18a   : > { %v1636_v33 = vld [vmem:[#allocation3] sm:$0xff] }
 0x18b   : > { %v1396_v19 = vpop.permute.xlu1 %1395  ;;  %v1598_v36 = vpop.permute.xlu0 %1597  ;;  %2791 = vmatprep.mubr.msk.bf16.mxu0 %vm1706_vm1, %v1636_v33 }
 0x18c   : > { %1424 = vst.msk [vmem:[#allocation3 + $0x10] sm:$0xff] %vm1421_vm15, %v1396_v19  ;;  %v4004_v19 = vld [vmem:[%s4164_s4] ss:$0 sm:$0xff] }
 0x18d   : > { %1627 = vst.msk [vmem:[#allocation3 + $0x8] sm:$0xff] %vm1625_vm0, %v1598_v36 }
 0x18f   : > { %v1600_v4 = vpop.permute.xlu1 %1599 }
 0x190   : > { %1628 = vst.msk [vmem:[#allocation3 + $0x10] sm:$0xff] %vm1625_vm0, %v1600_v4 }
 0x194   : > { %v1637_v43 = vld [vmem:[#allocation3 + $0x8] sm:$0xff]  ;;  %v1398_v44 = vpop.permute.xlu0 %1397 }
 0x195   : > { %2763 = vmatprep.mubr.msk.bf16.mxu1 %vm1706_vm1, %v1637_v43  ;;  %2792 = vmatmul.mubr.msk.bf16.vlgmr.msra.gmra.mrb[0].mxu0 %vm1706_vm1, %v1637_v43  ;;  %1425 = vst.msk [vmem:[#allocation3 + $0x18] sm:$0xff] %vm1421_vm15, %v1398_v44 }
 0x196   : > { %2808 = vmatpush3.bf16.msra.mxu0 %v3865_v30 }
 0x197   : > { %2809 = vmatprep.subr.bf16.mxu0 %v3087_v37  ;;  %v1400_v22 = vpop.permute.xlu1 %1399  ;;  %v3936_v23 = vld [vmem:[#allocation3 + $0x10] sm:$0xff] }
 0x198   : > { %1426 = vst.msk [vmem:[#allocation3 + $0x20] sm:$0xff] %vm1421_vm15, %v1400_v22  ;;  %2764 = vmatmul.mubr.msk.bf16.vlgmr.msra.gmra.mrb[0].mxu1 %vm1706_vm1, %v3936_v23  ;;  %2795 = vmatprep.mubr.msk.bf16.mxu0 %vm1706_vm1, %v3936_v23  ;;  %v1602_v24 = vpop.permute.xlu0 %1601 }
 0x199   : > { %2841 = vmatpush3.bf16.msra.mxu1 %v3865_v30  ;;  %1629 = vst.msk [vmem:[#allocation3 + $0x18] sm:$0xff] %vm1625_vm0, %v1602_v24  ;;  %v3092_v30 = vld [vmem:[%s4163_s3 + $0x80] sm:$0xff]  }
 0x19a   : > { %2810 = vmatpush3.bf16.msra.mxu0 %v3087_v37  ;;  %2836 = vmatprep.subr.bf16.mxu1 %v3087_v37 }
 0x19b   : > { %2811 = vmatprep.subr.bf16.mxu0 %v3089_v11  ;;  %v1604_v26 = vpop.permute.xlu1 %1603 }
 0x19c   : > { %1630 = vst.msk [vmem:[#allocation3 + $0x20] sm:$0xff] %vm1625_vm0, %v1604_v26 }
 0x19d   : > { %2842 = vmatpush3.bf16.msra.mxu1 %v3087_v37  ;;  %v4011_v37 = vld [vmem:[%s4193_s12] ss:$0 sm:$0xff]  ;;  %s3255_s12 = smov [#allocation7]  }
 0x19e   : > { %2812 = vmatpush3.bf16.msra.mxu0 %v3089_v11  ;;  %2837 = vmatprep.subr.bf16.mxu1 %v3089_v11  ;;  %s3129_s9 = sshll.u32 %s3255_s12, 4  ;;  %s3130_s9 = int_to_ptr.vmem [resolvable:$false] %s3129_s9 }
 0x19f   : > { %2813 = vmatprep.subr.bf16.mxu0 %v3091_v25  ;;  %s3131_s14 = scalar_lea.vmem %s3130_s9, 2048  ;;  %p3132_p9 = scmp.lt.s32.totalorder %s4089_s8, %s3130_s9 }
 0x1a0   : > { %v1402_v27 = vpop.permute.xlu0 %1401  ;;  %v1639_v28 = vld [vmem:[#allocation3 + $0x18] sm:$0xff]  ;;  %p3133_p3 = scmp.lt.s32.totalorder %s3131_s14, %s3125_s11 }
 0x1a1   : > { %1427 = vst.msk [vmem:[#allocation3 + $0x28] sm:$0xff] %vm1421_vm15, %v1402_v27  ;;  %2843 = vmatpush3.bf16.msra.mxu1 %v3089_v11  ;;  %2767 = vmatprep.mubr.msk.bf16.mxu1 %vm1706_vm1, %v1639_v28 }
 0x1a2   : > { %2814 = vmatpush3.bf16.msra.mxu0 %v3091_v25  ;;  %2838 = vmatprep.subr.bf16.mxu1 %v3091_v25  ;;  %p3134_p11 = por %p3133_p3, %p3132_p9 }
 0x1a3   : > { %2796 = vmatmul.mubr.msk.bf16.gmra.mrb[4].mxu0 %vm1706_vm1, %v1639_v28  ;;  %v1640_v29 = vld [vmem:[#allocation3 + $0x20] sm:$0xff]  ;;  %2815 = vmatprep.subr.bf16.mxu0 %v3092_v30 }
 0x1a4   : > { %v1404_v14 = vpop.permute.xlu1 %1403  ;;  %v1606_v31 = vpop.permute.xlu0 %1605  ;;  %2768 = vmatmul.mubr.msk.bf16.gmra.mrb[4].mxu1 %vm1706_vm1, %v1640_v29  ;;  %2799 = vmatprep.mubr.msk.bf16.mxu0 %vm1706_vm1, %v1640_v29  ;;  %p3135_p13 = pnand %p3134_p11, %p3128_p6 }
 0x1a5   : > { %1428 = vst.msk [vmem:[#allocation3 + $0x30] sm:$0xff] %vm1421_vm15, %v1404_v14  ;;  %2844 = vmatpush3.bf16.msra.mxu1 %v3091_v25 }
 0x1a6   : > { %1631 = vst.msk [vmem:[#allocation3 + $0x28] sm:$0xff] %vm1625_vm0, %v1606_v31  ;;  %2816 = vmatpush3.bf16.msra.mxu0 %v3092_v30  ;;  %2839 = vmatprep.subr.bf16.mxu1 %v3092_v30 }
 0x1a7   : > { %2817 = vmatprep.subr.bf16.mxu0 %v3093_v58 }
 0x1a8   : > { %v1608_v32 = vpop.permute.xlu1 %1607 }
 0x1a9   : > { %1632 = vst.msk [vmem:[#allocation3 + $0x30] sm:$0xff] %vm1625_vm0, %v1608_v32  ;;  %2845 = vmatpush3.bf16.msra.mxu1 %v3092_v30 }
 0x1aa   : > { %2818 = vmatpush3.bf16.msra.mxu0 %v3093_v58  ;;  %2840 = vmatprep.subr.bf16.mxu1 %v3093_v58 }
 0x1ac   : > { %v1406_v21 = vpop.permute.xlu0 %1405 }
 0x1ad   : > { %v1641_v35 = vld [vmem:[#allocation3 + $0x28] sm:$0xff]  ;;  %1429 = vst.msk [vmem:[#allocation3 + $0x38] sm:$0xff] %vm1421_vm15, %v1406_v21  ;;  %2846 = vmatpush3.bf16.msra.mxu1 %v3093_v58 }
 0x1ae   : > { %2771 = vmatprep.mubr.msk.bf16.mxu1 %vm1706_vm1, %v1641_v35  ;;  %2800 = vmatmul.mubr.msk.bf16.gmra.mrb[8].mxu0 %vm1706_vm1, %v1641_v35 }
 0x1af   : > { %v1408_v38 = vpop.permute.xlu1 %1407 }
 0x1b0   : > { %1430 = vst.msk [vmem:[#allocation3 + $0x40] sm:$0xff] %vm1421_vm15, %v1408_v38  ;;  %v1610_v39 = vpop.permute.xlu0 %1609  ;;  %v1642_v40 = vld [vmem:[#allocation3 + $0x30] sm:$0xff] }
 0x1b1   : > { %1633 = vst.msk [vmem:[#allocation3 + $0x38] sm:$0xff] %vm1625_vm0, %v1610_v39  ;;  %2772 = vmatmul.mubr.msk.bf16.gmra.mrb[8].mxu1 %vm1706_vm1, %v1642_v40  ;;  %2803 = vmatprep.mubr.msk.bf16.mxu0 %vm1706_vm1, %v1642_v40 }
 0x1b3   : > { %v1612_v41 = vpop.permute.xlu1 %1611 }
 0x1b4   : > { %1634 = vst.msk [vmem:[#allocation3 + $0x40] sm:$0xff] %vm1625_vm0, %v1612_v41 }
 0x1b7   : > { %v1614_v42 = vpop.permute.xlu1 %1613 }
 0x1b8   : > { %v1643_v45 = vld [vmem:[#allocation3 + $0x38] sm:$0xff]  ;;  %v1410_v47 = vpop.permute.xlu0 %1409 }
 0x1b9   : > { %2775 = vmatprep.mubr.msk.bf16.mxu1 %vm1706_vm1, %v1643_v45  ;;  %2804 = vmatmul.mubr.msk.bf16.gmra.mrb[12].mxu0 %vm1706_vm1, %v1643_v45  ;;  %1431 = vst.msk [vmem:[#allocation3 + $0x48] sm:$0xff] %vm1421_vm15, %v1410_v47 }
 0x1ba   : > { %2819 = vmatprep.mubr.msk.bf16.mxu0 %vm1706_vm1, %v3936_v23  ;;  %1635 = vst.msk [vmem:[#allocation3 + $0x48] sm:$0xff] %vm1625_vm0, %v1614_v42 }
 0x1bb   : > { %v1656_v48 = vld [vmem:[#allocation3 + $0x40] sm:$0xff] }
 0x1bc   : > { %2776 = vmatmul.mubr.msk.bf16.gmra.mrb[12].mxu1 %vm1706_vm1, %v1656_v48 }
 0x1bd   : > { %2827 = vmatprep.mubr.msk.bf16.mxu1 %vm1706_vm1, %v1642_v40 }
 0x1c1   : > { %2820 = vmatmul.mubr.msk.bf16.vlgmr.msra.gmra.mrb[0].mxu0 %vm1706_vm1, %v1639_v28  ;;  %v1971_v50 = vld [vmem:[#allocation3 + $0x48] sm:$0xff] }
 0x1c2   : > { %2823 = vmatprep.mubr.msk.bf16.mxu0 %vm1706_vm1, %v1640_v29 }
 0x1c4   : > { %2828 = vmatmul.mubr.msk.bf16.vlgmr.msra.gmra.mrb[16].mxu1 %vm1706_vm1, %v1643_v45 }
 0x1c5   : > { %2831 = vmatprep.mubr.msk.bf16.mxu1 %vm1706_vm1, %v1656_v48 }
 0x1c9   : > { %2824 = vmatmul.mubr.msk.bf16.gmra.mrb[4].mxu0 %vm1706_vm1, %v1641_v35 }
 0x1cc   : > { %2832 = vmatmul.mubr.msk.bf16.gmra.mrb[20].mxu1 %vm1706_vm1, %v1971_v50 }
 0x26b   : > { %v2765_v62 = vpop.f32.mrb[0].mxu1 }
 0x26c   : > { %v1765_v51 = vpop.f32.mrb[1].mxu1 }
 0x26d   : > { %v2766_v54 = vpop.f32.mrb[2].mxu1 }
 0x26e   : > { %v1768_v52 = vpop.f32.mrb[3].mxu1 }
 0x277   : > { %v3985_v63 = vpop.f32.mrb[4].mxu1 }
 0x278   : > { %v3987_v56 = vpop.f32.mrb[5].mxu1 }
 0x279   : > { %v3989_v57 = vpop.f32.mrb[6].mxu1 }
 0x27a   : > { %v3991_v59 = vpop.f32.mrb[7].mxu1 }
 0x281   : > { %v2801_v34 = vpop.f32.mrb[8].mxu0 }
 0x282   : > { %v1933_v0 = vpop.f32.mrb[9].mxu0 }
 0x283   : > { %v2802_v61 = vpop.f32.mrb[10].mxu0 }
 0x284   : > { %v1936_v5 = vpop.f32.mrb[11].mxu0  ;;  %v2773_v2 = vpop.f32.mrb[8].mxu1 }
 0x285   : > { %v1942_v3 = vadd.f32 %v2801_v34, %v2773_v2  ;;  %v1797_v6 = vpop.f32.mrb[9].mxu1 }
 0x286   : > { %v1934_v7 = vadd.f32 %v1933_v0, %v1797_v6  ;;  %v2774_v17 = vpop.f32.mrb[10].mxu1 }
 0x287   : > { %v1945_v55 = vadd.f32 %v2802_v61, %v2774_v17  ;;  %v1800_v8 = vpop.f32.mrb[11].mxu1 }
 0x288   : > { %v1937_v9 = vadd.f32 %v1936_v5, %v1800_v8 }
 0x28c   : > { %v2805_v18 = vpop.f32.mrb[12].mxu0 }
 0x28d   : > { %v1949_v10 = vpop.f32.mrb[13].mxu0 }
 0x28e   : > { %v2806_v15 = vpop.f32.mrb[14].mxu0 }
 0x28f   : > { %v2777_v60 = vpop.f32.mrb[12].mxu1  ;;  %v1952_v12 = vpop.f32.mrb[15].mxu0 }
 0x290   : > { %v3993_v46 = vadd.f32 %v2805_v18, %v2777_v60  ;;  %v1813_v16 = vpop.f32.mrb[13].mxu1 }
 0x291   : > { %v3995_v1 = vadd.f32 %v1949_v10, %v1813_v16  ;;  %v2778_v53 = vpop.f32.mrb[14].mxu1 }
 0x292   : > { %v3997_v13 = vadd.f32 %v2806_v15, %v2778_v53  ;;  %v1816_v20 = vpop.f32.mrb[15].mxu1 }
 0x293   : > { %v3999_v49 = vadd.f32 %v1952_v12, %v1816_v20 }
 0x294   : > { %v2821_v33 = vpop.f32.mrb[0].mxu0 }
 0x295   : > { %v2847_v36 = vadd.f32 %v2821_v33, %v2765_v62  ;;  %v2079_v4 = vpop.f32.mrb[1].mxu0 }
 0x296   : > { %v2848_v43 = vadd.f32 %v2079_v4, %v1765_v51  ;;  %v2822_v44 = vpop.f32.mrb[2].mxu0 }
 0x297   : > { %v2167_v11 = vadd.f32 %v2847_v36, %v4004_v19  ;;  %v2829_v22 = vpop.f32.mrb[16].mxu1  ;;  %v2849_v23 = vadd.f32 %v2822_v44, %v2766_v54  ;;  %v2082_v24 = vpop.f32.mrb[3].mxu0 }
 0x298   : > { %v2165_v25 = vadd.f32 %v2848_v43, %v4004_v19  ;;  %v2152_v26 = vadd.f32 %v2829_v22, %v1942_v3  ;;  %v2111_v30 = vpop.f32.mrb[17].mxu1  ;;  %v2850_v27 = vadd.f32 %v2082_v24, %v1768_v52 }
 0x299   : > { %v2190_v28 = vadd.f32 %v4011_v37, %v2167_v11  ;;  %v2168_v58 = vadd.f32 %v2849_v23, %v4004_v19  ;;  %v2150_v29 = vadd.f32 %v2111_v30, %v1934_v7  ;;  %v2830_v14 = vpop.f32.mrb[18].mxu1 }
 0x29a   : > { %v2188_v31 = vadd.f32 %v4011_v37, %v2165_v25  ;;  %v2175_v32 = vadd.f32 %v4004_v19, %v2152_v26  ;;  %v2166_v21 = vadd.f32 %v2850_v27, %v4004_v19  ;;  %v2153_v35 = vadd.f32 %v2830_v14, %v1945_v55  ;;  %v2114_v38 = vpop.f32.mrb[19].mxu1 }
 0x29b   : > { %v2646_v39 = vpack.c.bf16 %v2190_v28, %v2190_v28  ;;  %v2191_v40 = vadd.f32 %v4011_v37, %v2168_v58  ;;  %v2173_v41 = vadd.f32 %v4004_v19, %v2150_v29  ;;  %v2151_v42 = vadd.f32 %v2114_v38, %v1937_v9 }
 0x29c   : > { %v2644_v45 = vpack.c.bf16 %v2188_v31, %v2188_v31  ;;  %v2198_v47 = vadd.f32 %v4011_v37, %v2175_v32  ;;  %v2189_v48 = vadd.f32 %v4011_v37, %v2166_v21  ;;  %v2176_v50 = vadd.f32 %v4004_v19, %v2153_v35  ;;  %v2825_v62 = vpop.f32.mrb[4].mxu0 }
 0x29d   : > { %2271 = vst.msk [vmem:[%s3725_s29 + $0x8] sm:$0xf] %vm2268_vm2, %v2646_v39  ;;  %v2647_v51 = vpack.c.bf16 %v2191_v40, %v2191_v40  ;;  %v2196_v54 = vadd.f32 %v4011_v37, %v2173_v41  ;;  %v2174_v52 = vadd.f32 %v4004_v19, %v2151_v42  ;;  %v2851_v34 = vadd.f32 %v2825_v62, %v3985_v63  ;;  %v2095_v0 = vpop.f32.mrb[5].mxu0 }
 0x29e   : > { %2269 = vst.msk [vmem:[%s3725_s29] sm:$0xf] %vm2268_vm2, %v2644_v45  ;;  %v2654_v61 = vpack.c.bf16 %v2198_v47, %v2198_v47  ;;  %v2645_v5 = vpack.c.bf16 %v2189_v48, %v2189_v48  ;;  %v2199_v2 = vadd.f32 %v4011_v37, %v2176_v50  ;;  %v2852_v3 = vadd.f32 %v2095_v0, %v3987_v56  ;;  %v2826_v6 = vpop.f32.mrb[6].mxu0 }
 0x29f   : > { %2272 = vst.msk [vmem:[%s3725_s29 + $0xc] sm:$0xf] %vm2268_vm2, %v2647_v51  ;;  %v2652_v7 = vpack.c.bf16 %v2196_v54, %v2196_v54  ;;  %v2197_v17 = vadd.f32 %v4011_v37, %v2174_v52  ;;  %v2171_v63 = vadd.f32 %v2851_v34, %v4004_v19  ;;  %v2833_v55 = vpop.f32.mrb[20].mxu1  ;;  %v2853_v8 = vadd.f32 %v2826_v6, %v3989_v57  ;;  %v2098_v9 = vpop.f32.mrb[7].mxu0 }
 0x2a0   : > { %2279 = vst.msk [vmem:[%s3725_s29 + $0x28] sm:$0xf] %vm2268_vm2, %v2654_v61  ;;  %2270 = vst.msk [vmem:[%s3725_s29 + $0x4] sm:$0xf] %vm2268_vm2, %v2645_v5  ;;  %v2655_v56 = vpack.c.bf16 %v2199_v2, %v2199_v2  ;;  %v2169_v18 = vadd.f32 %v2852_v3, %v4004_v19  ;;  %v2156_v10 = vadd.f32 %v2833_v55, %v3993_v46  ;;  %v2127_v15 = vpop.f32.mrb[21].mxu1 }
 0x2a1   : > { %v2854_v60 = vadd.f32 %v2098_v9, %v3991_v59  ;;  %2277 = vst.msk [vmem:[%s3725_s29 + $0x20] sm:$0xf] %vm2268_vm2, %v2652_v7  ;;  %v2653_v57 = vpack.c.bf16 %v2197_v17, %v2197_v17  ;;  %v2194_v12 = vadd.f32 %v4011_v37, %v2171_v63  ;;  %v2172_v16 = vadd.f32 %v2853_v8, %v4004_v19  ;;  %v2834_v20 = vpop.f32.mrb[22].mxu1 }
 0x2a2   : > { %v2154_v53 = vadd.f32 %v2127_v15, %v3995_v1  ;;  %2280 = vst.msk [vmem:[%s3725_s29 + $0x2c] sm:$0xf] %vm2268_vm2, %v2655_v56  ;;  %v2192_v33 = vadd.f32 %v4011_v37, %v2169_v18  ;;  %v2179_v46 = vadd.f32 %v4004_v19, %v2156_v10  ;;  %v2157_v59 = vadd.f32 %v2834_v20, %v3997_v13  ;;  %v2130_v4 = vpop.f32.mrb[23].mxu1 }
 0x2a3   : > { %v2170_v36 = vadd.f32 %v2854_v60, %v4004_v19  ;;  %2278 = vst.msk [vmem:[%s3725_s29 + $0x24] sm:$0xf] %vm2268_vm2, %v2653_v57  ;;  %v2650_v43 = vpack.c.bf16 %v2194_v12, %v2194_v12  ;;  %v2195_v1 = vadd.f32 %v4011_v37, %v2172_v16  ;;  %v2155_v11 = vadd.f32 %v2130_v4, %v3999_v49 }
 0x2a4   : > { %v2177_v44 = vadd.f32 %v4004_v19, %v2154_v53  ;;  %v2648_v22 = vpack.c.bf16 %v2192_v33, %v2192_v33  ;;  %v2202_v23 = vadd.f32 %v4011_v37, %v2179_v46  ;;  %v2180_v24 = vadd.f32 %v4004_v19, %v2157_v59 }
 0x2a5   : > { %v2193_v13 = vadd.f32 %v4011_v37, %v2170_v36  ;;  %2275 = vst.msk [vmem:[%s3725_s29 + $0x18] sm:$0xf] %vm2268_vm2, %v2650_v43  ;;  %v2651_v25 = vpack.c.bf16 %v2195_v1, %v2195_v1  ;;  %v2178_v30 = vadd.f32 %v4004_v19, %v2155_v11 }
 0x2a6   : > { %v2200_v26 = vadd.f32 %v4011_v37, %v2177_v44  ;;  %2273 = vst.msk [vmem:[%s3725_s29 + $0x10] sm:$0xf] %vm2268_vm2, %v2648_v22  ;;  %v2658_v49 = vpack.c.bf16 %v2202_v23, %v2202_v23  ;;  %v2203_v28 = vadd.f32 %v4011_v37, %v2180_v24 }
 0x2a7   : > { %v2649_v27 = vpack.c.bf16 %v2193_v13, %v2193_v13  ;;  %2276 = vst.msk [vmem:[%s3725_s29 + $0x1c] sm:$0xf] %vm2268_vm2, %v2651_v25  ;;  %v2201_v29 = vadd.f32 %v4011_v37, %v2178_v30 }
 0x2a8   : > { %v2656_v58 = vpack.c.bf16 %v2200_v26, %v2200_v26  ;;  %2283 = vst.msk [vmem:[%s3725_s29 + $0x38] sm:$0xf] %vm2268_vm2, %v2658_v49  ;;  %v2659_v19 = vpack.c.bf16 %v2203_v28, %v2203_v28 }
 0x2a9   : > { %2274 = vst.msk [vmem:[%s3725_s29 + $0x14] sm:$0xf] %vm2268_vm2, %v2649_v27  ;;  %v2657_v14 = vpack.c.bf16 %v2201_v29, %v2201_v29 }
 0x2aa   : > { %2281 = vst.msk [vmem:[%s3725_s29 + $0x30] sm:$0xf] %vm2268_vm2, %v2656_v58  ;;  %2284 = vst.msk [vmem:[%s3725_s29 + $0x3c] sm:$0xf] %vm2268_vm2, %v2659_v19 }
 0x2ab   : > { %2282 = vst.msk [vmem:[%s3725_s29 + $0x34] sm:$0xf] %vm2268_vm2, %v2657_v14 }
 0x2ac   : > { %3138 = shalt.err (!%p3135_p13)
}
 0x2ad   : > { %s3139_s29 = scalar_lea.hbm %s4085_s30, 1024  ;;  %s3143_s17 = scalar_lea.hbm %s4166_s6, 4096 }
 0x2ae   : > { %p3140_p5 = scmp.ne.s32.totalorder %s4085_s30, %s3139_s29  ;;  %p3144_p12 = scmp.lt.u32.totalorder %s4085_s30, %s4166_s6 }
 0x2af   : > { %p3145_p7 = scmp.lt.u32.totalorder %s3143_s17, %s3139_s29  ;;  %p3147_p4 = scmp.lt.u32.totalorder %s3139_s29, %s4085_s30 }
 0x2b0   : > { %p3141_p8 = pnand %p3140_p5, %p4195_p0 }
 0x2b1   : > { %p3146_p2 = por %p3145_p7, %p3144_p12 }
 0x2b2   : > { %p3142_p10 = pneg %p3141_p8 }
 0x2b3   : > { %p3148_p1 = por %p3147_p4, %p3146_p2 }
 0x2b5   : > { %p3149_p6 = pnand %p3148_p1, %p3142_p10 }
 0x2b7   : > { %3152 = shalt.err (!%p3149_p6)
}
 0x2b8   : > { %s3256_s11 = smov 4  }
 0x2b9   : > { %2881 = dma.vmem_to_hbm [thread:$0]  (%p4195_p0), %s4089_s8, 1024, %s4085_s30, %s4097_s18, %s3253_s13, %s3253_s13, %s3256_s11  }
 0x2ba PF: > { %p2892_p9 = scmp.ge.s32.totalorder %s3247_s7, 2  ;;  %s2317_s12 = sand.u32 1, %s3207_s21  }
 0x2bb   : > { %p4196_p3 = scmp.ne.s32.totalorder %s4180_s10, 0  ;;  %s2318_s9 = scalar_lea.sflag [#allocation6], %s2317_s12 }
 0x2bd   : > { %p2888_p11 = pnand %p2892_p9, %p4196_p3 }
 0x2bf   : > { %3202 = dma.done.wait (!%p2888_p11), %s2318_s9, 1024  }
 0x2c0   : > { %3204 = vsyncadd (!%p2888_p11), %s2318_s9, 4294966272  ;;  %s22_s7 = sadd.s32 1, %s3247_s7   ;;  %s4197_s27 = sld [smem:[#allocation10_spill]] }
 0x2c1   : > { %p19_p13 = scmp.ge.s32.totalorder %s22_s7, 6   ;;  %s4198_s28 = sld [smem:[#allocation11_spill]] }
 0x2c2   : > { %s4199_s29 = sld [smem:[#allocation12_spill]]  ;;  %s4200_s30 = sld [smem:[#allocation13_spill]] }
 0x2c3   : > { %s4201_s21 = smov %s3211_s22  ;;  %s4202_s22 = smov %s3215_s23 }
 0x2c4   : > { %s4203_s23 = smov %s3382_s24  ;;  %s4204_s24 = smov %s3223_s25 }
 0x2c5   : > { %s4205_s25 = smov %s3227_s26  ;;  %s4206_s26 = smov %s3379_s20 }
 0x2c6   :  { %21 = sbr.rel (!%p19_p13) target bundleno = 9 (0x9), region = 113 }
 0x2cd   :  { %2323 = vsyncpa [#allocation5], 1 }
 0x2ce   :  { %2325 = vsyncpa [#allocation5 + $0x1], 1 }
 0x2cf   :  { %2326 = vsyncpa [#allocation6], 1 }
 0x2d0   :  { %2328 = vsyncpa [#allocation6 + $0x1], 1 }

</bundles_post_ra>
